<compile_context>
chip_gen: v6e
topology: v6e:2x2x1
jax: 0.10.0
libtpu: 0.0.40
codegen_flags: <defaults>
</compile_context>

<pallas_src>
import functools

import jax
import jax.numpy as jnp
import numpy as np
from jax import lax
from jax.experimental import pallas as pl
from jax.experimental.pallas import tpu as pltpu


def _conv_nobias(x2d, w_ref, k, l_out):
    """Bias-free Conv1d for one batch element as K accumulated (C_out,C_in)x(C_in,L_out) matmuls.

    x2d: (C_in, L) ref or array; w_ref: (K, C_out, C_in) ref.
    Returns y: (C_out, L_out) f32, y[o, t] = sum_{c,kk} w[kk, o, c] * x[c, t + kk].
    """
    acc = jnp.dot(w_ref[0], x2d[:, 0:l_out], preferred_element_type=jnp.float32)
    for kk in range(1, k):
        acc = acc + jnp.dot(w_ref[kk], x2d[:, kk:kk + l_out],
                            preferred_element_type=jnp.float32)
    return acc


# ----------------------------- fused single-launch path ---------------------------------------
def _fused_conv_bn_relu_kernel(x_ref, w_ref, gb_ref, o_ref, *, k, l_out, n, eps):
    """Whole (tiny) problem in VMEM: conv for all batch elements, batch stats, BN + ReLU.

    x_ref: (N, C_in, L); w_ref: (K, C_out, C_in); gb_ref: (C_out, 2) packed [gamma, beta];
    o_ref: (N, C_out, L_out).
    """
    ys = [_conv_nobias(x_ref[i], w_ref, k, l_out) for i in range(n)]

    inv_m = 1.0 / float(n * l_out)
    total = jnp.sum(ys[0], axis=1, keepdims=True)
    for y in ys[1:]:
        total = total + jnp.sum(y, axis=1, keepdims=True)
    mean = total * inv_m                                     # (C_out, 1)

    sq = jnp.zeros_like(mean)
    for y in ys:
        d = y - mean
        sq = sq + jnp.sum(d * d, axis=1, keepdims=True)
    var = sq * inv_m                                         # biased variance == train-mode BN

    scale = gb_ref[:, 0:1] * lax.rsqrt(var + eps)
    shift = gb_ref[:, 1:2] - mean * scale
    for i in range(n):
        o_ref[i] = jnp.maximum(ys[i] * scale + shift, 0.0)


# ----------------------------- two-pass tiled fallback path -----------------------------------
def _conv_stats_kernel(x_ref, w_ref, stats_ref, *, k, l_out):
    """Pass 1: per-batch-element partial BN statistics of the (bias-free) conv output.

    stats_ref: (C_out, 2) — [:, 0] = sum_t y[o, t], [:, 1] = sum_t y[o, t]^2 (f32 accumulation).
    """
    y = _conv_nobias(x_ref, w_ref, k, l_out)
    stats_ref[:, 0:1] = jnp.sum(y, axis=1, keepdims=True)
    stats_ref[:, 1:2] = jnp.sum(y * y, axis=1, keepdims=True)


def _conv_bn_relu_kernel(x_ref, w_ref, ss_ref, o_ref, *, k, l_out):
    """Pass 2: recompute the conv, apply folded BN scale/shift + ReLU, emit NCL directly.

    ss_ref: (C_out, 2) — [:, 0] = gamma * rsqrt(var + eps), [:, 1] = beta - mean * scale.
    """
    y = _conv_nobias(x_ref, w_ref, k, l_out)
    o_ref[...] = jnp.maximum(y * ss_ref[:, 0:1] + ss_ref[:, 1:2], 0.0)


@functools.partial(jax.jit, static_argnames=("eps", "force_two_pass"))
def block_fcn_conv(x, weight, bias, gamma, beta, *, eps=0.001, force_two_pass=False):
    """x: (N, C_in, L); weight: (C_out, C_in, K); bias/gamma/beta: (C_out,).

    Returns (N, C_out, L_out) float32 — same layout/semantics as BlockFCNConv.forward in
    training mode (batch statistics).
    """
    del bias  # cancelled exactly by the train-mode BN mean subtraction (mean shifts, var unchanged)
    n, c_in, length = x.shape
    c_out, _, k = weight.shape
    l_out = length - k + 1

    x = x.astype(jnp.float32)
    # w3[kk, o, c] = weight[o, c, kk]  — leading K axis is indexed statically inside the kernel.
    w3 = jnp.transpose(weight, (2, 0, 1)).astype(jnp.float32)
    gamma = gamma.astype(jnp.float32)
    beta = beta.astype(jnp.float32)

    # Fused path budget: inputs + per-element conv results + output, with large headroom under the
    # 32 MiB scoped VMEM limit (and v7x's 64 MiB physical VMEM).
    fused_bytes = 4 * (n * c_in * length + k * c_out * c_in + 2 * c_out
                       + 2 * n * c_out * l_out)
    use_fused = (not force_two_pass) and n <= 8 and fused_bytes <= (8 << 20)

    if use_fused:
        gb = jnp.stack([gamma, beta], axis=1)                # packed (C_out, 2)
        return pl.pallas_call(
            functools.partial(_fused_conv_bn_relu_kernel,
                              k=k, l_out=l_out, n=n, eps=float(eps)),
            out_shape=jax.ShapeDtypeStruct((n, c_out, l_out), jnp.float32),
            compiler_params=pltpu.CompilerParams(vmem_limit_bytes=32 << 20),
        )(x, w3, gb)

    # ---------------------- two-pass tiled path (large problems) ------------------------------
    cparams = pltpu.CompilerParams(
        dimension_semantics=("parallel",),   # batch grid: pipelined DMA + both v7x TensorCores
        vmem_limit_bytes=32 << 20,           # explicit (v5e default scoped limit is 16 MiB)
    )

    # Pass 1: per-batch-element partial (sum, sum of squares) per output channel.
    stats = pl.pallas_call(
        functools.partial(_conv_stats_kernel, k=k, l_out=l_out),
        out_shape=jax.ShapeDtypeStruct((n, c_out, 2), jnp.float32),
        grid=(n,),
        in_specs=[
            pl.BlockSpec((None, c_in, length), lambda i: (i, 0, 0)),   # one batch element of x
            pl.BlockSpec((k, c_out, c_in), lambda i: (0, 0, 0)),       # whole weight, reused
        ],
        out_specs=pl.BlockSpec((None, c_out, 2), lambda i: (i, 0, 0)),
        compiler_params=cparams,
    )(x, w3)

    # Tiny JAX glue: fold batch stats + gamma/beta/eps into packed per-channel scale/shift.
    m = n * l_out
    sums = jnp.sum(stats, axis=0)                                      # (C_out, 2)
    mean = sums[:, 0] / m
    var = jnp.maximum(sums[:, 1] / m - mean * mean, 0.0)               # biased variance
    scale = gamma * lax.rsqrt(var + eps)
    shift = beta - mean * scale
    ss = jnp.stack([scale, shift], axis=1)                             # packed (C_out, 2)

    # Pass 2: recompute the cheap conv matmul, apply BN + ReLU, write NCL output.
    return pl.pallas_call(
        functools.partial(_conv_bn_relu_kernel, k=k, l_out=l_out),
        out_shape=jax.ShapeDtypeStruct((n, c_out, l_out), jnp.float32),
        grid=(n,),
        in_specs=[
            pl.BlockSpec((None, c_in, length), lambda i: (i, 0, 0)),
            pl.BlockSpec((k, c_out, c_in), lambda i: (0, 0, 0)),
            pl.BlockSpec((c_out, 2), lambda i: (0, 0)),
        ],
        out_specs=pl.BlockSpec((None, c_out, l_out), lambda i: (i, 0, 0)),
        compiler_params=cparams,
    )(x, w3, ss)


def _reference(x, weight, bias, gamma, beta, eps=0.001):
    # Pure-JAX reference of the same forward (Conv1d with bias -> train-mode BN -> ReLU).
    y = lax.conv_general_dilated(
        x, weight, window_strides=(1,), padding="VALID",
        dimension_numbers=("NCH", "OIH", "NCH"),
    ) + bias[None, :, None]
    mean = jnp.mean(y, axis=(0, 2), keepdims=True)
    var = jnp.mean((y - mean) ** 2, axis=(0, 2), keepdims=True)
    y_hat = (y - mean) / jnp.sqrt(var + eps)
    out = gamma[None, :, None] * y_hat + beta[None, :, None]
    return jnp.maximum(out, 0.0)


if __name__ == "__main__":
    key = jax.random.PRNGKey(0)
    k_x, k_w, k_b, k_g, k_be = jax.random.split(key, 5)

    # Small, module-consistent shapes: Conv1d(in_channel=4, out_channel=128, kernel_size=8)
    N, C_IN, L = 2, 4, 16
    C_OUT, K = 128, 8
    EPS = 0.001   # BlockFCNConv default epsilon (passed to BatchNorm1d)

    x = jax.random.normal(k_x, (N, C_IN, L), dtype=jnp.float32)
    weight = 0.1 * jax.random.normal(k_w, (C_OUT, C_IN, K), dtype=jnp.float32)
    bias = 0.1 * jax.random.normal(k_b, (C_OUT,), dtype=jnp.float32)
    gamma = 1.0 + 0.1 * jax.random.normal(k_g, (C_OUT,), dtype=jnp.float32)
    beta = 0.1 * jax.random.normal(k_be, (C_OUT,), dtype=jnp.float32)

    ref = _reference(x, weight, bias, gamma, beta, eps=EPS)

    # Fused single-launch path (the one used at these module-typical shapes).
    out = jax.block_until_ready(block_fcn_conv(x, weight, bias, gamma, beta, eps=EPS))
    np.testing.assert_allclose(np.asarray(out), np.asarray(ref), rtol=1e-3, atol=1e-3)
    assert out.shape == (N, C_OUT, L - K + 1)

    # Also exercise the two-pass tiled fallback path so both code paths stay validated.
    out_tiled = jax.block_until_ready(
        block_fcn_conv(x, weight, bias, gamma, beta, eps=EPS, force_two_pass=True))
    np.testing.assert_allclose(np.asarray(out_tiled), np.asarray(ref), rtol=1e-3, atol=1e-3)

    print("KERNEL_OK")
</pallas_src>

<mosaic_0001>
module attributes {stable_mosaic.version = 11 : i64} {
  func.func @_fused_conv_bn_relu_kernel(%arg0: memref<2x4x16xf32, #tpu.memory_space<vmem>>, %arg1: memref<8x128x4xf32, #tpu.memory_space<vmem>>, %arg2: memref<128x2xf32, #tpu.memory_space<vmem>>, %arg3: memref<2x128x9xf32, #tpu.memory_space<vmem>>) attributes {dimension_semantics = [], scalar_prefetch = 0 : i64, scratch_operands = 0 : i64, tpu.core_type = #tpu.core_type<tc>} {
    %c0 = arith.constant 0 : index
    %c0_0 = arith.constant 0 : index
    %c0_1 = arith.constant 0 : index
    %0 = vector.load %arg0[%c0, %c0_0, %c0_1] : memref<2x4x16xf32, #tpu.memory_space<vmem>>, vector<1x4x16xf32>
    %1 = vector.shape_cast %0 : vector<1x4x16xf32> to vector<4x16xf32>
    %c0_2 = arith.constant 0 : index
    %c0_3 = arith.constant 0 : index
    %c0_4 = arith.constant 0 : index
    %2 = vector.load %arg1[%c0_2, %c0_3, %c0_4] : memref<8x128x4xf32, #tpu.memory_space<vmem>>, vector<1x128x4xf32>
    %3 = vector.shape_cast %2 : vector<1x128x4xf32> to vector<128x4xf32>
    %4 = vector.extract_strided_slice %1 {offsets = [0, 0], sizes = [4, 9], strides = [1, 1]} : vector<4x16xf32> to vector<4x9xf32>
    %cst = arith.constant dense<0.000000e+00> : vector<128x9xf32>
    %5 = tpu.matmul %3, %4, %cst {dimension_numbers = #tpu.dot_dimension_numbers<[1], [0], [0], [1], [0, 0, 1, 1], [], []>} : vector<128x4xf32>, vector<4x9xf32>, vector<128x9xf32> -> vector<128x9xf32>
    %c1 = arith.constant 1 : index
    %c0_5 = arith.constant 0 : index
    %c0_6 = arith.constant 0 : index
    %6 = vector.load %arg1[%c1, %c0_5, %c0_6] : memref<8x128x4xf32, #tpu.memory_space<vmem>>, vector<1x128x4xf32>
    %7 = vector.shape_cast %6 : vector<1x128x4xf32> to vector<128x4xf32>
    %8 = vector.extract_strided_slice %1 {offsets = [0, 1], sizes = [4, 9], strides = [1, 1]} : vector<4x16xf32> to vector<4x9xf32>
    %cst_7 = arith.constant dense<0.000000e+00> : vector<128x9xf32>
    %9 = tpu.matmul %7, %8, %cst_7 {dimension_numbers = #tpu.dot_dimension_numbers<[1], [0], [0], [1], [0, 0, 1, 1], [], []>} : vector<128x4xf32>, vector<4x9xf32>, vector<128x9xf32> -> vector<128x9xf32>
    %10 = arith.addf %5, %9 : vector<128x9xf32>
    %c2 = arith.constant 2 : index
    %c0_8 = arith.constant 0 : index
    %c0_9 = arith.constant 0 : index
    %11 = vector.load %arg1[%c2, %c0_8, %c0_9] : memref<8x128x4xf32, #tpu.memory_space<vmem>>, vector<1x128x4xf32>
    %12 = vector.shape_cast %11 : vector<1x128x4xf32> to vector<128x4xf32>
    %13 = vector.extract_strided_slice %1 {offsets = [0, 2], sizes = [4, 9], strides = [1, 1]} : vector<4x16xf32> to vector<4x9xf32>
    %cst_10 = arith.constant dense<0.000000e+00> : vector<128x9xf32>
    %14 = tpu.matmul %12, %13, %cst_10 {dimension_numbers = #tpu.dot_dimension_numbers<[1], [0], [0], [1], [0, 0, 1, 1], [], []>} : vector<128x4xf32>, vector<4x9xf32>, vector<128x9xf32> -> vector<128x9xf32>
    %15 = arith.addf %10, %14 : vector<128x9xf32>
    %c3 = arith.constant 3 : index
    %c0_11 = arith.constant 0 : index
    %c0_12 = arith.constant 0 : index
    %16 = vector.load %arg1[%c3, %c0_11, %c0_12] : memref<8x128x4xf32, #tpu.memory_space<vmem>>, vector<1x128x4xf32>
    %17 = vector.shape_cast %16 : vector<1x128x4xf32> to vector<128x4xf32>
    %18 = vector.extract_strided_slice %1 {offsets = [0, 3], sizes = [4, 9], strides = [1, 1]} : vector<4x16xf32> to vector<4x9xf32>
    %cst_13 = arith.constant dense<0.000000e+00> : vector<128x9xf32>
    %19 = tpu.matmul %17, %18, %cst_13 {dimension_numbers = #tpu.dot_dimension_numbers<[1], [0], [0], [1], [0, 0, 1, 1], [], []>} : vector<128x4xf32>, vector<4x9xf32>, vector<128x9xf32> -> vector<128x9xf32>
    %20 = arith.addf %15, %19 : vector<128x9xf32>
    %c4 = arith.constant 4 : index
    %c0_14 = arith.constant 0 : index
    %c0_15 = arith.constant 0 : index
    %21 = vector.load %arg1[%c4, %c0_14, %c0_15] : memref<8x128x4xf32, #tpu.memory_space<vmem>>, vector<1x128x4xf32>
    %22 = vector.shape_cast %21 : vector<1x128x4xf32> to vector<128x4xf32>
    %23 = vector.extract_strided_slice %1 {offsets = [0, 4], sizes = [4, 9], strides = [1, 1]} : vector<4x16xf32> to vector<4x9xf32>
    %cst_16 = arith.constant dense<0.000000e+00> : vector<128x9xf32>
    %24 = tpu.matmul %22, %23, %cst_16 {dimension_numbers = #tpu.dot_dimension_numbers<[1], [0], [0], [1], [0, 0, 1, 1], [], []>} : vector<128x4xf32>, vector<4x9xf32>, vector<128x9xf32> -> vector<128x9xf32>
    %25 = arith.addf %20, %24 : vector<128x9xf32>
    %c5 = arith.constant 5 : index
    %c0_17 = arith.constant 0 : index
    %c0_18 = arith.constant 0 : index
    %26 = vector.load %arg1[%c5, %c0_17, %c0_18] : memref<8x128x4xf32, #tpu.memory_space<vmem>>, vector<1x128x4xf32>
    %27 = vector.shape_cast %26 : vector<1x128x4xf32> to vector<128x4xf32>
    %28 = vector.extract_strided_slice %1 {offsets = [0, 5], sizes = [4, 9], strides = [1, 1]} : vector<4x16xf32> to vector<4x9xf32>
    %cst_19 = arith.constant dense<0.000000e+00> : vector<128x9xf32>
    %29 = tpu.matmul %27, %28, %cst_19 {dimension_numbers = #tpu.dot_dimension_numbers<[1], [0], [0], [1], [0, 0, 1, 1], [], []>} : vector<128x4xf32>, vector<4x9xf32>, vector<128x9xf32> -> vector<128x9xf32>
    %30 = arith.addf %25, %29 : vector<128x9xf32>
    %c6 = arith.constant 6 : index
    %c0_20 = arith.constant 0 : index
    %c0_21 = arith.constant 0 : index
    %31 = vector.load %arg1[%c6, %c0_20, %c0_21] : memref<8x128x4xf32, #tpu.memory_space<vmem>>, vector<1x128x4xf32>
    %32 = vector.shape_cast %31 : vector<1x128x4xf32> to vector<128x4xf32>
    %33 = vector.extract_strided_slice %1 {offsets = [0, 6], sizes = [4, 9], strides = [1, 1]} : vector<4x16xf32> to vector<4x9xf32>
    %cst_22 = arith.constant dense<0.000000e+00> : vector<128x9xf32>
    %34 = tpu.matmul %32, %33, %cst_22 {dimension_numbers = #tpu.dot_dimension_numbers<[1], [0], [0], [1], [0, 0, 1, 1], [], []>} : vector<128x4xf32>, vector<4x9xf32>, vector<128x9xf32> -> vector<128x9xf32>
    %35 = arith.addf %30, %34 : vector<128x9xf32>
    %c7 = arith.constant 7 : index
    %c0_23 = arith.constant 0 : index
    %c0_24 = arith.constant 0 : index
    %36 = vector.load %arg1[%c7, %c0_23, %c0_24] : memref<8x128x4xf32, #tpu.memory_space<vmem>>, vector<1x128x4xf32>
    %37 = vector.shape_cast %36 : vector<1x128x4xf32> to vector<128x4xf32>
    %38 = vector.extract_strided_slice %1 {offsets = [0, 7], sizes = [4, 9], strides = [1, 1]} : vector<4x16xf32> to vector<4x9xf32>
    %cst_25 = arith.constant dense<0.000000e+00> : vector<128x9xf32>
    %39 = tpu.matmul %37, %38, %cst_25 {dimension_numbers = #tpu.dot_dimension_numbers<[1], [0], [0], [1], [0, 0, 1, 1], [], []>} : vector<128x4xf32>, vector<4x9xf32>, vector<128x9xf32> -> vector<128x9xf32>
    %40 = arith.addf %35, %39 : vector<128x9xf32>
    %c1_26 = arith.constant 1 : index
    %c0_27 = arith.constant 0 : index
    %c0_28 = arith.constant 0 : index
    %41 = vector.load %arg0[%c1_26, %c0_27, %c0_28] : memref<2x4x16xf32, #tpu.memory_space<vmem>>, vector<1x4x16xf32>
    %42 = vector.shape_cast %41 : vector<1x4x16xf32> to vector<4x16xf32>
    %c0_29 = arith.constant 0 : index
    %c0_30 = arith.constant 0 : index
    %c0_31 = arith.constant 0 : index
    %43 = vector.load %arg1[%c0_29, %c0_30, %c0_31] : memref<8x128x4xf32, #tpu.memory_space<vmem>>, vector<1x128x4xf32>
    %44 = vector.shape_cast %43 : vector<1x128x4xf32> to vector<128x4xf32>
    %45 = vector.extract_strided_slice %42 {offsets = [0, 0], sizes = [4, 9], strides = [1, 1]} : vector<4x16xf32> to vector<4x9xf32>
    %cst_32 = arith.constant dense<0.000000e+00> : vector<128x9xf32>
    %46 = tpu.matmul %44, %45, %cst_32 {dimension_numbers = #tpu.dot_dimension_numbers<[1], [0], [0], [1], [0, 0, 1, 1], [], []>} : vector<128x4xf32>, vector<4x9xf32>, vector<128x9xf32> -> vector<128x9xf32>
    %c1_33 = arith.constant 1 : index
    %c0_34 = arith.constant 0 : index
    %c0_35 = arith.constant 0 : index
    %47 = vector.load %arg1[%c1_33, %c0_34, %c0_35] : memref<8x128x4xf32, #tpu.memory_space<vmem>>, vector<1x128x4xf32>
    %48 = vector.shape_cast %47 : vector<1x128x4xf32> to vector<128x4xf32>
    %49 = vector.extract_strided_slice %42 {offsets = [0, 1], sizes = [4, 9], strides = [1, 1]} : vector<4x16xf32> to vector<4x9xf32>
    %cst_36 = arith.constant dense<0.000000e+00> : vector<128x9xf32>
    %50 = tpu.matmul %48, %49, %cst_36 {dimension_numbers = #tpu.dot_dimension_numbers<[1], [0], [0], [1], [0, 0, 1, 1], [], []>} : vector<128x4xf32>, vector<4x9xf32>, vector<128x9xf32> -> vector<128x9xf32>
    %51 = arith.addf %46, %50 : vector<128x9xf32>
    %c2_37 = arith.constant 2 : index
    %c0_38 = arith.constant 0 : index
    %c0_39 = arith.constant 0 : index
    %52 = vector.load %arg1[%c2_37, %c0_38, %c0_39] : memref<8x128x4xf32, #tpu.memory_space<vmem>>, vector<1x128x4xf32>
    %53 = vector.shape_cast %52 : vector<1x128x4xf32> to vector<128x4xf32>
    %54 = vector.extract_strided_slice %42 {offsets = [0, 2], sizes = [4, 9], strides = [1, 1]} : vector<4x16xf32> to vector<4x9xf32>
    %cst_40 = arith.constant dense<0.000000e+00> : vector<128x9xf32>
    %55 = tpu.matmul %53, %54, %cst_40 {dimension_numbers = #tpu.dot_dimension_numbers<[1], [0], [0], [1], [0, 0, 1, 1], [], []>} : vector<128x4xf32>, vector<4x9xf32>, vector<128x9xf32> -> vector<128x9xf32>
    %56 = arith.addf %51, %55 : vector<128x9xf32>
    %c3_41 = arith.constant 3 : index
    %c0_42 = arith.constant 0 : index
    %c0_43 = arith.constant 0 : index
    %57 = vector.load %arg1[%c3_41, %c0_42, %c0_43] : memref<8x128x4xf32, #tpu.memory_space<vmem>>, vector<1x128x4xf32>
    %58 = vector.shape_cast %57 : vector<1x128x4xf32> to vector<128x4xf32>
    %59 = vector.extract_strided_slice %42 {offsets = [0, 3], sizes = [4, 9], strides = [1, 1]} : vector<4x16xf32> to vector<4x9xf32>
    %cst_44 = arith.constant dense<0.000000e+00> : vector<128x9xf32>
    %60 = tpu.matmul %58, %59, %cst_44 {dimension_numbers = #tpu.dot_dimension_numbers<[1], [0], [0], [1], [0, 0, 1, 1], [], []>} : vector<128x4xf32>, vector<4x9xf32>, vector<128x9xf32> -> vector<128x9xf32>
    %61 = arith.addf %56, %60 : vector<128x9xf32>
    %c4_45 = arith.constant 4 : index
    %c0_46 = arith.constant 0 : index
    %c0_47 = arith.constant 0 : index
    %62 = vector.load %arg1[%c4_45, %c0_46, %c0_47] : memref<8x128x4xf32, #tpu.memory_space<vmem>>, vector<1x128x4xf32>
    %63 = vector.shape_cast %62 : vector<1x128x4xf32> to vector<128x4xf32>
    %64 = vector.extract_strided_slice %42 {offsets = [0, 4], sizes = [4, 9], strides = [1, 1]} : vector<4x16xf32> to vector<4x9xf32>
    %cst_48 = arith.constant dense<0.000000e+00> : vector<128x9xf32>
    %65 = tpu.matmul %63, %64, %cst_48 {dimension_numbers = #tpu.dot_dimension_numbers<[1], [0], [0], [1], [0, 0, 1, 1], [], []>} : vector<128x4xf32>, vector<4x9xf32>, vector<128x9xf32> -> vector<128x9xf32>
    %66 = arith.addf %61, %65 : vector<128x9xf32>
    %c5_49 = arith.constant 5 : index
    %c0_50 = arith.constant 0 : index
    %c0_51 = arith.constant 0 : index
    %67 = vector.load %arg1[%c5_49, %c0_50, %c0_51] : memref<8x128x4xf32, #tpu.memory_space<vmem>>, vector<1x128x4xf32>
    %68 = vector.shape_cast %67 : vector<1x128x4xf32> to vector<128x4xf32>
    %69 = vector.extract_strided_slice %42 {offsets = [0, 5], sizes = [4, 9], strides = [1, 1]} : vector<4x16xf32> to vector<4x9xf32>
    %cst_52 = arith.constant dense<0.000000e+00> : vector<128x9xf32>
    %70 = tpu.matmul %68, %69, %cst_52 {dimension_numbers = #tpu.dot_dimension_numbers<[1], [0], [0], [1], [0, 0, 1, 1], [], []>} : vector<128x4xf32>, vector<4x9xf32>, vector<128x9xf32> -> vector<128x9xf32>
    %71 = arith.addf %66, %70 : vector<128x9xf32>
    %c6_53 = arith.constant 6 : index
    %c0_54 = arith.constant 0 : index
    %c0_55 = arith.constant 0 : index
    %72 = vector.load %arg1[%c6_53, %c0_54, %c0_55] : memref<8x128x4xf32, #tpu.memory_space<vmem>>, vector<1x128x4xf32>
    %73 = vector.shape_cast %72 : vector<1x128x4xf32> to vector<128x4xf32>
    %74 = vector.extract_strided_slice %42 {offsets = [0, 6], sizes = [4, 9], strides = [1, 1]} : vector<4x16xf32> to vector<4x9xf32>
    %cst_56 = arith.constant dense<0.000000e+00> : vector<128x9xf32>
    %75 = tpu.matmul %73, %74, %cst_56 {dimension_numbers = #tpu.dot_dimension_numbers<[1], [0], [0], [1], [0, 0, 1, 1], [], []>} : vector<128x4xf32>, vector<4x9xf32>, vector<128x9xf32> -> vector<128x9xf32>
    %76 = arith.addf %71, %75 : vector<128x9xf32>
    %c7_57 = arith.constant 7 : index
    %c0_58 = arith.constant 0 : index
    %c0_59 = arith.constant 0 : index
    %77 = vector.load %arg1[%c7_57, %c0_58, %c0_59] : memref<8x128x4xf32, #tpu.memory_space<vmem>>, vector<1x128x4xf32>
    %78 = vector.shape_cast %77 : vector<1x128x4xf32> to vector<128x4xf32>
    %79 = vector.extract_strided_slice %42 {offsets = [0, 7], sizes = [4, 9], strides = [1, 1]} : vector<4x16xf32> to vector<4x9xf32>
    %cst_60 = arith.constant dense<0.000000e+00> : vector<128x9xf32>
    %80 = tpu.matmul %78, %79, %cst_60 {dimension_numbers = #tpu.dot_dimension_numbers<[1], [0], [0], [1], [0, 0, 1, 1], [], []>} : vector<128x4xf32>, vector<4x9xf32>, vector<128x9xf32> -> vector<128x9xf32>
    %81 = arith.addf %76, %80 : vector<128x9xf32>
    %cst_61 = arith.constant dense<0.000000e+00> : vector<128xf32>
    %82 = vector.multi_reduction <add>, %40, %cst_61 [1] : vector<128x9xf32> to vector<128xf32>
    %83 = vector.shape_cast %82 : vector<128xf32> to vector<128x1xf32>
    %cst_62 = arith.constant dense<0.000000e+00> : vector<128xf32>
    %84 = vector.multi_reduction <add>, %81, %cst_62 [1] : vector<128x9xf32> to vector<128xf32>
    %85 = vector.shape_cast %84 : vector<128xf32> to vector<128x1xf32>
    %86 = arith.addf %83, %85 : vector<128x1xf32>
    %cst_63 = arith.constant 0.055555556 : f32
    %87 = vector.broadcast %cst_63 : f32 to vector<128x1xf32>
    %88 = arith.mulf %86, %87 : vector<128x1xf32>
    %cst_64 = arith.constant 0.000000e+00 : f32
    %89 = vector.broadcast %cst_64 : f32 to vector<128x1xf32>
    %90 = vector.broadcast %88 : vector<128x1xf32> to vector<128x9xf32>
    %91 = arith.subf %40, %90 : vector<128x9xf32>
    %92 = arith.mulf %91, %91 : vector<128x9xf32>
    %cst_65 = arith.constant dense<0.000000e+00> : vector<128xf32>
    %93 = vector.multi_reduction <add>, %92, %cst_65 [1] : vector<128x9xf32> to vector<128xf32>
    %94 = vector.shape_cast %93 : vector<128xf32> to vector<128x1xf32>
    %95 = arith.addf %89, %94 : vector<128x1xf32>
    %96 = vector.broadcast %88 : vector<128x1xf32> to vector<128x9xf32>
    %97 = arith.subf %81, %96 : vector<128x9xf32>
    %98 = arith.mulf %97, %97 : vector<128x9xf32>
    %cst_66 = arith.constant dense<0.000000e+00> : vector<128xf32>
    %99 = vector.multi_reduction <add>, %98, %cst_66 [1] : vector<128x9xf32> to vector<128xf32>
    %100 = vector.shape_cast %99 : vector<128xf32> to vector<128x1xf32>
    %101 = arith.addf %95, %100 : vector<128x1xf32>
    %cst_67 = arith.constant 0.055555556 : f32
    %102 = vector.broadcast %cst_67 : f32 to vector<128x1xf32>
    %103 = arith.mulf %101, %102 : vector<128x1xf32>
    %c0_68 = arith.constant 0 : index
    %c0_69 = arith.constant 0 : index
    %104 = vector.load %arg2[%c0_68, %c0_69] : memref<128x2xf32, #tpu.memory_space<vmem>>, vector<128x1xf32>
    %cst_70 = arith.constant 1.000000e-03 : f32
    %105 = vector.broadcast %cst_70 : f32 to vector<128x1xf32>
    %106 = arith.addf %103, %105 : vector<128x1xf32>
    %107 = math.rsqrt %106 : vector<128x1xf32>
    %108 = arith.mulf %104, %107 : vector<128x1xf32>
    %c0_71 = arith.constant 0 : index
    %c1_72 = arith.constant 1 : index
    %109 = vector.load %arg2[%c0_71, %c1_72] : memref<128x2xf32, #tpu.memory_space<vmem>>, vector<128x1xf32>
    %110 = arith.mulf %88, %108 : vector<128x1xf32>
    %111 = arith.subf %109, %110 : vector<128x1xf32>
    %112 = vector.broadcast %108 : vector<128x1xf32> to vector<128x9xf32>
    %113 = arith.mulf %40, %112 : vector<128x9xf32>
    %114 = vector.broadcast %111 : vector<128x1xf32> to vector<128x9xf32>
    %115 = arith.addf %113, %114 : vector<128x9xf32>
    %cst_73 = arith.constant 0.000000e+00 : f32
    %116 = vector.broadcast %cst_73 : f32 to vector<128x9xf32>
    %117 = arith.maximumf %115, %116 : vector<128x9xf32>
    %c0_74 = arith.constant 0 : index
    %c0_75 = arith.constant 0 : index
    %c0_76 = arith.constant 0 : index
    %118 = vector.load %arg3[%c0_74, %c0_75, %c0_76] : memref<2x128x9xf32, #tpu.memory_space<vmem>>, vector<1x128x9xf32>
    %119 = vector.shape_cast %118 : vector<1x128x9xf32> to vector<128x9xf32>
    %120 = vector.shape_cast %117 : vector<128x9xf32> to vector<1x128x9xf32>
    tpu.vector_store %arg3[%c0_74, %c0_75, %c0_76], %120 {strides = array<i32>} : memref<2x128x9xf32, #tpu.memory_space<vmem>>, vector<1x128x9xf32>,
    %121 = vector.broadcast %108 : vector<128x1xf32> to vector<128x9xf32>
    %122 = arith.mulf %81, %121 : vector<128x9xf32>
    %123 = vector.broadcast %111 : vector<128x1xf32> to vector<128x9xf32>
    %124 = arith.addf %122, %123 : vector<128x9xf32>
    %cst_77 = arith.constant 0.000000e+00 : f32
    %125 = vector.broadcast %cst_77 : f32 to vector<128x9xf32>
    %126 = arith.maximumf %124, %125 : vector<128x9xf32>
    %c1_78 = arith.constant 1 : index
    %c0_79 = arith.constant 0 : index
    %c0_80 = arith.constant 0 : index
    %127 = vector.load %arg3[%c1_78, %c0_79, %c0_80] : memref<2x128x9xf32, #tpu.memory_space<vmem>>, vector<1x128x9xf32>
    %128 = vector.shape_cast %127 : vector<1x128x9xf32> to vector<128x9xf32>
    %129 = vector.shape_cast %126 : vector<128x9xf32> to vector<1x128x9xf32>
    tpu.vector_store %arg3[%c1_78, %c0_79, %c0_80], %129 {strides = array<i32>} : memref<2x128x9xf32, #tpu.memory_space<vmem>>, vector<1x128x9xf32>,
    return
  }
}

</mosaic_0001>

<bundles_post_ra>
// kernel: block_fcn_conv.1
= control target key start
LH: loop header
LB: loop body
LE: loop exit
PB: predicated region body
PF: predicated region fallthrough
CT: control target
= control target key end

     0   :  { %vm100_vm0 = vcmask 1043456   ;;  %vm51_vm1 = vcmask 31744   ;;  %s5037_s14 = smov 127   ;;  %s5038_s15 = smov 125   ;;  %vm3112_vm2 = vcmask 72704   ;;  %s7520_s0 = inlined_call_operand.vmem [shape: f32[2,4,16], index: 0, kind: input, shape index: {}]   ;;  %s7521_s1 = inlined_call_operand.vmem [shape: f32[8,128,4], index: 1, kind: input, shape index: {}]   ;;  %s7522_s2 = inlined_call_operand.vmem [shape: f32[128,2], index: 2, kind: input, shape index: {}]   ;;  %s7523_s3 = inlined_call_operand.vmem [shape: f32[2,128,9], index: 3, kind: output, shape index: {}]  }
   0x1   :  { %v14_v0 = vld [vmem:[%s7520_s0] sm:$0xf]  ;;  %v5088_v3 = vld [vmem:[%s7521_s1 + $0x8] sm:$0xff]  ;;  %v5096_v4 = vld [vmem:[%s7521_s1 + $0x10] sm:$0xff]  ;;  %s5039_s24 = smov 126   ;;  %s5040_s25 = smov 124  }
   0x2   :  { %49 = vrot.lane.b32.xlu0 %v14_v0, %s5037_s14  ;;  %690 = vrot.lane.b32.xlu1 %v14_v0, %s5038_s15  ;;  %v5075_v1 = vld [vmem:[%s7521_s1 + $0x80] sm:$0xff]  ;;  %v5104_v5 = vld [vmem:[%s7521_s1 + $0x18] sm:$0xff]  ;;  %s5041_s30 = smov 123   ;;  %s5042_s4 = smov 122  }
   0x3   :  { %4577 = vmatprep.mubr.msk.f32.mxu0 %vm51_vm1, %v5075_v1  ;;  %4601 = vmatprep.subr.msk.mxu1 %vm100_vm0, %v14_v0  ;;  %v5083_v2 = vld [vmem:[%s7521_s1] sm:$0xff]  ;;  %v5118_v7 = vld [vmem:[%s7521_s1 + $0x28] sm:$0xff]  ;;  %v5130_v9 = vld [vmem:[%s7521_s1 + $0x30] sm:$0xff]  ;;  %s5043_s11 = smov 121  }
   0x4   :  { %4602 = vmatpush3.msk.msra.mxu1 %vm100_vm0, %v14_v0  ;;  %4603 = vmatprep.mubr.msk.f32.mxu1 %vm51_vm1, %v5083_v2  ;;  %v5111_v6 = vld [vmem:[%s7521_s1 + $0x20] sm:$0xff]  ;;  %v5139_v10 = vld [vmem:[%s7521_s1 + $0x38] sm:$0xff]  ;;  %v5156_v12 = vld [vmem:[%s7521_s1 + $0x48] sm:$0xff] }
   0x5   :  { %4604 = vmatmul.mubr.msk.f32.vlgmr.msra.gmra.mxu1 %vm51_vm1, %v5088_v3  ;;  %v5123_v8 = vld [vmem:[%s7520_s0 + $0x4] sm:$0xf]  ;;  %v5163_v13 = vld [vmem:[%s7521_s1 + $0x50] sm:$0xff]  ;;  %v5172_v14 = vld [vmem:[%s7521_s1 + $0x58] sm:$0xff] }
   0x6   :  { %460 = vrot.lane.b32.xlu0 %v14_v0, %s5039_s24  ;;  %920 = vrot.lane.b32.xlu1 %v14_v0, %s5040_s25  ;;  %v5146_v11 = vld [vmem:[%s7521_s1 + $0x40] sm:$0xff]  ;;  %v5189_v16 = vld [vmem:[%s7521_s1 + $0x68] sm:$0xff] }
   0x7   :  { %4606 = vmatprep.mubr.msk.f32.mxu1 %vm51_vm1, %v5096_v4  ;;  %v5179_v15 = vld [vmem:[%s7521_s1 + $0x60] sm:$0xff]  ;;  %v5195_v17 = vld [vmem:[%s7521_s1 + $0x70] sm:$0xff]  ;;  %v5205_v18 = vld [vmem:[%s7521_s1 + $0x78] sm:$0xff] }
   0x8   :  { %v5210_v19 = vld [vmem:[%s7521_s1 + $0x180] sm:$0xff]  ;;  %v5219_v21 = vld [vmem:[%s7521_s1 + $0x88] sm:$0xff]  ;;  %v5230_v24 = vld [vmem:[%s7521_s1 + $0x90] sm:$0xff] }
   0x9   :  { %4607 = vmatmul.mubr.msk.f32.gmra.mxu1 %vm51_vm1, %v5104_v5  ;;  %v5224_v23 = vld [vmem:[%s7521_s1 + $0x188] sm:$0xff]  ;;  %v5236_v25 = vld [vmem:[%s7521_s1 + $0x190] sm:$0xff]  ;;  %v5249_v27 = vld [vmem:[%s7521_s1 + $0x98] sm:$0xff] }
   0xa   :  { %1150 = vrot.lane.b32.xlu0 %v14_v0, %s5041_s30  ;;  %1380 = vrot.lane.b32.xlu1 %v14_v0, %s5042_s4  ;;  %v5259_v29 = vld [vmem:[%s7521_s1 + $0xa0] sm:$0xff]  ;;  %v5264_v30 = vld [vmem:[%s7521_s1 + $0x198] sm:$0xff] }
   0xb   :  { %4609 = vmatprep.mubr.msk.f32.mxu1 %vm51_vm1, %v5111_v6  ;;  %v5270_v31 = vld [vmem:[%s7521_s1 + $0x1a0] sm:$0xff]  ;;  %v5281_v32 = vld [vmem:[%s7521_s1 + $0xa8] sm:$0xff]  ;;  %v5288_v34 = vld [vmem:[%s7521_s1 + $0xb0] sm:$0xff] }
   0xc   :  { %v5296_v35 = vld [vmem:[%s7521_s1 + $0x1a8] sm:$0xff]  ;;  %v5302_v36 = vld [vmem:[%s7521_s1 + $0x1b0] sm:$0xff]  ;;  %v5311_v37 = vld [vmem:[%s7521_s1 + $0xb8] sm:$0xff] }
   0xd   :  { %4610 = vmatmul.mubr.msk.f32.gmra.mxu1 %vm51_vm1, %v5118_v7  ;;  %v5318_v39 = vld [vmem:[%s7521_s1 + $0xc0] sm:$0xff]  ;;  %v5325_v40 = vld [vmem:[%s7521_s1 + $0x1b8] sm:$0xff]  ;;  %v5340_v42 = vld [vmem:[%s7521_s1 + $0xc8] sm:$0xff] }
   0xe   :  { %1610 = vrot.lane.b32.xlu0 %v14_v0, %s5043_s11  ;;  %1826 = vrot.lane.b32.xlu1 %v5123_v8, %s5037_s14  ;;  %v5331_v41 = vld [vmem:[%s7521_s1 + $0x1c0] sm:$0xff]  ;;  %v5347_v43 = vld [vmem:[%s7521_s1 + $0xd0] sm:$0xff] }
   0xf   :  { %4612 = vmatprep.mubr.msk.f32.mxu1 %vm51_vm1, %v5130_v9  ;;  %v5354_v44 = vld [vmem:[%s7521_s1 + $0x1c8] sm:$0xff]  ;;  %v5359_v45 = vld [vmem:[%s7521_s1 + $0x1d0] sm:$0xff]  ;;  %v5368_v46 = vld [vmem:[%s7521_s1 + $0xd8] sm:$0xff] }
  0x10   :  { %v5375_v47 = vld [vmem:[%s7521_s1 + $0xe0] sm:$0xff]  ;;  %v5382_v48 = vld [vmem:[%s7521_s1 + $0x1d8] sm:$0xff]  ;;  %v5396_v50 = vld [vmem:[%s7521_s1 + $0xe8] sm:$0xff] }
  0x11   :  { %4613 = vmatmul.mubr.msk.f32.gmra.mxu1 %vm51_vm1, %v5139_v10  ;;  %v5387_v49 = vld [vmem:[%s7521_s1 + $0x1e0] sm:$0xff]  ;;  %v5403_v51 = vld [vmem:[%s7521_s1 + $0xf0] sm:$0xff]  ;;  %v5410_v52 = vld [vmem:[%s7521_s1 + $0x1e8] sm:$0xff] }
  0x12   :  { %2122 = vrot.lane.b32.xlu0 %v5123_v8, %s5039_s24  ;;  %2287 = vrot.lane.b32.xlu1 %v5123_v8, %s5038_s15  ;;  %v5415_v53 = vld [vmem:[%s7521_s1 + $0x1f0] sm:$0xff]  ;;  %v5424_v54 = vld [vmem:[%s7521_s1 + $0xf8] sm:$0xff] }
  0x13   :  { %4615 = vmatprep.mubr.msk.f32.mxu1 %vm51_vm1, %v5146_v11  ;;  %v5431_v55 = vld [vmem:[%s7521_s1 + $0x100] sm:$0xff]  ;;  %v5438_v56 = vld [vmem:[%s7521_s1 + $0x1f8] sm:$0xff]  ;;  %v5452_v58 = vld [vmem:[%s7521_s1 + $0x108] sm:$0xff] }
  0x14   :  { %v5443_v57 = vld [vmem:[%s7521_s1 + $0x280] sm:$0xff]  ;;  %v5459_v59 = vld [vmem:[%s7521_s1 + $0x110] sm:$0xff]  ;;  %v5468_v61 = vld [vmem:[%s7521_s1 + $0x288] sm:$0xff] }
  0x15   :  { %4616 = vmatmul.mubr.msk.f32.gmra.mxu1 %vm51_vm1, %v5156_v12  ;;  %v5475_v62 = vld [vmem:[%s7521_s1 + $0x290] sm:$0xff]  ;;  %v5484_v63 = vld [vmem:[%s7521_s1 + $0x118] sm:$0xff]  ;;  %v5489_v0 = vld [vmem:[%s7521_s1 + $0x120] sm:$0xff] }
  0x16   :  { %4618 = vmatprep.mubr.msk.f32.mxu1 %vm51_vm1, %v5163_v13  ;;  %2452 = vrot.lane.b32.xlu0 %v5123_v8, %s5040_s25  ;;  %7617 = vst [vmem:[#allocation2_spill] sm:$0xff] %v5489_v0 }
  0x17   :  { %2617 = vrot.lane.b32.xlu1 %v5123_v8, %s5041_s30  ;;  %s5045_s30 = smov 1  }
  0x19   :  { %4619 = vmatmul.mubr.msk.f32.gmra.mxu1 %vm51_vm1, %v5172_v14 }
  0x1a   :  { %4621 = vmatprep.mubr.msk.f32.mxu1 %vm51_vm1, %v5179_v15  ;;  %2782 = vrot.lane.b32.xlu0 %v5123_v8, %s5042_s4 }
  0x1b   :  { %2947 = vrot.lane.b32.xlu1 %v5123_v8, %s5043_s11 }
  0x1d   :  { %4622 = vmatmul.mubr.msk.f32.gmra.mxu1 %vm51_vm1, %v5189_v16 }
  0x1e   :  { %4624 = vmatprep.mubr.msk.f32.mxu1 %vm51_vm1, %v5195_v17 }
  0x21   :  { %4625 = vmatmul.mubr.msk.f32.gmra.mxu1 %vm51_vm1, %v5205_v18 }
  0x22   :  { %4655 = vmatprep.mubr.msk.f32.mxu1 %vm51_vm1, %v5210_v19 }
  0x74   :  { %v50_v20 = vpop.permute.xlu0 %49  ;;  %v691_v22 = vpop.permute.xlu1 %690 }
  0x75   :  { %4575 = vmatprep.subr.msk.mxu0 %vm100_vm0, %v50_v20  ;;  %4653 = vmatprep.subr.msk.mxu1 %vm100_vm0, %v691_v22 }
  0x76   :  { %4576 = vmatpush3.msk.msra.mxu0 %vm100_vm0, %v50_v20  ;;  %4654 = vmatpush3.msk.msra.mxu1 %vm100_vm0, %v691_v22  ;;  %v5501_v20 = vld [vmem:[%s7521_s1 + $0x298] sm:$0xff]  ;;  %v5508_v22 = vld [vmem:[%s7521_s1 + $0x2a0] sm:$0xff] }
  0x77   :  { %4578 = vmatmul.mubr.msk.f32.vlgmr.msra.gmra.mxu0 %vm51_vm1, %v5219_v21  ;;  %4656 = vmatmul.mubr.msk.f32.vlgmr.msra.gmra.mxu1 %vm51_vm1, %v5224_v23  ;;  %7618 = vst [vmem:[#allocation3_spill] sm:$0xff] %v5501_v20  ;;  %7619 = vst [vmem:[#allocation4_spill] sm:$0xff] %v5508_v22 }
  0x78   :  { %v461_v26 = vpop.permute.xlu0 %460  ;;  %4580 = vmatprep.mubr.msk.f32.mxu0 %vm51_vm1, %v5230_v24  ;;  %v5251_v28 = vpop.permute.xlu1 %920  ;;  %4658 = vmatprep.mubr.msk.f32.mxu1 %vm51_vm1, %v5236_v25 }
  0x79   :  { %4627 = vmatprep.subr.msk.mxu0 %vm100_vm0, %v461_v26 }
  0x7a   :  { %4628 = vmatpush3.msk.msra.mxu0 %vm100_vm0, %v461_v26  ;;  %v5517_v26 = vld [vmem:[%s7521_s1 + $0x128] sm:$0xff] }
  0x7b   :  { %4581 = vmatmul.mubr.msk.f32.gmra.mxu0 %vm51_vm1, %v5249_v27  ;;  %4679 = vmatprep.subr.msk.mxu0 %vm100_vm0, %v5251_v28  ;;  %7620 = vst [vmem:[#allocation5_spill] sm:$0xff] %v5517_v26 }
  0x7c   :  { %4583 = vmatprep.mubr.msk.f32.mxu0 %vm51_vm1, %v5259_v29  ;;  %v1151_v33 = vpop.permute.xlu0 %1150  ;;  %4659 = vmatmul.mubr.msk.f32.gmra.mxu1 %vm51_vm1, %v5264_v30  ;;  %v5463_v60 = vpop.permute.xlu1 %1380 }
  0x7d   :  { %4705 = vmatprep.subr.msk.mxu1 %vm100_vm0, %v1151_v33  ;;  %4661 = vmatprep.mubr.msk.f32.mxu1 %vm51_vm1, %v5270_v31 }
  0x7e   :  { %4706 = vmatpush3.msk.msra.mxu1 %vm100_vm0, %v1151_v33  ;;  %v5531_v33 = vld [vmem:[%s7521_s1 + $0x2a8] sm:$0xff] }
  0x7f   :  { %4584 = vmatmul.mubr.msk.f32.gmra.mxu0 %vm51_vm1, %v5281_v32  ;;  %7622 = vst [vmem:[#allocation7_spill] sm:$0xff] %v5531_v33 }
  0x80   :  { %4586 = vmatprep.mubr.msk.f32.mxu0 %vm51_vm1, %v5288_v34  ;;  %4662 = vmatmul.mubr.msk.f32.gmra.mxu1 %vm51_vm1, %v5296_v35  ;;  %v1611_v38 = vpop.permute.xlu0 %1610 }
  0x81   :  { %4664 = vmatprep.mubr.msk.f32.mxu1 %vm51_vm1, %v5302_v36  ;;  %4757 = vmatprep.subr.msk.mxu1 %vm100_vm0, %v1611_v38 }
  0x83   :  { %4587 = vmatmul.mubr.msk.f32.gmra.mxu0 %vm51_vm1, %v5311_v37 }
  0x84   :  { %4589 = vmatprep.mubr.msk.f32.mxu0 %vm51_vm1, %v5318_v39  ;;  %4665 = vmatmul.mubr.msk.f32.gmra.mxu1 %vm51_vm1, %v5325_v40 }
  0x85   :  { %4667 = vmatprep.mubr.msk.f32.mxu1 %vm51_vm1, %v5331_v41 }
  0x87   :  { %4590 = vmatmul.mubr.msk.f32.gmra.mxu0 %vm51_vm1, %v5340_v42 }
  0x88   :  { %4592 = vmatprep.mubr.msk.f32.mxu0 %vm51_vm1, %v5347_v43  ;;  %4668 = vmatmul.mubr.msk.f32.gmra.mxu1 %vm51_vm1, %v5354_v44 }
  0x89   :  { %4670 = vmatprep.mubr.msk.f32.mxu1 %vm51_vm1, %v5359_v45 }
  0x8b   :  { %4593 = vmatmul.mubr.msk.f32.gmra.mxu0 %vm51_vm1, %v5368_v46 }
  0x8c   :  { %4595 = vmatprep.mubr.msk.f32.mxu0 %vm51_vm1, %v5375_v47  ;;  %4671 = vmatmul.mubr.msk.f32.gmra.mxu1 %vm51_vm1, %v5382_v48 }
  0x8d   :  { %4673 = vmatprep.mubr.msk.f32.mxu1 %vm51_vm1, %v5387_v49 }
  0x8f   :  { %4596 = vmatmul.mubr.msk.f32.gmra.mxu0 %vm51_vm1, %v5396_v50 }
  0x90   :  { %4598 = vmatprep.mubr.msk.f32.mxu0 %vm51_vm1, %v5403_v51  ;;  %4674 = vmatmul.mubr.msk.f32.gmra.mxu1 %vm51_vm1, %v5410_v52 }
  0x91   :  { %4676 = vmatprep.mubr.msk.f32.mxu1 %vm51_vm1, %v5415_v53 }
  0x93   :  { %4599 = vmatmul.mubr.msk.f32.gmra.mxu0 %vm51_vm1, %v5424_v54 }
  0x94   :  { %4629 = vmatprep.mubr.msk.f32.mxu0 %vm51_vm1, %v5431_v55  ;;  %4677 = vmatmul.mubr.msk.f32.gmra.mxu1 %vm51_vm1, %v5438_v56 }
  0x95   :  { %4707 = vmatprep.mubr.msk.f32.mxu1 %vm51_vm1, %v5443_v57 }
  0x97   :  { %4630 = vmatmul.mubr.msk.f32.vlgmr.msra.gmra.mxu0 %vm51_vm1, %v5452_v58 }
  0x98   :  { %4680 = vmatpush3.msk.msra.mxu0 %vm100_vm0, %v5251_v28  ;;  %4632 = vmatprep.mubr.msk.f32.mxu0 %vm51_vm1, %v5459_v59  ;;  %v5522_v28 = vld [vmem:[%s7521_s1 + $0x130] sm:$0xff] }
  0x99   :  { %4708 = vmatmul.mubr.msk.f32.vlgmr.msra.gmra.mxu1 %vm51_vm1, %v5468_v61  ;;  %4731 = vmatprep.subr.msk.mxu0 %vm100_vm0, %v5463_v60  ;;  %7621 = vst [vmem:[#allocation6_spill] sm:$0xff] %v5522_v28 }
  0x9a   :  { %4710 = vmatprep.mubr.msk.f32.mxu1 %vm51_vm1, %v5475_v62  ;;  %4758 = vmatpush3.msk.msra.mxu1 %vm100_vm0, %v1611_v38  ;;  %v5538_v38 = vld [vmem:[%s7521_s1 + $0x2b0] sm:$0xff] }
  0x9b   :  { %4633 = vmatmul.mubr.msk.f32.gmra.mxu0 %vm51_vm1, %v5484_v63  ;;  %4809 = vmatprep.subr.msk.mxu1 %vm100_vm0, %v5123_v8  ;;  %7623 = vst [vmem:[#allocation8_spill] sm:$0xff] %v5538_v38 }
  0x9c   :  { %4635 = vmatprep.mubr.msk.f32.mxu0 %vm51_vm1, %v5489_v0  ;;  %v5692_v0 = vld [vmem:[%s7521_s1 + $0x210] sm:$0xff] }
  0x9d   :  { %4711 = vmatmul.mubr.msk.f32.gmra.mxu1 %vm51_vm1, %v5501_v20  ;;  %v5550_v20 = vld [vmem:[%s7521_s1 + $0x140] sm:$0xff] }
  0x9e   :  { %4713 = vmatprep.mubr.msk.f32.mxu1 %vm51_vm1, %v5508_v22  ;;  %v5545_v22 = vld [vmem:[%s7521_s1 + $0x138] sm:$0xff]  ;;  %7625 = vst [vmem:[#allocation10_spill] sm:$0xff] %v5550_v20 }
  0x9f   :  { %4636 = vmatmul.mubr.msk.f32.gmra.mxu0 %vm51_vm1, %v5517_v26  ;;  %7624 = vst [vmem:[#allocation9_spill] sm:$0xff] %v5545_v22  ;;  %v5566_v26 = vld [vmem:[%s7521_s1 + $0x2c0] sm:$0xff] }
  0xa0   :  { %4638 = vmatprep.mubr.msk.f32.mxu0 %vm51_vm1, %v5522_v28  ;;  %v5559_v28 = vld [vmem:[%s7521_s1 + $0x2b8] sm:$0xff]  ;;  %7627 = vst [vmem:[#allocation12_spill] sm:$0xff] %v5566_v26 }
  0xa1   :  { %4714 = vmatmul.mubr.msk.f32.gmra.mxu1 %vm51_vm1, %v5531_v33  ;;  %7626 = vst [vmem:[#allocation11_spill] sm:$0xff] %v5559_v28  ;;  %v5578_v33 = vld [vmem:[%s7521_s1 + $0x150] sm:$0xff] }
  0xa2   :  { %4716 = vmatprep.mubr.msk.f32.mxu1 %vm51_vm1, %v5538_v38  ;;  %v5573_v38 = vld [vmem:[%s7521_s1 + $0x148] sm:$0xff]  ;;  %7629 = vst [vmem:[#allocation14_spill] sm:$0xff] %v5578_v33 }
  0xa3   :  { %4639 = vmatmul.mubr.msk.f32.gmra.mxu0 %vm51_vm1, %v5545_v22  ;;  %7628 = vst [vmem:[#allocation13_spill] sm:$0xff] %v5573_v38  ;;  %v5594_v22 = vld [vmem:[%s7521_s1 + $0x2d0] sm:$0xff] }
  0xa4   :  { %4641 = vmatprep.mubr.msk.f32.mxu0 %vm51_vm1, %v5550_v20  ;;  %v5587_v20 = vld [vmem:[%s7521_s1 + $0x2c8] sm:$0xff]  ;;  %7631 = vst [vmem:[#allocation16_spill] sm:$0xff] %v5594_v22 }
  0xa5   :  { %4717 = vmatmul.mubr.msk.f32.gmra.mxu1 %vm51_vm1, %v5559_v28  ;;  %7630 = vst [vmem:[#allocation15_spill] sm:$0xff] %v5587_v20  ;;  %v5606_v28 = vld [vmem:[%s7521_s1 + $0x160] sm:$0xff] }
  0xa6   :  { %4719 = vmatprep.mubr.msk.f32.mxu1 %vm51_vm1, %v5566_v26  ;;  %v5601_v26 = vld [vmem:[%s7521_s1 + $0x158] sm:$0xff]  ;;  %7633 = vst [vmem:[#allocation18_spill] sm:$0xff] %v5606_v28 }
  0xa7   :  { %4642 = vmatmul.mubr.msk.f32.gmra.mxu0 %vm51_vm1, %v5573_v38  ;;  %7632 = vst [vmem:[#allocation17_spill] sm:$0xff] %v5601_v26  ;;  %v5622_v38 = vld [vmem:[%s7521_s1 + $0x2e0] sm:$0xff] }
  0xa8   :  { %4644 = vmatprep.mubr.msk.f32.mxu0 %vm51_vm1, %v5578_v33  ;;  %v5615_v33 = vld [vmem:[%s7521_s1 + $0x2d8] sm:$0xff]  ;;  %7635 = vst [vmem:[#allocation20_spill] sm:$0xff] %v5622_v38 }
  0xa9   :  { %4720 = vmatmul.mubr.msk.f32.gmra.mxu1 %vm51_vm1, %v5587_v20  ;;  %7634 = vst [vmem:[#allocation19_spill] sm:$0xff] %v5615_v33  ;;  %v5634_v20 = vld [vmem:[%s7521_s1 + $0x170] sm:$0xff] }
  0xaa   :  { %4722 = vmatprep.mubr.msk.f32.mxu1 %vm51_vm1, %v5594_v22  ;;  %v5629_v22 = vld [vmem:[%s7521_s1 + $0x168] sm:$0xff]  ;;  %7637 = vst [vmem:[#allocation22_spill] sm:$0xff] %v5634_v20 }
  0xab   :  { %4645 = vmatmul.mubr.msk.f32.gmra.mxu0 %vm51_vm1, %v5601_v26  ;;  %7636 = vst [vmem:[#allocation21_spill] sm:$0xff] %v5629_v22  ;;  %v5650_v26 = vld [vmem:[%s7521_s1 + $0x2f0] sm:$0xff] }
  0xac   :  { %4647 = vmatprep.mubr.msk.f32.mxu0 %vm51_vm1, %v5606_v28  ;;  %v5643_v28 = vld [vmem:[%s7521_s1 + $0x2e8] sm:$0xff]  ;;  %7639 = vst [vmem:[#allocation24_spill] sm:$0xff] %v5650_v26 }
  0xad   :  { %4723 = vmatmul.mubr.msk.f32.gmra.mxu1 %vm51_vm1, %v5615_v33  ;;  %7638 = vst [vmem:[#allocation23_spill] sm:$0xff] %v5643_v28  ;;  %v5662_v33 = vld [vmem:[%s7521_s1 + $0x200] sm:$0xff] }
  0xae   :  { %4725 = vmatprep.mubr.msk.f32.mxu1 %vm51_vm1, %v5622_v38  ;;  %v5657_v38 = vld [vmem:[%s7521_s1 + $0x178] sm:$0xff]  ;;  %7641 = vst [vmem:[#allocation26_spill] sm:$0xff] %v5662_v33 }
  0xaf   :  { %4648 = vmatmul.mubr.msk.f32.gmra.mxu0 %vm51_vm1, %v5629_v22  ;;  %7640 = vst [vmem:[#allocation25_spill] sm:$0xff] %v5657_v38  ;;  %v5678_v22 = vld [vmem:[%s7521_s1 + $0x380] sm:$0xff] }
  0xb0   :  { %4650 = vmatprep.mubr.msk.f32.mxu0 %vm51_vm1, %v5634_v20  ;;  %v5671_v20 = vld [vmem:[%s7521_s1 + $0x2f8] sm:$0xff]  ;;  %7643 = vst [vmem:[#allocation28_spill] sm:$0xff] %v5678_v22 }
  0xb1   :  { %4726 = vmatmul.mubr.msk.f32.gmra.mxu1 %vm51_vm1, %v5643_v28  ;;  %7642 = vst [vmem:[#allocation27_spill] sm:$0xff] %v5671_v20  ;;  %v5687_v28 = vpop.permute.xlu1 %1826 }
  0xb2   :  { %4728 = vmatprep.mubr.msk.f32.mxu1 %vm51_vm1, %v5650_v26  ;;  %v5685_v26 = vld [vmem:[%s7521_s1 + $0x208] sm:$0xff] }
  0xb3   :  { %4651 = vmatmul.mubr.msk.f32.gmra.mxu0 %vm51_vm1, %v5657_v38  ;;  %7644 = vst [vmem:[#allocation29_spill] sm:$0xff] %v5685_v26  ;;  %v5708_v38 = vld [vmem:[%s7521_s1 + $0x390] sm:$0xff] }
  0xb4   :  { %4681 = vmatprep.mubr.msk.f32.mxu0 %vm51_vm1, %v5662_v33  ;;  %v5701_v33 = vld [vmem:[%s7521_s1 + $0x388] sm:$0xff]  ;;  %7646 = vst [vmem:[#allocation31_spill] sm:$0xff] %v5708_v38 }
  0xb5   :  { %4729 = vmatmul.mubr.msk.f32.gmra.mxu1 %vm51_vm1, %v5671_v20  ;;  %7645 = vst [vmem:[#allocation30_spill] sm:$0xff] %v5701_v33  ;;  %v5719_v20 = vpop.permute.xlu1 %2287 }
  0xb6   :  { %4759 = vmatprep.mubr.msk.f32.mxu1 %vm51_vm1, %v5678_v22  ;;  %v5717_v22 = vld [vmem:[%s7521_s1 + $0x218] sm:$0xff] }
  0xb7   :  { %4682 = vmatmul.mubr.msk.f32.vlgmr.msra.gmra.mxu0 %vm51_vm1, %v5685_v26  ;;  %7647 = vst [vmem:[#allocation32_spill] sm:$0xff] %v5717_v22  ;;  %v5724_v26 = vld [vmem:[%s7521_s1 + $0x220] sm:$0xff] }
  0xb8   :  { %4732 = vmatpush3.msk.msra.mxu0 %vm100_vm0, %v5463_v60  ;;  %4684 = vmatprep.mubr.msk.f32.mxu0 %vm51_vm1, %v5692_v0  ;;  %7648 = vst [vmem:[#allocation33_spill] sm:$0xff] %v5724_v26  ;;  %v5735_v60 = vld [vmem:[%s7521_s1 + $0x398] sm:$0xff] }
  0xb9   :  { %4760 = vmatmul.mubr.msk.f32.vlgmr.msra.gmra.mxu1 %vm51_vm1, %v5701_v33  ;;  %4783 = vmatprep.subr.msk.mxu0 %vm100_vm0, %v5687_v28  ;;  %7649 = vst [vmem:[#allocation34_spill] sm:$0xff] %v5735_v60  ;;  %v5744_v33 = vld [vmem:[%s7521_s1 + $0x3a0] sm:$0xff] }
  0xba   :  { %4762 = vmatprep.mubr.msk.f32.mxu1 %vm51_vm1, %v5708_v38  ;;  %4810 = vmatpush3.msk.msra.mxu1 %vm100_vm0, %v5123_v8  ;;  %7650 = vst [vmem:[#allocation35_spill] sm:$0xff] %v5744_v33  ;;  %v5753_v38 = vld [vmem:[%s7521_s1 + $0x228] sm:$0xff]  ;;  %v5758_v8 = vld [vmem:[%s7521_s1 + $0x230] sm:$0xff] }
  0xbb   :  { %4685 = vmatmul.mubr.msk.f32.gmra.mxu0 %vm51_vm1, %v5717_v22  ;;  %4861 = vmatprep.subr.msk.mxu1 %vm100_vm0, %v5719_v20  ;;  %7651 = vst [vmem:[#allocation36_spill] sm:$0xff] %v5753_v38  ;;  %7652 = vst [vmem:[#allocation37_spill] sm:$0xff] %v5758_v8  ;;  %v5774_v22 = vld [vmem:[%s7521_s1 + $0x3b0] sm:$0xff] }
  0xbc   :  { %4687 = vmatprep.mubr.msk.f32.mxu0 %vm51_vm1, %v5724_v26  ;;  %v5767_v26 = vld [vmem:[%s7521_s1 + $0x3a8] sm:$0xff]  ;;  %7654 = vst [vmem:[#allocation39_spill] sm:$0xff] %v5774_v22 }
  0xbd   :  { %4763 = vmatmul.mubr.msk.f32.gmra.mxu1 %vm51_vm1, %v5735_v60  ;;  %7653 = vst [vmem:[#allocation38_spill] sm:$0xff] %v5767_v26  ;;  %v5786_v60 = vld [vmem:[%s7521_s1 + $0x240] sm:$0xff] }
  0xbe   :  { %4765 = vmatprep.mubr.msk.f32.mxu1 %vm51_vm1, %v5744_v33  ;;  %v5781_v33 = vld [vmem:[%s7521_s1 + $0x238] sm:$0xff]  ;;  %7656 = vst [vmem:[#allocation41_spill] sm:$0xff] %v5786_v60 }
  0xbf   :  { %4688 = vmatmul.mubr.msk.f32.gmra.mxu0 %vm51_vm1, %v5753_v38  ;;  %7655 = vst [vmem:[#allocation40_spill] sm:$0xff] %v5781_v33  ;;  %v5802_v38 = vld [vmem:[%s7521_s1 + $0x3c0] sm:$0xff] }
  0xc0   :  { %4690 = vmatprep.mubr.msk.f32.mxu0 %vm51_vm1, %v5758_v8  ;;  %v5795_v8 = vld [vmem:[%s7521_s1 + $0x3b8] sm:$0xff]  ;;  %7658 = vst [vmem:[#allocation43_spill] sm:$0xff] %v5802_v38 }
  0xc1   :  { %4766 = vmatmul.mubr.msk.f32.gmra.mxu1 %vm51_vm1, %v5767_v26  ;;  %7657 = vst [vmem:[#allocation42_spill] sm:$0xff] %v5795_v8  ;;  %v5814_v26 = vld [vmem:[%s7521_s1 + $0x250] sm:$0xff] }
  0xc2   :  { %4768 = vmatprep.mubr.msk.f32.mxu1 %vm51_vm1, %v5774_v22  ;;  %v5809_v22 = vld [vmem:[%s7521_s1 + $0x248] sm:$0xff]  ;;  %7660 = vst [vmem:[#allocation45_spill] sm:$0xff] %v5814_v26 }
  0xc3   :  { %4691 = vmatmul.mubr.msk.f32.gmra.mxu0 %vm51_vm1, %v5781_v33  ;;  %7659 = vst [vmem:[#allocation44_spill] sm:$0xff] %v5809_v22  ;;  %v5830_v33 = vld [vmem:[%s7521_s1 + $0x3d0] sm:$0xff] }
  0xc4   :  { %4693 = vmatprep.mubr.msk.f32.mxu0 %vm51_vm1, %v5786_v60  ;;  %v5823_v60 = vld [vmem:[%s7521_s1 + $0x3c8] sm:$0xff]  ;;  %7662 = vst [vmem:[#allocation47_spill] sm:$0xff] %v5830_v33 }
  0xc5   :  { %4769 = vmatmul.mubr.msk.f32.gmra.mxu1 %vm51_vm1, %v5795_v8  ;;  %7661 = vst [vmem:[#allocation46_spill] sm:$0xff] %v5823_v60  ;;  %v5842_v8 = vld [vmem:[%s7521_s1 + $0x260] sm:$0xff] }
  0xc6   :  { %4771 = vmatprep.mubr.msk.f32.mxu1 %vm51_vm1, %v5802_v38  ;;  %v5837_v38 = vld [vmem:[%s7521_s1 + $0x258] sm:$0xff]  ;;  %7664 = vst [vmem:[#allocation49_spill] sm:$0xff] %v5842_v8 }
  0xc7   :  { %4694 = vmatmul.mubr.msk.f32.gmra.mxu0 %vm51_vm1, %v5809_v22  ;;  %7663 = vst [vmem:[#allocation48_spill] sm:$0xff] %v5837_v38  ;;  %v5858_v22 = vld [vmem:[%s7521_s1 + $0x3e0] sm:$0xff] }
  0xc8   :  { %4696 = vmatprep.mubr.msk.f32.mxu0 %vm51_vm1, %v5814_v26  ;;  %v5851_v26 = vld [vmem:[%s7521_s1 + $0x3d8] sm:$0xff]  ;;  %7666 = vst [vmem:[#allocation51_spill] sm:$0xff] %v5858_v22 }
  0xc9   :  { %4772 = vmatmul.mubr.msk.f32.gmra.mxu1 %vm51_vm1, %v5823_v60  ;;  %7665 = vst [vmem:[#allocation50_spill] sm:$0xff] %v5851_v26  ;;  %v5870_v60 = vld [vmem:[%s7521_s1 + $0x270] sm:$0xff] }
  0xca   :  { %4774 = vmatprep.mubr.msk.f32.mxu1 %vm51_vm1, %v5830_v33  ;;  %v5865_v33 = vld [vmem:[%s7521_s1 + $0x268] sm:$0xff]  ;;  %7668 = vst [vmem:[#allocation53_spill] sm:$0xff] %v5870_v60 }
  0xcb   :  { %4697 = vmatmul.mubr.msk.f32.gmra.mxu0 %vm51_vm1, %v5837_v38  ;;  %7667 = vst [vmem:[#allocation52_spill] sm:$0xff] %v5865_v33  ;;  %v5886_v38 = vld [vmem:[%s7521_s1 + $0x3f0] sm:$0xff] }
  0xcc   :  { %4699 = vmatprep.mubr.msk.f32.mxu0 %vm51_vm1, %v5842_v8  ;;  %v5879_v8 = vld [vmem:[%s7521_s1 + $0x3e8] sm:$0xff]  ;;  %7670 = vst [vmem:[#allocation55_spill] sm:$0xff] %v5886_v38 }
  0xcd   :  { %4775 = vmatmul.mubr.msk.f32.gmra.mxu1 %vm51_vm1, %v5851_v26  ;;  %7669 = vst [vmem:[#allocation54_spill] sm:$0xff] %v5879_v8  ;;  %v5898_v26 = vld [vmem:[%s7521_s1 + $0x300] sm:$0xff] }
  0xce   :  { %4777 = vmatprep.mubr.msk.f32.mxu1 %vm51_vm1, %v5858_v22  ;;  %v5893_v22 = vld [vmem:[%s7521_s1 + $0x278] sm:$0xff]  ;;  %7672 = vst [vmem:[#allocation57_spill] sm:$0xff] %v5898_v26 }
  0xcf   :  { %4700 = vmatmul.mubr.msk.f32.gmra.mxu0 %vm51_vm1, %v5865_v33  ;;  %7671 = vst [vmem:[#allocation56_spill] sm:$0xff] %v5893_v22  ;;  %v5916_v33 = vld [vmem:[%s7521_s1 + $0x308] sm:$0xff] }
  0xd0   :  { %4702 = vmatprep.mubr.msk.f32.mxu0 %vm51_vm1, %v5870_v60  ;;  %v5907_v60 = vld [vmem:[%s7521_s1 + $0x3f8] sm:$0xff] }
  0xd1   :  { %4778 = vmatmul.mubr.msk.f32.gmra.mxu1 %vm51_vm1, %v5879_v8  ;;  %7673 = vst [vmem:[#allocation58_spill] sm:$0xff] %v5907_v60  ;;  %v2123_v8 = vpop.permute.xlu0 %2122 }
  0xd2   :  { %4780 = vmatprep.mubr.msk.f32.mxu1 %vm51_vm1, %v5886_v38  ;;  %v5921_v38 = vld [vmem:[%s7521_s1 + $0x310] sm:$0xff] }
  0xd3   :  { %4703 = vmatmul.mubr.msk.f32.gmra.mxu0 %vm51_vm1, %v5893_v22  ;;  %v2618_v22 = vpop.permute.xlu1 %2617 }
  0xd4   :  { %4733 = vmatprep.mubr.msk.f32.mxu0 %vm51_vm1, %v5898_v26  ;;  %v5936_v26 = vld [vmem:[%s7521_s1 + $0x318] sm:$0xff] }
  0xd5   :  { %4781 = vmatmul.mubr.msk.f32.gmra.mxu1 %vm51_vm1, %v5907_v60  ;;  %v5941_v60 = vld [vmem:[%s7521_s1 + $0x320] sm:$0xff] }
  0xd6   :  { %4811 = vmatprep.mubr.msk.f32.mxu1 %vm51_vm1, %v5083_v2  ;;  %v5958_v2 = vld [vmem:[%s7521_s1 + $0x328] sm:$0xff] }
  0xd7   :  { %4734 = vmatmul.mubr.msk.f32.vlgmr.msra.gmra.mxu0 %vm51_vm1, %v5916_v33 }
  0xd8   :  { %4784 = vmatpush3.msk.msra.mxu0 %vm100_vm0, %v5687_v28  ;;  %4736 = vmatprep.mubr.msk.f32.mxu0 %vm51_vm1, %v5921_v38 }
  0xd9   :  { %4812 = vmatmul.mubr.msk.f32.vlgmr.msra.gmra.mxu1 %vm51_vm1, %v5088_v3  ;;  %4835 = vmatprep.subr.msk.mxu0 %vm100_vm0, %v2123_v8  ;;  %v5963_v3 = vld [vmem:[%s7521_s1 + $0x330] sm:$0xff] }
  0xda   :  { %4814 = vmatprep.mubr.msk.f32.mxu1 %vm51_vm1, %v5096_v4  ;;  %4862 = vmatpush3.msk.msra.mxu1 %vm100_vm0, %v5719_v20  ;;  %v5976_v4 = vld [vmem:[%s7521_s1 + $0x338] sm:$0xff]  ;;  %v5981_v20 = vld [vmem:[%s7521_s1 + $0x340] sm:$0xff] }
  0xdb   :  { %4737 = vmatmul.mubr.msk.f32.gmra.mxu0 %vm51_vm1, %v5936_v26  ;;  %4913 = vmatprep.subr.msk.mxu1 %vm100_vm0, %v2618_v22 }
  0xdc   :  { %4739 = vmatprep.mubr.msk.f32.mxu0 %vm51_vm1, %v5941_v60 }
  0xdd   :  { %4815 = vmatmul.mubr.msk.f32.gmra.mxu1 %vm51_vm1, %v5104_v5  ;;  %v5994_v5 = vld [vmem:[%s7521_s1 + $0x348] sm:$0xff] }
  0xde   :  { %4817 = vmatprep.mubr.msk.f32.mxu1 %vm51_vm1, %v5111_v6  ;;  %v5999_v6 = vld [vmem:[%s7521_s1 + $0x350] sm:$0xff] }
  0xdf   :  { %4740 = vmatmul.mubr.msk.f32.gmra.mxu0 %vm51_vm1, %v5958_v2 }
  0xe0   :  { %4742 = vmatprep.mubr.msk.f32.mxu0 %vm51_vm1, %v5963_v3 }
  0xe1   :  { %4818 = vmatmul.mubr.msk.f32.gmra.mxu1 %vm51_vm1, %v5118_v7  ;;  %v6012_v7 = vld [vmem:[%s7521_s1 + $0x358] sm:$0xff] }
  0xe2   :  { %4820 = vmatprep.mubr.msk.f32.mxu1 %vm51_vm1, %v5130_v9  ;;  %v6017_v9 = vld [vmem:[%s7521_s1 + $0x360] sm:$0xff] }
  0xe3   :  { %4743 = vmatmul.mubr.msk.f32.gmra.mxu0 %vm51_vm1, %v5976_v4 }
  0xe4   :  { %4745 = vmatprep.mubr.msk.f32.mxu0 %vm51_vm1, %v5981_v20 }
  0xe5   :  { %4821 = vmatmul.mubr.msk.f32.gmra.mxu1 %vm51_vm1, %v5139_v10  ;;  %v6030_v10 = vld [vmem:[%s7521_s1 + $0x368] sm:$0xff] }
  0xe6   :  { %4823 = vmatprep.mubr.msk.f32.mxu1 %vm51_vm1, %v5146_v11  ;;  %v6035_v11 = vld [vmem:[%s7521_s1 + $0x370] sm:$0xff] }
  0xe7   :  { %4746 = vmatmul.mubr.msk.f32.gmra.mxu0 %vm51_vm1, %v5994_v5 }
  0xe8   :  { %4748 = vmatprep.mubr.msk.f32.mxu0 %vm51_vm1, %v5999_v6 }
  0xe9   :  { %4824 = vmatmul.mubr.msk.f32.gmra.mxu1 %vm51_vm1, %v5156_v12  ;;  %v6048_v12 = vld [vmem:[%s7521_s1 + $0x378] sm:$0xff] }
  0xea   :  { %4826 = vmatprep.mubr.msk.f32.mxu1 %vm51_vm1, %v5163_v13  ;;  %v2453_v13 = vpop.permute.xlu0 %2452 }
  0xeb   :  { %4749 = vmatmul.mubr.msk.f32.gmra.mxu0 %vm51_vm1, %v6012_v7 }
  0xec   :  { %4751 = vmatprep.mubr.msk.f32.mxu0 %vm51_vm1, %v6017_v9 }
  0xed   :  { %4827 = vmatmul.mubr.msk.f32.gmra.mxu1 %vm51_vm1, %v5172_v14  ;;  %v6064_v14 = vpop.f32.mrf.mxu1 }
  0xee   :  { %4829 = vmatprep.mubr.msk.f32.mxu1 %vm51_vm1, %v5179_v15  ;;  %v2948_v15 = vpop.permute.xlu1 %2947 }
  0xef   :  { %4752 = vmatmul.mubr.msk.f32.gmra.mxu0 %vm51_vm1, %v6030_v10 }
  0xf0   :  { %4754 = vmatprep.mubr.msk.f32.mxu0 %vm51_vm1, %v6035_v11 }
  0xf1   :  { %4830 = vmatmul.mubr.msk.f32.gmra.mxu1 %vm51_vm1, %v5189_v16 }
  0xf2   :  { %4832 = vmatprep.mubr.msk.f32.mxu1 %vm51_vm1, %v5195_v17 }
  0xf3   :  { %4755 = vmatmul.mubr.msk.f32.gmra.mxu0 %vm51_vm1, %v6048_v12 }
  0xf4   :  { %4785 = vmatprep.mubr.msk.f32.mxu0 %vm51_vm1, %v5075_v1  ;;  %v6077_v1 = vpop.f32.mrf.mxu1 }
  0xf5   :  { %4833 = vmatmul.mubr.msk.f32.gmra.mxu1 %vm51_vm1, %v5205_v18 }
  0xf6   :  { %4863 = vmatprep.mubr.msk.f32.mxu1 %vm51_vm1, %v5210_v19  ;;  %v6088_v16 = vpop.f32.mrf.mxu1 }
  0xf7   :  { %4786 = vmatmul.mubr.msk.f32.vlgmr.msra.gmra.mxu0 %vm51_vm1, %v5219_v21 }
  0xf8   :  { %4836 = vmatpush3.msk.msra.mxu0 %vm100_vm0, %v2123_v8  ;;  %4788 = vmatprep.mubr.msk.f32.mxu0 %vm51_vm1, %v5230_v24  ;;  %v6098_v17 = vpop.f32.mrf.mxu1  ;;  %v2783_v24 = vpop.permute.xlu0 %2782  ;;  %v7705_v8 = vld [vmem:[#allocation29_spill] sm:$0xff] }
  0xf9   :  { %4887 = vmatprep.subr.msk.mxu0 %vm100_vm0, %v2453_v13  ;;  %4864 = vmatmul.mubr.msk.f32.vlgmr.msra.gmra.mxu1 %vm51_vm1, %v5224_v23 }
  0xfa   :  { %4914 = vmatpush3.msk.msra.mxu1 %vm100_vm0, %v2618_v22  ;;  %4866 = vmatprep.mubr.msk.f32.mxu1 %vm51_vm1, %v5236_v25  ;;  %v6108_v18 = vpop.f32.mrf.mxu1  ;;  %v7704_v22 = vld [vmem:[#allocation28_spill] sm:$0xff] }
  0xfb   :  { %4789 = vmatmul.mubr.msk.f32.gmra.mxu0 %vm51_vm1, %v5249_v27  ;;  %4965 = vmatprep.subr.msk.mxu1 %vm100_vm0, %v2948_v15 }
  0xfc   :  { %4791 = vmatprep.mubr.msk.f32.mxu0 %vm51_vm1, %v5259_v29  ;;  %v6118_v19 = vpop.f32.mrf.mxu1  ;;  %v7674_v29 = vld [vmem:[#allocation2_spill] sm:$0xff] }
  0xfd   :  { %4867 = vmatmul.mubr.msk.f32.gmra.mxu1 %vm51_vm1, %v5264_v30  ;;  %v7675_v30 = vld [vmem:[#allocation3_spill] sm:$0xff] }
  0xfe   :  { %4869 = vmatprep.mubr.msk.f32.mxu1 %vm51_vm1, %v5270_v31  ;;  %v6128_v21 = vpop.f32.mrf.mxu1  ;;  %v7676_v31 = vld [vmem:[#allocation4_spill] sm:$0xff] }
  0xff   :  { %4792 = vmatmul.mubr.msk.f32.gmra.mxu0 %vm51_vm1, %v5281_v32  ;;  %v7677_v32 = vld [vmem:[#allocation5_spill] sm:$0xff] }
 0x100   :  { %4794 = vmatprep.mubr.msk.f32.mxu0 %vm51_vm1, %v5288_v34  ;;  %v6138_v23 = vpop.f32.mrf.mxu1 }
 0x101   :  { %4870 = vmatmul.mubr.msk.f32.gmra.mxu1 %vm51_vm1, %v5296_v35  ;;  %v7678_v35 = vld [vmem:[#allocation6_spill] sm:$0xff] }
 0x102   :  { %4872 = vmatprep.mubr.msk.f32.mxu1 %vm51_vm1, %v5302_v36  ;;  %v6148_v25 = vpop.f32.mrf.mxu1  ;;  %v7679_v36 = vld [vmem:[#allocation7_spill] sm:$0xff] }
 0x103   :  { %4795 = vmatmul.mubr.msk.f32.gmra.mxu0 %vm51_vm1, %v5311_v37  ;;  %v7680_v37 = vld [vmem:[#allocation8_spill] sm:$0xff] }
 0x104   :  { %4797 = vmatprep.mubr.msk.f32.mxu0 %vm51_vm1, %v5318_v39  ;;  %v6161_v27 = vpop.f32.mrf.mxu1  ;;  %v7681_v39 = vld [vmem:[#allocation9_spill] sm:$0xff] }
 0x105   :  { %4873 = vmatmul.mubr.msk.f32.gmra.mxu1 %vm51_vm1, %v5325_v40 }
 0x106   :  { %4875 = vmatprep.mubr.msk.f32.mxu1 %vm51_vm1, %v5331_v41  ;;  %v6171_v34 = vpop.f32.mrf.mxu1  ;;  %v7683_v41 = vld [vmem:[#allocation10_spill] sm:$0xff] }
 0x107   :  { %4798 = vmatmul.mubr.msk.f32.gmra.mxu0 %vm51_vm1, %v5340_v42  ;;  %v7684_v42 = vld [vmem:[#allocation11_spill] sm:$0xff] }
 0x108   :  { %4800 = vmatprep.mubr.msk.f32.mxu0 %vm51_vm1, %v5347_v43  ;;  %v6181_v40 = vpop.f32.mrf.mxu1  ;;  %v7685_v43 = vld [vmem:[#allocation12_spill] sm:$0xff] }
 0x109   :  { %4876 = vmatmul.mubr.msk.f32.gmra.mxu1 %vm51_vm1, %v5354_v44  ;;  %7682 = vst [vmem:[#allocation2_spill] sm:$0xff] %v6181_v40  ;;  %v7686_v44 = vld [vmem:[#allocation13_spill] sm:$0xff] }
 0x10a   :  { %4878 = vmatprep.mubr.msk.f32.mxu1 %vm51_vm1, %v5359_v45  ;;  %v6191_v45 = vpop.f32.mrf.mxu1 }
 0x10b   :  { %4801 = vmatmul.mubr.msk.f32.gmra.mxu0 %vm51_vm1, %v5368_v46  ;;  %7687 = vst [vmem:[#allocation3_spill] sm:$0xff] %v6191_v45  ;;  %v7688_v46 = vld [vmem:[#allocation14_spill] sm:$0xff] }
 0x10c   :  { %4803 = vmatprep.mubr.msk.f32.mxu0 %vm51_vm1, %v5375_v47  ;;  %v7689_v47 = vld [vmem:[#allocation15_spill] sm:$0xff] }
 0x10d   :  { %4879 = vmatmul.mubr.msk.f32.gmra.mxu1 %vm51_vm1, %v5382_v48  ;;  %v7690_v48 = vld [vmem:[#allocation16_spill] sm:$0xff] }
 0x10e   :  { %4881 = vmatprep.mubr.msk.f32.mxu1 %vm51_vm1, %v5387_v49  ;;  %v7691_v49 = vld [vmem:[#allocation17_spill] sm:$0xff] }
 0x10f   :  { %4804 = vmatmul.mubr.msk.f32.gmra.mxu0 %vm51_vm1, %v5396_v50  ;;  %v6201_v50 = vpop.f32.mrf.mxu1 }
 0x110   :  { %4806 = vmatprep.mubr.msk.f32.mxu0 %vm51_vm1, %v5403_v51  ;;  %7692 = vst [vmem:[#allocation4_spill] sm:$0xff] %v6201_v50  ;;  %v7693_v51 = vld [vmem:[#allocation18_spill] sm:$0xff] }
 0x111   :  { %4882 = vmatmul.mubr.msk.f32.gmra.mxu1 %vm51_vm1, %v5410_v52  ;;  %v7694_v52 = vld [vmem:[#allocation19_spill] sm:$0xff] }
 0x112   :  { %4884 = vmatprep.mubr.msk.f32.mxu1 %vm51_vm1, %v5415_v53  ;;  %v7695_v53 = vld [vmem:[#allocation20_spill] sm:$0xff] }
 0x113   :  { %4807 = vmatmul.mubr.msk.f32.gmra.mxu0 %vm51_vm1, %v5424_v54  ;;  %v7696_v54 = vld [vmem:[#allocation21_spill] sm:$0xff] }
 0x114   :  { %4837 = vmatprep.mubr.msk.f32.mxu0 %vm51_vm1, %v5431_v55  ;;  %v6211_v55 = vpop.f32.mrf.mxu1 }
 0x115   :  { %4885 = vmatmul.mubr.msk.f32.gmra.mxu1 %vm51_vm1, %v5438_v56  ;;  %7697 = vst [vmem:[#allocation5_spill] sm:$0xff] %v6211_v55  ;;  %v7698_v56 = vld [vmem:[#allocation22_spill] sm:$0xff]  ;;  %v7741_v55 = vld [vmem:[#allocation56_spill] sm:$0xff] }
 0x116   :  { %4915 = vmatprep.mubr.msk.f32.mxu1 %vm51_vm1, %v5443_v57  ;;  %v7699_v57 = vld [vmem:[#allocation23_spill] sm:$0xff] }
 0x117   :  { %4838 = vmatmul.mubr.msk.f32.vlgmr.msra.gmra.mxu0 %vm51_vm1, %v5452_v58  ;;  %v7700_v58 = vld [vmem:[#allocation24_spill] sm:$0xff] }
 0x118   :  { %4888 = vmatpush3.msk.msra.mxu0 %vm100_vm0, %v2453_v13  ;;  %4840 = vmatprep.mubr.msk.f32.mxu0 %vm51_vm1, %v5459_v59  ;;  %v7701_v59 = vld [vmem:[#allocation25_spill] sm:$0xff] }
 0x119   :  { %4939 = vmatprep.subr.msk.mxu0 %vm100_vm0, %v2783_v24  ;;  %4916 = vmatmul.mubr.msk.f32.vlgmr.msra.gmra.mxu1 %vm51_vm1, %v5468_v61  ;;  %v6221_v61 = vpop.f32.mrf.mxu1 }
 0x11a   :  { %4966 = vmatpush3.msk.msra.mxu1 %vm100_vm0, %v2948_v15  ;;  %4918 = vmatprep.mubr.msk.f32.mxu1 %vm51_vm1, %v5475_v62  ;;  %v7702_v62 = vld [vmem:[#allocation26_spill] sm:$0xff] }
 0x11b   :  { %4841 = vmatmul.mubr.msk.f32.gmra.mxu0 %vm51_vm1, %v5484_v63  ;;  %v7703_v63 = vld [vmem:[#allocation27_spill] sm:$0xff] }
 0x11c   :  { %4843 = vmatprep.mubr.msk.f32.mxu0 %vm51_vm1, %v7674_v29  ;;  %v7706_v29 = vld [vmem:[#allocation30_spill] sm:$0xff] }
 0x11d   :  { %4919 = vmatmul.mubr.msk.f32.gmra.mxu1 %vm51_vm1, %v7675_v30 }
 0x11e   :  { %4921 = vmatprep.mubr.msk.f32.mxu1 %vm51_vm1, %v7676_v31  ;;  %v7707_v31 = vld [vmem:[#allocation31_spill] sm:$0xff] }
 0x11f   :  { %4844 = vmatmul.mubr.msk.f32.gmra.mxu0 %vm51_vm1, %v7677_v32 }
 0x120   :  { %4846 = vmatprep.mubr.msk.f32.mxu0 %vm51_vm1, %v7678_v35  ;;  %v7708_v35 = vld [vmem:[#allocation32_spill] sm:$0xff] }
 0x121   :  { %4922 = vmatmul.mubr.msk.f32.gmra.mxu1 %vm51_vm1, %v7679_v36  ;;  %v7709_v36 = vld [vmem:[#allocation33_spill] sm:$0xff] }
 0x122   :  { %4924 = vmatprep.mubr.msk.f32.mxu1 %vm51_vm1, %v7680_v37  ;;  %v7710_v37 = vld [vmem:[#allocation34_spill] sm:$0xff] }
 0x123   :  { %4847 = vmatmul.mubr.msk.f32.gmra.mxu0 %vm51_vm1, %v7681_v39 }
 0x124   :  { %4849 = vmatprep.mubr.msk.f32.mxu0 %vm51_vm1, %v7683_v41  ;;  %v7711_v41 = vld [vmem:[#allocation35_spill] sm:$0xff] }
 0x125   :  { %4925 = vmatmul.mubr.msk.f32.gmra.mxu1 %vm51_vm1, %v7684_v42 }
 0x126   :  { %4927 = vmatprep.mubr.msk.f32.mxu1 %vm51_vm1, %v7685_v43  ;;  %v7712_v43 = vld [vmem:[#allocation36_spill] sm:$0xff] }
 0x127   :  { %4850 = vmatmul.mubr.msk.f32.gmra.mxu0 %vm51_vm1, %v7686_v44  ;;  %v7713_v44 = vld [vmem:[#allocation37_spill] sm:$0xff] }
 0x128   :  { %4852 = vmatprep.mubr.msk.f32.mxu0 %vm51_vm1, %v7688_v46 }
 0x129   :  { %4928 = vmatmul.mubr.msk.f32.gmra.mxu1 %vm51_vm1, %v7689_v47 }
 0x12a   :  { %4930 = vmatprep.mubr.msk.f32.mxu1 %vm51_vm1, %v7690_v48  ;;  %v7714_v48 = vld [vmem:[#allocation38_spill] sm:$0xff] }
 0x12b   :  { %4853 = vmatmul.mubr.msk.f32.gmra.mxu0 %vm51_vm1, %v7691_v49 }
 0x12c   :  { %4855 = vmatprep.mubr.msk.f32.mxu0 %vm51_vm1, %v7693_v51  ;;  %v7715_v51 = vld [vmem:[#allocation39_spill] sm:$0xff] }
 0x12d   :  { %4931 = vmatmul.mubr.msk.f32.gmra.mxu1 %vm51_vm1, %v7694_v52 }
 0x12e   :  { %4933 = vmatprep.mubr.msk.f32.mxu1 %vm51_vm1, %v7695_v53  ;;  %v7716_v53 = vld [vmem:[#allocation40_spill] sm:$0xff] }
 0x12f   :  { %4856 = vmatmul.mubr.msk.f32.gmra.mxu0 %vm51_vm1, %v7696_v54  ;;  %v7717_v54 = vld [vmem:[#allocation41_spill] sm:$0xff] }
 0x130   :  { %4858 = vmatprep.mubr.msk.f32.mxu0 %vm51_vm1, %v7698_v56 }
 0x131   :  { %4934 = vmatmul.mubr.msk.f32.gmra.mxu1 %vm51_vm1, %v7699_v57 }
 0x132   :  { %4936 = vmatprep.mubr.msk.f32.mxu1 %vm51_vm1, %v7700_v58  ;;  %v7718_v58 = vld [vmem:[#allocation42_spill] sm:$0xff] }
 0x133   :  { %4859 = vmatmul.mubr.msk.f32.gmra.mxu0 %vm51_vm1, %v7701_v59 }
 0x134   :  { %4889 = vmatprep.mubr.msk.f32.mxu0 %vm51_vm1, %v7702_v62  ;;  %v7719_v62 = vld [vmem:[#allocation43_spill] sm:$0xff] }
 0x135   :  { %4937 = vmatmul.mubr.msk.f32.gmra.mxu1 %vm51_vm1, %v7703_v63 }
 0x136   :  { %4967 = vmatprep.mubr.msk.f32.mxu1 %vm51_vm1, %v7704_v22  ;;  %v7720_v22 = vld [vmem:[#allocation44_spill] sm:$0xff] }
 0x137   :  { %v6229_v28 = vpop.f32.mrf.mxu0  ;;  %4890 = vmatmul.mubr.msk.f32.vlgmr.msra.gmra.mxu0 %vm51_vm1, %v7705_v8  ;;  %v6233_v13 = vpop.f32.mrf.mxu1  ;;  %v7721_v8 = vld [vmem:[#allocation45_spill] sm:$0xff] }
 0x138   :  { %4940 = vmatpush3.msk.msra.mxu0 %vm100_vm0, %v2783_v24  ;;  %4892 = vmatprep.mubr.msk.f32.mxu0 %vm51_vm1, %v5692_v0 }
 0x139   :  { %v6238_v15 = vpop.f32.mrf.mxu0  ;;  %4968 = vmatmul.mubr.msk.f32.vlgmr.msra.gmra.mxu1 %vm51_vm1, %v7706_v29  ;;  %v6242_v30 = vpop.f32.mrf.mxu1 }
 0x13a   :  { %4970 = vmatprep.mubr.msk.f32.mxu1 %vm51_vm1, %v7707_v31 }
 0x13b   :  { %v6246_v32 = vpop.f32.mrf.mxu0  ;;  %4893 = vmatmul.mubr.msk.f32.gmra.mxu0 %vm51_vm1, %v7708_v35  ;;  %v7723_v35 = vld [vmem:[#allocation46_spill] sm:$0xff] }
 0x13c   :  { %4895 = vmatprep.mubr.msk.f32.mxu0 %vm51_vm1, %v7709_v36  ;;  %v6252_v24 = vpop.f32.mrf.mxu1 }
 0x13d   :  { %v6254_v0 = vpop.f32.mrf.mxu0  ;;  %4971 = vmatmul.mubr.msk.f32.gmra.mxu1 %vm51_vm1, %v7710_v37  ;;  %v7725_v37 = vld [vmem:[#allocation47_spill] sm:$0xff] }
 0x13e   :  { %v6258_v39 = vpop.f32.mrf.mxu1  ;;  %4973 = vmatprep.mubr.msk.f32.mxu1 %vm51_vm1, %v7711_v41 }
 0x13f   :  { %v6262_v42 = vpop.f32.mrf.mxu0  ;;  %4896 = vmatmul.mubr.msk.f32.gmra.mxu0 %vm51_vm1, %v7712_v43  ;;  %v7726_v43 = vld [vmem:[#allocation48_spill] sm:$0xff] }
 0x140   :  { %4898 = vmatprep.mubr.msk.f32.mxu0 %vm51_vm1, %v7713_v44  ;;  %v6268_v46 = vpop.f32.mrf.mxu1  ;;  %v7727_v44 = vld [vmem:[#allocation49_spill] sm:$0xff] }
 0x141   :  { %v6270_v47 = vpop.f32.mrf.mxu0  ;;  %4974 = vmatmul.mubr.msk.f32.gmra.mxu1 %vm51_vm1, %v7714_v48 }
 0x142   :  { %v6274_v49 = vpop.f32.mrf.mxu1  ;;  %4976 = vmatprep.mubr.msk.f32.mxu1 %vm51_vm1, %v7715_v51 }
 0x143   :  { %v6278_v52 = vpop.f32.mrf.mxu0  ;;  %4899 = vmatmul.mubr.msk.f32.gmra.mxu0 %vm51_vm1, %v7716_v53  ;;  %v7729_v53 = vld [vmem:[#allocation50_spill] sm:$0xff] }
 0x144   :  { %4901 = vmatprep.mubr.msk.f32.mxu0 %vm51_vm1, %v7717_v54  ;;  %v6284_v56 = vpop.f32.mrf.mxu1 }
 0x145   :  { %v6286_v57 = vpop.f32.mrf.mxu0  ;;  %4977 = vmatmul.mubr.msk.f32.gmra.mxu1 %vm51_vm1, %v7718_v58  ;;  %v7731_v58 = vld [vmem:[#allocation51_spill] sm:$0xff] }
 0x146   :  { %v6290_v59 = vpop.f32.mrf.mxu1  ;;  %4979 = vmatprep.mubr.msk.f32.mxu1 %vm51_vm1, %v7719_v62 }
 0x147   :  { %v6294_v63 = vpop.f32.mrf.mxu0  ;;  %4902 = vmatmul.mubr.msk.f32.gmra.mxu0 %vm51_vm1, %v7720_v22  ;;  %v7733_v22 = vld [vmem:[#allocation52_spill] sm:$0xff] }
 0x148   :  { %4904 = vmatprep.mubr.msk.f32.mxu0 %vm51_vm1, %v7721_v8  ;;  %v6300_v29 = vpop.f32.mrf.mxu1  ;;  %v7734_v8 = vld [vmem:[#allocation53_spill] sm:$0xff] }
 0x149   :  { %7722 = vst [vmem:[#allocation6_spill] sm:$0xff] %v6300_v29  ;;  %v6302_v31 = vpop.f32.mrf.mxu0  ;;  %4980 = vmatmul.mubr.msk.f32.gmra.mxu1 %vm51_vm1, %v7723_v35 }
 0x14a   :  { %v6306_v36 = vpop.f32.mrf.mxu1  ;;  %4982 = vmatprep.mubr.msk.f32.mxu1 %vm51_vm1, %v7725_v37 }
 0x14b   :  { %7724 = vst [vmem:[#allocation7_spill] sm:$0xff] %v6306_v36  ;;  %v6310_v41 = vpop.f32.mrf.mxu0  ;;  %4905 = vmatmul.mubr.msk.f32.gmra.mxu0 %vm51_vm1, %v7726_v43  ;;  %v7737_v43 = vld [vmem:[#allocation54_spill] sm:$0xff] }
 0x14c   :  { %4907 = vmatprep.mubr.msk.f32.mxu0 %vm51_vm1, %v7727_v44  ;;  %v6316_v48 = vpop.f32.mrf.mxu1 }
 0x14d   :  { %7728 = vst [vmem:[#allocation8_spill] sm:$0xff] %v6316_v48  ;;  %v6318_v51 = vpop.f32.mrf.mxu0  ;;  %4983 = vmatmul.mubr.msk.f32.gmra.mxu1 %vm51_vm1, %v7729_v53  ;;  %v7739_v53 = vld [vmem:[#allocation55_spill] sm:$0xff] }
 0x14e   :  { %v6322_v54 = vpop.f32.mrf.mxu1  ;;  %4985 = vmatprep.mubr.msk.f32.mxu1 %vm51_vm1, %v7731_v58 }
 0x14f   :  { %7730 = vst [vmem:[#allocation9_spill] sm:$0xff] %v6322_v54  ;;  %v6326_v62 = vpop.f32.mrf.mxu0  ;;  %4908 = vmatmul.mubr.msk.f32.gmra.mxu0 %vm51_vm1, %v7733_v22  ;;  %v7742_v22 = vld [vmem:[#allocation57_spill] sm:$0xff]  ;;  %v7744_v54 = vld [vmem:[#allocation58_spill] sm:$0xff] }
 0x150   :  { %7732 = vst [vmem:[#allocation10_spill] sm:$0xff] %v6326_v62  ;;  %4910 = vmatprep.mubr.msk.f32.mxu0 %vm51_vm1, %v7734_v8  ;;  %v6332_v35 = vpop.f32.mrf.mxu1 }
 0x151   :  { %7735 = vst [vmem:[#allocation11_spill] sm:$0xff] %v6332_v35  ;;  %v6334_v37 = vpop.f32.mrf.mxu0  ;;  %4986 = vmatmul.mubr.msk.f32.gmra.mxu1 %vm51_vm1, %v7737_v43 }
 0x152   :  { %7736 = vst [vmem:[#allocation12_spill] sm:$0xff] %v6334_v37  ;;  %v6338_v44 = vpop.f32.mrf.mxu1  ;;  %4988 = vmatprep.mubr.msk.f32.mxu1 %vm51_vm1, %v7739_v53 }
 0x153   :  { %7738 = vst [vmem:[#allocation13_spill] sm:$0xff] %v6338_v44  ;;  %v6342_v58 = vpop.f32.mrf.mxu0  ;;  %4911 = vmatmul.mubr.msk.f32.gmra.mxu0 %vm51_vm1, %v7741_v55 }
 0x154   :  { %7740 = vst [vmem:[#allocation14_spill] sm:$0xff] %v6342_v58  ;;  %4941 = vmatprep.mubr.msk.f32.mxu0 %vm51_vm1, %v7742_v22  ;;  %v6348_v8 = vpop.f32.mrf.mxu1 }
 0x155   :  { %7743 = vst [vmem:[#allocation15_spill] sm:$0xff] %v6348_v8  ;;  %v239_v35 = vpop.f32.mrf.mxu0  ;;  %4989 = vmatmul.mubr.msk.f32.gmra.mxu1 %vm51_vm1, %v7744_v54 }
 0x156   :  { %v6353_v43 = vadd.f32 %v6221_v61, %v239_v35  ;;  %v6355_v44 = vpop.f32.mrf.mxu1 }
 0x157   :  { %7746 = vst [vmem:[#allocation17_spill] sm:$0xff] %v6355_v44  ;;  %v6357_v53 = vpop.f32.mrf.mxu0  ;;  %4942 = vmatmul.mubr.msk.f32.vlgmr.msra.gmra.mxu0 %vm51_vm1, %v5916_v33 }
 0x158   :  { %7745 = vst [vmem:[#allocation16_spill] sm:$0xff] %v6353_v43  ;;  %4944 = vmatprep.mubr.msk.f32.mxu0 %vm51_vm1, %v5921_v38 }
 0x159   :  { %v6363_v55 = vpop.f32.mrf.mxu0  ;;  %v6365_v22 = vpop.f32.mrf.mxu1 }
 0x15b   :  { %v6367_v8 = vpop.f32.mrf.mxu0  ;;  %4945 = vmatmul.mubr.msk.f32.gmra.mxu0 %vm51_vm1, %v5936_v26  ;;  %v6371_v61 = vpop.f32.mrf.mxu1 }
 0x15c   :  { %4947 = vmatprep.mubr.msk.f32.mxu0 %vm51_vm1, %v5941_v60 }
 0x15d   :  { %v6375_v54 = vpop.f32.mrf.mxu0  ;;  %v6377_v33 = vpop.f32.mrf.mxu1 }
 0x15f   :  { %v6379_v35 = vpop.f32.mrf.mxu0  ;;  %4948 = vmatmul.mubr.msk.f32.gmra.mxu0 %vm51_vm1, %v5958_v2  ;;  %v6383_v38 = vpop.f32.mrf.mxu1 }
 0x160   :  { %4950 = vmatprep.mubr.msk.f32.mxu0 %vm51_vm1, %v5963_v3 }
 0x161   :  { %v6387_v26 = vpop.f32.mrf.mxu0  ;;  %v6389_v44 = vpop.f32.mrf.mxu1 }
 0x162   :  { %7747 = vst [vmem:[#allocation18_spill] sm:$0xff] %v6389_v44 }
 0x163   :  { %v6391_v43 = vpop.f32.mrf.mxu0  ;;  %4951 = vmatmul.mubr.msk.f32.gmra.mxu0 %vm51_vm1, %v5976_v4  ;;  %v6395_v60 = vpop.f32.mrf.mxu1 }
 0x164   :  { %7748 = vst [vmem:[#allocation19_spill] sm:$0xff] %v6395_v60  ;;  %4953 = vmatprep.mubr.msk.f32.mxu0 %vm51_vm1, %v5981_v20 }
 0x165   :  { %v6399_v2 = vpop.f32.mrf.mxu0  ;;  %v6401_v58 = vpop.f32.mrf.mxu1 }
 0x166   :  { %7749 = vst [vmem:[#allocation20_spill] sm:$0xff] %v6401_v58 }
 0x167   :  { %v6403_v48 = vpop.f32.mrf.mxu0  ;;  %4954 = vmatmul.mubr.msk.f32.gmra.mxu0 %vm51_vm1, %v5994_v5  ;;  %v6407_v3 = vpop.f32.mrf.mxu1 }
 0x168   :  { %7750 = vst [vmem:[#allocation21_spill] sm:$0xff] %v6407_v3  ;;  %4956 = vmatprep.mubr.msk.f32.mxu0 %vm51_vm1, %v5999_v6 }
 0x169   :  { %v6411_v4 = vpop.f32.mrf.mxu0  ;;  %v6413_v50 = vpop.f32.mrf.mxu1 }
 0x16a   :  { %7751 = vst [vmem:[#allocation22_spill] sm:$0xff] %v6413_v50 }
 0x16b   :  { %v6415_v37 = vpop.f32.mrf.mxu0  ;;  %4957 = vmatmul.mubr.msk.f32.gmra.mxu0 %vm51_vm1, %v6012_v7  ;;  %v6419_v20 = vpop.f32.mrf.mxu1 }
 0x16c   :  { %7752 = vst [vmem:[#allocation23_spill] sm:$0xff] %v6415_v37  ;;  %7753 = vst [vmem:[#allocation24_spill] sm:$0xff] %v6419_v20  ;;  %4959 = vmatprep.mubr.msk.f32.mxu0 %vm51_vm1, %v6017_v9 }
 0x16d   :  { %v6423_v5 = vpop.f32.mrf.mxu0  ;;  %v6425_v3 = vpop.f32.mrf.mxu1 }
 0x16e   :  { %7754 = vst [vmem:[#allocation25_spill] sm:$0xff] %v6423_v5  ;;  %7755 = vst [vmem:[#allocation26_spill] sm:$0xff] %v6425_v3 }
 0x16f   :  { %v6427_v58 = vpop.f32.mrf.mxu0  ;;  %4960 = vmatmul.mubr.msk.f32.gmra.mxu0 %vm51_vm1, %v6030_v10  ;;  %v6431_v6 = vpop.f32.mrf.mxu1 }
 0x170   :  { %7756 = vst [vmem:[#allocation27_spill] sm:$0xff] %v6427_v58  ;;  %7757 = vst [vmem:[#allocation28_spill] sm:$0xff] %v6431_v6  ;;  %4962 = vmatprep.mubr.msk.f32.mxu0 %vm51_vm1, %v6035_v11 }
 0x171   :  { %v6435_v7 = vpop.f32.mrf.mxu0  ;;  %v6437_v20 = vpop.f32.mrf.mxu1 }
 0x172   :  { %7758 = vst [vmem:[#allocation29_spill] sm:$0xff] %v6435_v7  ;;  %7759 = vst [vmem:[#allocation30_spill] sm:$0xff] %v6437_v20 }
 0x173   :  { %v6439_v50 = vpop.f32.mrf.mxu0  ;;  %4963 = vmatmul.mubr.msk.f32.gmra.mxu0 %vm51_vm1, %v6048_v12  ;;  %v6443_v9 = vpop.f32.mrf.mxu1 }
 0x174   :  { %7760 = vst [vmem:[#allocation31_spill] sm:$0xff] %v6439_v50  ;;  %7761 = vst [vmem:[#allocation32_spill] sm:$0xff] %v6443_v9 }
 0x175   :  { %v6445_v3 = vpop.f32.mrf.mxu0  ;;  %v6447_v58 = vpop.f32.mrf.mxu1 }
 0x176   :  { %7762 = vst [vmem:[#allocation33_spill] sm:$0xff] %v6445_v3  ;;  %7763 = vst [vmem:[#allocation34_spill] sm:$0xff] %v6447_v58 }
 0x177   :  { %v4683_v10 = vpop.f32.mrf.mxu0  ;;  %v6449_v6 = vpop.f32.mrf.mxu1 }
 0x178   :  { %7764 = vst [vmem:[#allocation35_spill] sm:$0xff] %v6449_v6 }
 0x179   :  { %v1038_v36 = vpop.f32.mrf.mxu0  ;;  %v6451_v11 = vpop.f32.mrf.mxu1 }
 0x17b   :  { %v4686_v7 = vpop.f32.mrf.mxu0  ;;  %v6453_v5 = vpop.f32.mrf.mxu1 }
 0x17d   :  { %v1048_v20 = vpop.f32.mrf.mxu0  ;;  %v6455_v50 = vpop.f32.mrf.mxu1 }
 0x17f   :  { %v6457_v37 = vpop.f32.mrf.mxu0  ;;  %v6459_v12 = vpop.f32.mrf.mxu1 }
 0x180   :  { %7765 = vst [vmem:[#allocation36_spill] sm:$0xff] %v6459_v12  ;;  %v370_v12 = vadd.f32 %v6064_v14, %v6229_v28  ;;  %v375_v14 = vadd.f32 %v6098_v17, %v6254_v0  ;;  %v390_v17 = vadd.f32 %v6108_v18, %v6262_v42 }
 0x181   :  { %v6461_v9 = vpop.f32.mrf.mxu0  ;;  %v6463_v3 = vpop.f32.mrf.mxu1 }
 0x182   :  { %7766 = vst [vmem:[#allocation37_spill] sm:$0xff] %v6463_v3 }
 0x183   :  { %v6465_v58 = vpop.f32.mrf.mxu0  ;;  %v6467_v6 = vpop.f32.mrf.mxu1 }
 0x184   :  { %7767 = vst [vmem:[#allocation38_spill] sm:$0xff] %v6465_v58  ;;  %7768 = vst [vmem:[#allocation39_spill] sm:$0xff] %v6467_v6  ;;  %v365_v6 = vadd.f32 %v6077_v1, %v6238_v15 }
 0x185   :  { %v6469_v29 = vpop.f32.mrf.mxu0  ;;  %v6471_v60 = vpop.f32.mrf.mxu1 }
 0x186   :  { %7769 = vst [vmem:[#allocation40_spill] sm:$0xff] %v6469_v29  ;;  %7770 = vst [vmem:[#allocation41_spill] sm:$0xff] %v6471_v60  ;;  %v658_v60 = vadd.f32 %v6357_v53, %v370_v12  ;;  %v659_v53 = vadd.f32 %v6375_v54, %v375_v14 }
 0x187   :  { %v6473_v45 = vpop.f32.mrf.mxu0  ;;  %v6475_v62 = vpop.f32.mrf.mxu1 }
 0x188   :  { %7771 = vst [vmem:[#allocation42_spill] sm:$0xff] %v6473_v45  ;;  %7772 = vst [vmem:[#allocation43_spill] sm:$0xff] %v6475_v62  ;;  %v380_v62 = vadd.f32 %v6088_v16, %v6246_v32  ;;  %v888_v1 = vadd.f32 %v6233_v13, %v658_v60  ;;  %v385_v13 = vadd.f32 %v6118_v19, %v6270_v47 }
 0x189   :  { %v6477_v44 = vpop.f32.mrf.mxu0  ;;  %v6479_v40 = vpop.f32.mrf.mxu1  ;;  %v889_v54 = vadd.f32 %v6258_v39, %v659_v53  ;;  %v662_v60 = vadd.f32 %v6379_v35, %v390_v17  ;;  %v395_v19 = vadd.f32 %v6138_v23, %v6286_v57 }
 0x18a   :  { %7773 = vst [vmem:[#allocation44_spill] sm:$0xff] %v6479_v40  ;;  %v657_v40 = vadd.f32 %v6363_v55, %v365_v6  ;;  %v660_v15 = vadd.f32 %v6367_v8, %v380_v62  ;;  %v1118_v32 = vadd.f32 %v4683_v10, %v888_v1  ;;  %v661_v18 = vadd.f32 %v6387_v26, %v385_v13 }
 0x18b   :  { %v6483_v3 = vpop.f32.mrf.mxu0  ;;  %v6485_v58 = vpop.f32.mrf.mxu1  ;;  %v400_v10 = vadd.f32 %v6128_v21, %v6278_v52  ;;  %v892_v14 = vadd.f32 %v6268_v46, %v662_v60  ;;  %v405_v46 = vadd.f32 %v6161_v27, %v6302_v31  ;;  %v7781_v13 = vld [vmem:[#allocation38_spill] sm:$0xff] }
 0x18c   :  { %7774 = vst [vmem:[#allocation45_spill] sm:$0xff] %v6485_v58  ;;  %v887_v16 = vadd.f32 %v6242_v30, %v657_v40  ;;  %v890_v62 = vadd.f32 %v6252_v24, %v660_v15  ;;  %v1348_v30 = vadd.f32 %v6365_v22, %v1118_v32  ;;  %v1119_v24 = vadd.f32 %v1048_v20, %v889_v54  ;;  %v7783_v54 = vld [vmem:[#allocation3_spill] sm:$0xff] }
 0x18d   :  { %v6490_v29 = vpop.f32.mrf.mxu0  ;;  %v6492_v45 = vpop.f32.mrf.mxu1  ;;  %v664_v26 = vadd.f32 %v6391_v43, %v400_v10  ;;  %v663_v22 = vadd.f32 %v6399_v2, %v395_v19  ;;  %v891_v21 = vadd.f32 %v6274_v49, %v661_v18  ;;  %v1122_v2 = vadd.f32 %v6457_v37, %v892_v14  ;;  %v7784_v18 = vld [vmem:[#allocation19_spill] sm:$0xff]  ;;  %v7786_v19 = vld [vmem:[#allocation6_spill] sm:$0xff] }
 0x18e   :  { %7775 = vst [vmem:[#allocation46_spill] sm:$0xff] %v6492_v45  ;;  %v1117_v8 = vadd.f32 %v1038_v36, %v887_v16  ;;  %v1120_v42 = vadd.f32 %v4686_v7, %v890_v62  ;;  %v1349_v43 = vadd.f32 %v6383_v38, %v1119_v24  ;;  %v665_v38 = vadd.f32 %v6411_v4, %v405_v46  ;;  %v7793_v46 = vld [vmem:[#allocation4_spill] sm:$0xff] }
 0x18f   :  { %v6499_v28 = vpop.f32.mrf.mxu0  ;;  %v6501_v58 = vpop.f32.mrf.mxu1  ;;  %v1121_v49 = vadd.f32 %v6461_v9, %v891_v21  ;;  %v893_v27 = vadd.f32 %v6290_v59, %v663_v22  ;;  %v7779_v59 = vld [vmem:[#allocation2_spill] sm:$0xff] }
 0x190   :  { %v1347_v36 = vadd.f32 %v6371_v61, %v1117_v8  ;;  %v1350_v23 = vadd.f32 %v6377_v33, %v1120_v42  ;;  %v410_v61 = vadd.f32 %v6148_v25, %v6294_v63  ;;  %v894_v25 = vadd.f32 %v6284_v56, %v664_v26  ;;  %v7785_v42 = vld [vmem:[#allocation40_spill] sm:$0xff]  ;;  %v7789_v26 = vld [vmem:[#allocation7_spill] sm:$0xff] }
 0x191   :  { %v6506_v12 = vpop.f32.mrf.mxu0  ;;  %v6508_v45 = vpop.f32.mrf.mxu1  ;;  %v420_v56 = vadd.f32 %v6171_v34, %v6310_v41  ;;  %v415_v32 = vadd.f32 %v7779_v59, %v6318_v51  ;;  %v1123_v10 = vadd.f32 %v7785_v42, %v893_v27  ;;  %v7787_v41 = vld [vmem:[#allocation23_spill] sm:$0xff]  ;;  %v7788_v51 = vld [vmem:[#allocation25_spill] sm:$0xff]  ;;  %v895_v22 = vadd.f32 %v7789_v26, %v665_v38  ;;  %v7800_v59 = vld [vmem:[#allocation8_spill] sm:$0xff] }
 0x192   :  { %v666_v63 = vadd.f32 %v6403_v48, %v410_v61  ;;  %v7780_v48 = vld [vmem:[#allocation18_spill] sm:$0xff]  ;;  %v1124_v62 = vadd.f32 %v7781_v13, %v894_v25  ;;  %v7792_v61 = vld [vmem:[#allocation12_spill] sm:$0xff]  ;;  %v7796_v27 = vld [vmem:[#allocation21_spill] sm:$0xff] }
 0x193   :  { %v6513_v0 = vpop.f32.mrf.mxu0  ;;  %v6515_v55 = vpop.f32.mrf.mxu1  ;;  %v1352_v17 = vadd.f32 %v7780_v48, %v1122_v2  ;;  %v668_v24 = vadd.f32 %v7787_v41, %v420_v56  ;;  %v7794_v2 = vld [vmem:[#allocation27_spill] sm:$0xff]  ;;  %v7801_v48 = vld [vmem:[#allocation9_spill] sm:$0xff] }
 0x194   :  { %v896_v34 = vadd.f32 %v7786_v19, %v666_v63  ;;  %v1353_v63 = vadd.f32 %v7796_v27, %v1123_v10  ;;  %v7802_v13 = vld [vmem:[#allocation29_spill] sm:$0xff]  ;;  %v7805_v10 = vld [vmem:[#allocation14_spill] sm:$0xff]  ;;  %v7807_v41 = vld [vmem:[#allocation11_spill] sm:$0xff] }
 0x195   :  { %v6522_v6 = vpop.f32.mrf.mxu0  ;;  %v6524_v40 = vpop.f32.mrf.mxu1  ;;  %v7806_v19 = vld [vmem:[#allocation5_spill] sm:$0xff] }
 0x197   :  { %v4735_v47 = vpop.f32.mrf.mxu0  ;;  %v6532_v39 = vpop.f32.mrf.mxu1 }
 0x198   :  { %v1578_v35 = vadd.f32 %v4735_v47, %v1348_v30  ;;  %v1351_v30 = vadd.f32 %v7784_v18, %v1121_v49  ;;  %v667_v47 = vadd.f32 %v7788_v51, %v415_v32  ;;  %v7795_v49 = vld [vmem:[#allocation20_spill] sm:$0xff]  ;;  %v898_v32 = vadd.f32 %v7800_v59, %v668_v24  ;;  %v7818_v59 = vld [vmem:[#allocation26_spill] sm:$0xff] }
 0x199   :  { %v1498_v7 = vpop.f32.mrf.mxu0  ;;  %v6538_v1 = vpop.f32.mrf.mxu1 }
 0x19a   :  { %v6543_v52 = vadd.f32 %v6451_v11, %v1578_v35  ;;  %v1577_v57 = vadd.f32 %v1498_v7, %v1347_v36  ;;  %v7790_v7 = vld [vmem:[#allocation36_spill] sm:$0xff]  ;;  %v1128_v51 = vadd.f32 %v6483_v3, %v898_v32  ;;  %v7815_v3 = vld [vmem:[#allocation33_spill] sm:$0xff] }
 0x19b   :  { %v4738_v20 = vpop.f32.mrf.mxu0  ;;  %v6551_v15 = vpop.f32.mrf.mxu1 }
 0x19c   :  { %7776 = vst [vmem:[#allocation47_spill] sm:$0xff] %v6543_v52  ;;  %v6555_v33 = vadd.f32 %v6453_v5, %v1577_v57  ;;  %v1580_v11 = vadd.f32 %v4738_v20, %v1350_v23  ;;  %v3116_v53 = vsel %vm3112_vm2, %v6543_v52, 0.0  ;;  %v1358_v32 = vadd.f32 %v7818_v59, %v1128_v51  ;;  %v7832_v59 = vld [vmem:[#allocation35_spill] sm:$0xff] }
 0x19d   :  { %v1508_v31 = vpop.f32.mrf.mxu0  ;;  %3117 = vadd.xlane.f32.xlu1 %v3116_v53  ;;  %v6562_v37 = vpop.f32.mrf.mxu1 }
 0x19e   :  { %7777 = vst [vmem:[#allocation48_spill] sm:$0xff] %v6555_v33  ;;  %v6566_v9 = vadd.f32 %v6455_v50, %v1580_v11  ;;  %v1579_v5 = vadd.f32 %v1508_v31, %v1349_v43  ;;  %v3113_v16 = vsel %vm3112_vm2, %v6555_v33, 0.0  ;;  %v7782_v50 = vld [vmem:[#allocation10_spill] sm:$0xff]  ;;  %v425_v43 = vadd.f32 %v7793_v46, %v7792_v61  ;;  %v7812_v46 = vld [vmem:[#allocation13_spill] sm:$0xff] }
 0x19f   :  { %v4741_v8 = vpop.f32.mrf.mxu0  ;;  %3114 = vadd.xlane.f32.xlu0 %v3113_v16  ;;  %v6576_v4 = vpop.f32.mrf.mxu1  ;;  %v430_v60 = vadd.f32 %v7783_v54, %v7782_v50  ;;  %v1354_v11 = vadd.f32 %v7795_v49, %v1124_v62  ;;  %v7797_v31 = vld [vmem:[#allocation42_spill] sm:$0xff]  ;;  %v7798_v16 = vld [vmem:[#allocation39_spill] sm:$0xff]  ;;  %v7803_v62 = vld [vmem:[#allocation37_spill] sm:$0xff] }
 0x1a0   :  { %7778 = vst [vmem:[#allocation49_spill] sm:$0xff] %v6566_v9  ;;  %v1582_v36 = vadd.f32 %v4741_v8, %v1352_v17  ;;  %v6589_v21 = vadd.f32 %v7790_v7, %v1579_v5  ;;  %v3122_v57 = vsel %vm3112_vm2, %v6566_v9, 0.0  ;;  %v1126_v38 = vadd.f32 %v7797_v31, %v896_v34  ;;  %v7814_v49 = vld [vmem:[#allocation16_spill] sm:$0xff]  ;;  %v7816_v31 = vld [vmem:[#allocation41_spill] sm:$0xff] }
 0x1a1   :  { %v1518_v35 = vpop.f32.mrf.mxu0  ;;  %v6585_v14 = vpop.f32.mrf.mxu1  ;;  %v670_v20 = vadd.f32 %v7794_v2, %v430_v60  ;;  %v1125_v5 = vadd.f32 %v6477_v44, %v895_v22  ;;  %v897_v17 = vadd.f32 %v7801_v48, %v667_v47  ;;  %v669_v8 = vadd.f32 %v7802_v13, %v425_v43  ;;  %v7809_v22 = vld [vmem:[#allocation24_spill] sm:$0xff]  ;;  %v7813_v2 = vld [vmem:[#allocation31_spill] sm:$0xff] }
 0x1a2   :  { %7791 = vst [vmem:[#allocation50_spill] sm:$0xff] %v6589_v21  ;;  %v1581_v23 = vadd.f32 %v1518_v35, %v1351_v30  ;;  %v6609_v50 = vadd.f32 %v7803_v62, %v1582_v36  ;;  %v3119_v42 = vsel %vm3112_vm2, %v6589_v21, 0.0  ;;  %v440_v34 = vadd.f32 %v7806_v19, %v7805_v10  ;;  %v7808_v35 = vld [vmem:[#allocation22_spill] sm:$0xff]  ;;  %v7823_v10 = vld [vmem:[#allocation17_spill] sm:$0xff] }
 0x1a3   :  { %v4744_v53 = vpop.f32.mrf.mxu0  ;;  %3123 = vadd.xlane.f32.xlu0 %v3122_v57  ;;  %v6597_v25 = vpop.f32.mrf.mxu1  ;;  %v900_v24 = vadd.f32 %v7807_v41, %v670_v20  ;;  %v1356_v26 = vadd.f32 %v7808_v35, %v1126_v38  ;;  %v1355_v7 = vadd.f32 %v7809_v22, %v1125_v5  ;;  %v7810_v57 = vld [vmem:[#allocation43_spill] sm:$0xff]  ;;  %v899_v43 = vadd.f32 %v7812_v46, %v669_v8  ;;  %v7819_v8 = vld [vmem:[#allocation28_spill] sm:$0xff] }
 0x1a4   :  { %v6603_v56 = vadd.f32 %v7798_v16, %v1581_v23  ;;  %7804 = vst [vmem:[#allocation52_spill] sm:$0xff] %v6609_v50  ;;  %v1584_v18 = vadd.f32 %v4744_v53, %v1354_v11  ;;  %v1127_v23 = vadd.f32 %v6490_v29, %v897_v17  ;;  %v672_v20 = vadd.f32 %v7813_v2, %v440_v34 }
 0x1a5   :  { %v1528_v54 = vpop.f32.mrf.mxu0  ;;  %v6611_v60 = vpop.f32.mrf.mxu1  ;;  %v671_v11 = vadd.f32 %v7815_v3, %v7814_v49  ;;  %v3128_v27 = vsel %vm3112_vm2, %v6609_v50, 0.0  ;;  %v1130_v48 = vadd.f32 %v6499_v28, %v900_v24  ;;  %v7824_v28 = vld [vmem:[#allocation44_spill] sm:$0xff]  ;;  %v7829_v49 = vld [vmem:[#allocation46_spill] sm:$0xff] }
 0x1a6   :  { %7799 = vst [vmem:[#allocation51_spill] sm:$0xff] %v6603_v56  ;;  %v1583_v30 = vadd.f32 %v1528_v54, %v1353_v63  ;;  %v3125_v44 = vsel %vm3112_vm2, %v6603_v56, 0.0  ;;  %v6638_v38 = vadd.f32 %v7816_v31, %v1584_v18  ;;  %v1357_v62 = vadd.f32 %v7819_v8, %v1127_v23  ;;  %v7820_v18 = vld [vmem:[#allocation45_spill] sm:$0xff] }
 0x1a7   :  { %v4747_v47 = vpop.f32.mrf.mxu0  ;;  %3126 = vadd.xlane.f32.xlu1 %v3125_v44  ;;  %3120 = vadd.xlane.f32.xlu0 %v3119_v42  ;;  %v6621_v36 = vpop.f32.mrf.mxu1  ;;  %v1129_v54 = vadd.f32 %v6506_v12, %v899_v43  ;;  %v7822_v44 = vld [vmem:[#allocation15_spill] sm:$0xff]  ;;  %v901_v19 = vadd.f32 %v7823_v10, %v671_v11 }
 0x1a8   :  { %v6627_v61 = vadd.f32 %v7810_v57, %v1583_v30  ;;  %7817 = vst [vmem:[#allocation54_spill] sm:$0xff] %v6638_v38  ;;  %v1586_v29 = vadd.f32 %v4747_v47, %v1356_v26  ;;  %v902_v42 = vadd.f32 %v7822_v44, %v672_v20  ;;  %v3134_v12 = vsel %vm3112_vm2, %v6638_v38, 0.0  ;;  %v7826_v26 = vld [vmem:[#allocation30_spill] sm:$0xff]  ;;  %v7827_v57 = vld [vmem:[#allocation32_spill] sm:$0xff] }
 0x1a9   :  { %v1538_v53 = vpop.f32.mrf.mxu0  ;;  %v6635_v63 = vpop.f32.mrf.mxu1  ;;  %v1360_v22 = vadd.f32 %v7826_v26, %v1130_v48  ;;  %v1359_v46 = vadd.f32 %v7827_v57, %v1129_v54  ;;  %v1131_v2 = vadd.f32 %v6522_v6, %v901_v19 }
 0x1aa   :  { %7811 = vst [vmem:[#allocation53_spill] sm:$0xff] %v6627_v61  ;;  %v1585_v5 = vadd.f32 %v1538_v53, %v1355_v7  ;;  %v3131_v16 = vsel %vm3112_vm2, %v6627_v61, 0.0  ;;  %v6656_v24 = vadd.f32 %v7824_v28, %v1586_v29  ;;  %v1132_v43 = vadd.f32 %v6513_v0, %v902_v42 }
 0x1ab   :  { %v4750_v17 = vpop.f32.mrf.mxu0  ;;  %3132 = vadd.xlane.f32.xlu1 %v3131_v16  ;;  %3129 = vadd.xlane.f32.xlu0 %v3128_v27  ;;  %v6644_v13 = vpop.f32.mrf.mxu1 }
 0x1ac   :  { %v6649_v30 = vadd.f32 %v7820_v18, %v1585_v5  ;;  %v1588_v34 = vadd.f32 %v4750_v17, %v1358_v32  ;;  %7825 = vst [vmem:[#allocation56_spill] sm:$0xff] %v6656_v24  ;;  %v3140_v5 = vsel %vm3112_vm2, %v6656_v24, 0.0  ;;  %v1361_v32 = vadd.f32 %v7832_v59, %v1131_v2 }
 0x1ad   :  { %v1548_v41 = vpop.f32.mrf.mxu0  ;;  %v6653_v51 = vpop.f32.mrf.mxu1 }
 0x1ae   :  { %7821 = vst [vmem:[#allocation55_spill] sm:$0xff] %v6649_v30  ;;  %v1587_v47 = vadd.f32 %v1548_v41, %v1357_v62  ;;  %v3137_v35 = vsel %vm3112_vm2, %v6649_v30, 0.0  ;;  %v6672_v3 = vadd.f32 %v7829_v49, %v1588_v34 }
 0x1af   :  { %v4753_v7 = vpop.f32.mrf.mxu0  ;;  %3138 = vadd.xlane.f32.xlu1 %v3137_v35  ;;  %3135 = vadd.xlane.f32.xlu0 %v3134_v12  ;;  %v6663_v23 = vpop.f32.mrf.mxu1 }
 0x1b0   :  { %v6669_v20 = vadd.f32 %v6501_v58, %v1587_v47  ;;  %7830 = vst [vmem:[#allocation58_spill] sm:$0xff] %v6672_v3  ;;  %v1590_v27 = vadd.f32 %v4753_v7, %v1360_v22  ;;  %v7831_v58 = vld [vmem:[#allocation34_spill] sm:$0xff]  ;;  %v3146_v8 = vsel %vm3112_vm2, %v6672_v3, 0.0 }
 0x1b1   :  { %v1558_v11 = vpop.f32.mrf.mxu0  ;;  %v6674_v53 = vpop.f32.mrf.mxu1  ;;  %v1362_v16 = vadd.f32 %v7831_v58, %v1132_v43 }
 0x1b2   :  { %7828 = vst [vmem:[#allocation57_spill] sm:$0xff] %v6669_v20  ;;  %v1589_v31 = vadd.f32 %v1558_v11, %v1359_v46  ;;  %v3143_v29 = vsel %vm3112_vm2, %v6669_v20, 0.0  ;;  %v6688_v54 = vadd.f32 %v6508_v45, %v1590_v27 }
 0x1b3   :  { %v4756_v0 = vpop.f32.mrf.mxu0  ;;  %3144 = vadd.xlane.f32.xlu1 %v3143_v29  ;;  %3141 = vadd.xlane.f32.xlu0 %v3140_v5  ;;  %v2103_v6 = vpop.f32.mrf.mxu1 }
 0x1b4   :  { %v6683_v48 = vadd.f32 %v6515_v55, %v1589_v31  ;;  %7834 = vst [vmem:[#allocation18_spill] sm:$0xff] %v6688_v54  ;;  %v1592_v18 = vadd.f32 %v4756_v0, %v1362_v16  ;;  %v3152_v12 = vsel %vm3112_vm2, %v6688_v54, 0.0 }
 0x1b5   :  { %v1568_v17 = vpop.f32.mrf.mxu0  ;;  %v4834_v62 = vpop.f32.mrf.mxu1 }
 0x1b6   :  { %7833 = vst [vmem:[#allocation2_spill] sm:$0xff] %v6683_v48  ;;  %v1591_v44 = vadd.f32 %v1568_v17, %v1361_v32  ;;  %v3149_v42 = vsel %vm3112_vm2, %v6683_v48, 0.0  ;;  %v6701_v45 = vadd.f32 %v6524_v40, %v1592_v18 }
 0x1b7   :  { %v4787_v10 = vpop.f32.mrf.mxu0  ;;  %3150 = vadd.xlane.f32.xlu1 %v3149_v42  ;;  %3147 = vadd.xlane.f32.xlu0 %v3146_v8  ;;  %v2113_v19 = vpop.f32.mrf.mxu1 }
 0x1b8   :  { %v6693_v55 = vadd.f32 %v6532_v39, %v1591_v44  ;;  %v6696_v34 = vadd.f32 %v6538_v1, %v4787_v10  ;;  %7836 = vst [vmem:[#allocation10_spill] sm:$0xff] %v6701_v45  ;;  %v3158_v7 = vsel %vm3112_vm2, %v6701_v45, 0.0 }
 0x1b9   :  { %v1896_v41 = vpop.f32.mrf.mxu0  ;;  %v6698_v28 = vpop.f32.mrf.mxu1 }
 0x1ba   :  { %7835 = vst [vmem:[#allocation38_spill] sm:$0xff] %v6693_v55  ;;  %v6704_v47 = vadd.f32 %v6551_v15, %v1896_v41  ;;  %v3155_v35 = vsel %vm3112_vm2, %v6693_v55, 0.0 }
 0x1bb   :  { %v4790_v39 = vpop.f32.mrf.mxu0  ;;  %3156 = vadd.xlane.f32.xlu1 %v3155_v35  ;;  %3153 = vadd.xlane.f32.xlu0 %v3152_v12  ;;  %v6710_v1 = vpop.f32.mrf.mxu1 }
 0x1bc   :  { %v6713_v26 = vadd.f32 %v6562_v37, %v4790_v39 }
 0x1bd   :  { %v1906_v22 = vpop.f32.mrf.mxu0  ;;  %v6715_v40 = vpop.f32.mrf.mxu1 }
 0x1be   :  { %v6718_v15 = vadd.f32 %v6576_v4, %v1906_v22 }
 0x1bf   :  { %v4793_v57 = vpop.f32.mrf.mxu0  ;;  %3159 = vadd.xlane.f32.xlu0 %v3158_v7  ;;  %v6722_v46 = vpop.f32.mrf.mxu1 }
 0x1c0   :  { %v6725_v43 = vadd.f32 %v6585_v14, %v4793_v57 }
 0x1c1   :  { %v1916_v2 = vpop.f32.mrf.mxu0  ;;  %v6727_v49 = vpop.f32.mrf.mxu1 }
 0x1c2   :  { %v6730_v37 = vadd.f32 %v6597_v25, %v1916_v2 }
 0x1c3   :  { %v4796_v11 = vpop.f32.mrf.mxu0  ;;  %v6732_v27 = vpop.f32.mrf.mxu1 }
 0x1c4   :  { %v6735_v4 = vadd.f32 %v6611_v60, %v4796_v11 }
 0x1c5   :  { %v1926_v31 = vpop.f32.mrf.mxu0  ;;  %v6737_v29 = vpop.f32.mrf.mxu1 }
 0x1c6   :  { %v6740_v5 = vadd.f32 %v6621_v36, %v1926_v31 }
 0x1c7   :  { %v4799_v14 = vpop.f32.mrf.mxu0  ;;  %v6742_v0 = vpop.f32.mrf.mxu1 }
 0x1c8   :  { %v6745_v58 = vadd.f32 %v6635_v63, %v4799_v14 }
 0x1c9   :  { %v1936_v25 = vpop.f32.mrf.mxu0  ;;  %v6747_v16 = vpop.f32.mrf.mxu1 }
 0x1ca   :  { %v6750_v59 = vadd.f32 %v6644_v13, %v1936_v25 }
 0x1cb   :  { %v4802_v60 = vpop.f32.mrf.mxu0  ;;  %v6752_v32 = vpop.f32.mrf.mxu1 }
 0x1cc   :  { %v6755_v17 = vadd.f32 %v6653_v51, %v4802_v60 }
 0x1cd   :  { %v1946_v36 = vpop.f32.mrf.mxu0  ;;  %v6757_v8 = vpop.f32.mrf.mxu1 }
 0x1ce   :  { %7837 = vst [vmem:[#allocation3_spill] sm:$0xff] %v6757_v8  ;;  %v6760_v18 = vadd.f32 %v6663_v23, %v1946_v36 }
 0x1cf   :  { %v4805_v63 = vpop.f32.mrf.mxu0  ;;  %v6762_v44 = vpop.f32.mrf.mxu1 }
 0x1d0   :  { %7838 = vst [vmem:[#allocation19_spill] sm:$0xff] %v6762_v44  ;;  %v6765_v42 = vadd.f32 %v6674_v53, %v4805_v63 }
 0x1d1   :  { %v1956_v13 = vpop.f32.mrf.mxu0  ;;  %v6767_v10 = vpop.f32.mrf.mxu1 }
 0x1d2   :  { %7839 = vst [vmem:[#allocation40_spill] sm:$0xff] %v6765_v42  ;;  %7840 = vst [vmem:[#allocation6_spill] sm:$0xff] %v6767_v10  ;;  %v6769_v41 = vadd.f32 %v2103_v6, %v1956_v13 }
 0x1d3   :  { %v4808_v35 = vpop.f32.mrf.mxu0  ;;  %v6771_v51 = vpop.f32.mrf.mxu1 }
 0x1d4   :  { %7841 = vst [vmem:[#allocation23_spill] sm:$0xff] %v6769_v41  ;;  %7842 = vst [vmem:[#allocation25_spill] sm:$0xff] %v6771_v51  ;;  %v6773_v12 = vadd.f32 %v4834_v62, %v4808_v35 }
 0x1d5   :  { %v1966_v39 = vpop.f32.mrf.mxu0  ;;  %v6775_v22 = vpop.f32.mrf.mxu1 }
 0x1d6   :  { %7843 = vst [vmem:[#allocation7_spill] sm:$0xff] %v6773_v12  ;;  %7844 = vst [vmem:[#allocation36_spill] sm:$0xff] %v6775_v22  ;;  %v6777_v23 = vadd.f32 %v2113_v19, %v1966_v39 }
 0x1d7   :  { %v4839_v7 = vpop.f32.mrf.mxu0  ;;  %v6779_v57 = vpop.f32.mrf.mxu1 }
 0x1d8   :  { %7845 = vst [vmem:[#allocation12_spill] sm:$0xff] %v6777_v23  ;;  %7846 = vst [vmem:[#allocation4_spill] sm:$0xff] %v6779_v57 }
 0x1d9   :  { %v2192_v53 = vpop.f32.mrf.mxu0  ;;  %v6781_v2 = vpop.f32.mrf.mxu1 }
 0x1db   :  { %v4842_v11 = vpop.f32.mrf.mxu0  ;;  %v6783_v31 = vpop.f32.mrf.mxu1 }
 0x1dc   :  { %v2274_v8 = vadd.f32 %v4842_v11, %v6713_v26 }
 0x1dd   :  { %v2202_v6 = vpop.f32.mrf.mxu0  ;;  %v6785_v14 = vpop.f32.mrf.mxu1 }
 0x1df   :  { %v4845_v25 = vpop.f32.mrf.mxu0  ;;  %v6787_v62 = vpop.f32.mrf.mxu1 }
 0x1e1   :  { %v2212_v60 = vpop.f32.mrf.mxu0  ;;  %v6789_v36 = vpop.f32.mrf.mxu1 }
 0x1e3   :  { %v4848_v19 = vpop.f32.mrf.mxu0  ;;  %v6791_v63 = vpop.f32.mrf.mxu1 }
 0x1e5   :  { %v6793_v13 = vpop.f32.mrf.mxu0  ;;  %v6795_v35 = vpop.f32.mrf.mxu1 }
 0x1e6   :  { %7847 = vst [vmem:[#allocation27_spill] sm:$0xff] %v6795_v35 }
 0x1e7   :  { %v6797_v39 = vpop.f32.mrf.mxu0  ;;  %v6799_v55 = vpop.f32.mrf.mxu1 }
 0x1e8   :  { %7848 = vst [vmem:[#allocation20_spill] sm:$0xff] %v6799_v55  ;;  %v2271_v55 = vadd.f32 %v2192_v53, %v6704_v47  ;;  %v2439_v47 = vadd.f32 %v6715_v40, %v2274_v8 }
 0x1e9   :  { %v6801_v45 = vpop.f32.mrf.mxu0  ;;  %v6803_v48 = vpop.f32.mrf.mxu1 }
 0x1ea   :  { %7849 = vst [vmem:[#allocation21_spill] sm:$0xff] %v6803_v48 }
 0x1eb   :  { %v6805_v54 = vpop.f32.mrf.mxu0  ;;  %v6807_v20 = vpop.f32.mrf.mxu1 }
 0x1ec   :  { %7850 = vst [vmem:[#allocation42_spill] sm:$0xff] %v6807_v20 }
 0x1ed   :  { %v6809_v3 = vpop.f32.mrf.mxu0  ;;  %v6811_v30 = vpop.f32.mrf.mxu1 }
 0x1ee   :  { %7851 = vst [vmem:[#allocation39_spill] sm:$0xff] %v6811_v30 }
 0x1ef   :  { %v6813_v24 = vpop.f32.mrf.mxu0  ;;  %v6815_v61 = vpop.f32.mrf.mxu1 }
 0x1f0   :  { %7852 = vst [vmem:[#allocation8_spill] sm:$0xff] %v6813_v24  ;;  %7853 = vst [vmem:[#allocation9_spill] sm:$0xff] %v6815_v61 }
 0x1f1   :  { %v6817_v38 = vpop.f32.mrf.mxu0  ;;  %v6819_v56 = vpop.f32.mrf.mxu1 }
 0x1f2   :  { %7854 = vst [vmem:[#allocation29_spill] sm:$0xff] %v6817_v38  ;;  %7855 = vst [vmem:[#allocation37_spill] sm:$0xff] %v6819_v56  ;;  %v2272_v38 = vadd.f32 %v4839_v7, %v6696_v34  ;;  %v2273_v34 = vadd.f32 %v2202_v6, %v6718_v15  ;;  %v2278_v15 = vadd.f32 %v4848_v19, %v6735_v4 }
 0x1f3   :  { %v6821_v50 = vpop.f32.mrf.mxu0  ;;  %v6823_v21 = vpop.f32.mrf.mxu1 }
 0x1f4   :  { %7856 = vst [vmem:[#allocation14_spill] sm:$0xff] %v6821_v50  ;;  %7857 = vst [vmem:[#allocation5_spill] sm:$0xff] %v6823_v21  ;;  %v2437_v42 = vadd.f32 %v6698_v28, %v2272_v38  ;;  %v2275_v38 = vadd.f32 %v2212_v60, %v6730_v37  ;;  %v2438_v11 = vadd.f32 %v6722_v46, %v2273_v34 }
 0x1f5   :  { %v6825_v9 = vpop.f32.mrf.mxu0  ;;  %v6827_v33 = vpop.f32.mrf.mxu1  ;;  %v2443_v4 = vadd.f32 %v6737_v29, %v2278_v15 }
 0x1f6   :  { %7858 = vst [vmem:[#allocation11_spill] sm:$0xff] %v6825_v9  ;;  %7859 = vst [vmem:[#allocation22_spill] sm:$0xff] %v6827_v33  ;;  %v2440_v37 = vadd.f32 %v6732_v27, %v2275_v38  ;;  %v7866_v38 = vld [vmem:[#allocation3_spill] sm:$0xff] }
 0x1f7   :  { %v4891_v52 = vpop.f32.mrf.mxu0  ;;  %v6829_v57 = vpop.f32.mrf.mxu1 }
 0x1f8   :  { %7860 = vst [vmem:[#allocation24_spill] sm:$0xff] %v6829_v57  ;;  %v2602_v7 = vadd.f32 %v4891_v52, %v2437_v42 }
 0x1f9   :  { %v2522_v22 = vpop.f32.mrf.mxu0  ;;  %v4969_v23 = vpop.f32.mrf.mxu1 }
 0x1fb   :  { %v4894_v30 = vpop.f32.mrf.mxu0  ;;  %v3017_v20 = vpop.f32.mrf.mxu1 }
 0x1fd   :  { %v2532_v51 = vpop.f32.mrf.mxu0  ;;  %v4972_v10 = vpop.f32.mrf.mxu1 }
 0x1fe   :  { %v2603_v40 = vadd.f32 %v2532_v51, %v2438_v11 }
 0x1ff   :  { %v4897_v61 = vpop.f32.mrf.mxu0  ;;  %v6833_v50 = vpop.f32.mrf.mxu1 }
 0x200   :  { %v2768_v27 = vadd.f32 %v6787_v62, %v2603_v40 }
 0x201   :  { %v2542_v12 = vpop.f32.mrf.mxu0  ;;  %v6839_v33 = vpop.f32.mrf.mxu1 }
 0x202   :  { %v2605_v51 = vadd.f32 %v2542_v12, %v2440_v37 }
 0x203   :  { %v4900_v56 = vpop.f32.mrf.mxu0  ;;  %v6846_v44 = vpop.f32.mrf.mxu1 }
 0x204   :  { %7864 = vst [vmem:[#allocation16_spill] sm:$0xff] %v6846_v44  ;;  %v2608_v12 = vadd.f32 %v4900_v56, %v2443_v4 }
 0x205   :  { %v6831_v48 = vpop.f32.mrf.mxu0 }
 0x207   :  { %v6835_v21 = vpop.f32.mrf.mxu0 }
 0x209   :  { %v6837_v9 = vpop.f32.mrf.mxu0 }
 0x20a   :  { %7861 = vst [vmem:[#allocation43_spill] sm:$0xff] %v6837_v9  ;;  %v6855_v9 = vpop.f32.mrf.mxu1 }
 0x20b   :  { %v6841_v57 = vpop.f32.mrf.mxu0 }
 0x20c   :  { %7862 = vst [vmem:[#allocation13_spill] sm:$0xff] %v6841_v57  ;;  %v2436_v57 = vadd.f32 %v6710_v1, %v2271_v55  ;;  %v6866_v26 = vpop.f32.mrf.mxu1  ;;  %v2767_v55 = vadd.f32 %v6781_v2, %v2602_v7  ;;  %v2604_v1 = vadd.f32 %v4894_v30, %v2439_v47  ;;  %v7865_v7 = vld [vmem:[#allocation27_spill] sm:$0xff] }
 0x20d   :  { %v6844_v41 = vpop.f32.mrf.mxu0  ;;  %v2773_v47 = vadd.f32 %v7865_v7, %v2608_v12 }
 0x20e   :  { %7863 = vst [vmem:[#allocation31_spill] sm:$0xff] %v6844_v41  ;;  %v2276_v41 = vadd.f32 %v4845_v25, %v6725_v43  ;;  %v2601_v53 = vadd.f32 %v2522_v22, %v2436_v57  ;;  %v2277_v22 = vadd.f32 %v6793_v13, %v6740_v5  ;;  %v6876_v46 = vpop.f32.mrf.mxu1  ;;  %v2769_v30 = vadd.f32 %v6785_v14, %v2604_v1 }
 0x20f   :  { %v6849_v24 = vpop.f32.mrf.mxu0 }
 0x210   :  { %v2441_v52 = vadd.f32 %v6727_v49, %v2276_v41  ;;  %v2766_v42 = vadd.f32 %v6783_v31, %v2601_v53  ;;  %v2280_v41 = vadd.f32 %v6797_v39, %v6745_v58  ;;  %v2442_v14 = vadd.f32 %v6742_v0, %v2277_v22  ;;  %v6893_v58 = vpop.f32.mrf.mxu1  ;;  %v7873_v22 = vld [vmem:[#allocation23_spill] sm:$0xff] }
 0x211   :  { %v6853_v35 = vpop.f32.mrf.mxu0  ;;  %v2282_v0 = vadd.f32 %v6805_v54, %v6755_v17 }
 0x212   :  { %v2606_v57 = vadd.f32 %v4897_v61, %v2441_v52  ;;  %v2445_v13 = vadd.f32 %v6747_v16, %v2280_v41  ;;  %v2281_v16 = vadd.f32 %v6809_v3, %v6760_v18  ;;  %v7869_v3 = vld [vmem:[#allocation43_spill] sm:$0xff]  ;;  %v7870_v52 = vld [vmem:[#allocation20_spill] sm:$0xff] }
 0x213   :  { %v6860_v44 = vpop.f32.mrf.mxu0  ;;  %v2447_v11 = vadd.f32 %v7866_v38, %v2282_v0 }
 0x214   :  { %v2771_v29 = vadd.f32 %v6789_v36, %v2606_v57  ;;  %v2607_v36 = vadd.f32 %v6831_v48, %v2442_v14  ;;  %v2610_v54 = vadd.f32 %v6835_v21, %v2445_v13  ;;  %v7874_v57 = vld [vmem:[#allocation29_spill] sm:$0xff]  ;;  %v7877_v14 = vld [vmem:[#allocation6_spill] sm:$0xff] }
 0x215   :  { %v6864_v28 = vpop.f32.mrf.mxu0  ;;  %v7881_v0 = vld [vmem:[#allocation31_spill] sm:$0xff] }
 0x216   :  { %v2772_v15 = vadd.f32 %v7870_v52, %v2607_v36 }
 0x217   :  { %v4943_v43 = vpop.f32.mrf.mxu0 }
 0x218   :  { %v2932_v8 = vadd.f32 %v4943_v43, %v2767_v55  ;;  %v7868_v55 = vld [vmem:[#allocation8_spill] sm:$0xff] }
 0x219   :  { %v2852_v6 = vpop.f32.mrf.mxu0 }
 0x21a   :  { %v2931_v2 = vadd.f32 %v2852_v6, %v2766_v42  ;;  %v6879_v49 = vadd.f32 %v4969_v23, %v2932_v8  ;;  %v2279_v23 = vadd.f32 %v6801_v45, %v6750_v59  ;;  %v2770_v45 = vadd.f32 %v6791_v63, %v2605_v51  ;;  %v4984_v63 = vpop.f32.mrf.mxu1  ;;  %v7871_v42 = vld [vmem:[#allocation16_spill] sm:$0xff]  ;;  %v7872_v8 = vld [vmem:[#allocation19_spill] sm:$0xff]  ;;  %v7876_v51 = vld [vmem:[#allocation13_spill] sm:$0xff] }
 0x21b   :  { %v4946_v31 = vpop.f32.mrf.mxu0  ;;  %v2446_v37 = vadd.f32 %v7872_v8, %v2281_v16  ;;  %v2283_v6 = vadd.f32 %v7874_v57, %v7873_v22  ;;  %v7884_v16 = vld [vmem:[#allocation11_spill] sm:$0xff] }
 0x21c   :  { %v2934_v25 = vadd.f32 %v4946_v31, %v2769_v30  ;;  %v6885_v5 = vadd.f32 %v3017_v20, %v2931_v2  ;;  %v3164_v61 = vsel %vm3112_vm2, %v6879_v49, 0.0  ;;  %v2444_v34 = vadd.f32 %v6752_v32, %v2279_v23  ;;  %v7867_v32 = vld [vmem:[#allocation40_spill] sm:$0xff]  ;;  %v7875_v30 = vld [vmem:[#allocation21_spill] sm:$0xff]  ;;  %v3067_v41 = vpop.f32.mrf.mxu1 }
 0x21d   :  { %v2862_v60 = vpop.f32.mrf.mxu0  ;;  %3165 = vadd.xlane.f32.xlu0 %v3164_v61  ;;  %v2284_v1 = vadd.f32 %v7868_v55, %v7867_v32  ;;  %v2775_v2 = vadd.f32 %v7875_v30, %v2610_v54  ;;  %v2612_v31 = vadd.f32 %v7876_v51, %v2447_v11  ;;  %v7886_v32 = vld [vmem:[#allocation36_spill] sm:$0xff] }
 0x21e   :  { %v2933_v19 = vadd.f32 %v2862_v60, %v2768_v27  ;;  %v6895_v62 = vadd.f32 %v4972_v10, %v2934_v25  ;;  %v3161_v20 = vsel %vm3112_vm2, %v6885_v5, 0.0  ;;  %v2609_v18 = vadd.f32 %v7869_v3, %v2444_v34  ;;  %v7879_v60 = vld [vmem:[#allocation14_spill] sm:$0xff]  ;;  %v7883_v34 = vld [vmem:[#allocation12_spill] sm:$0xff] }
 0x21f   :  { %v4949_v59 = vpop.f32.mrf.mxu0  ;;  %3162 = vadd.xlane.f32.xlu1 %v3161_v20  ;;  %v2449_v23 = vadd.f32 %v7877_v14, %v2284_v1  ;;  %v2285_v54 = vadd.f32 %v7884_v16, %v7883_v34 }
 0x220   :  { %v2936_v39 = vadd.f32 %v4949_v59, %v2771_v29  ;;  %v6905_v56 = vadd.f32 %v6833_v50, %v2933_v19  ;;  %v3170_v10 = vsel %vm3112_vm2, %v6895_v62, 0.0  ;;  %v7878_v29 = vld [vmem:[#allocation7_spill] sm:$0xff]  ;;  %v7880_v19 = vld [vmem:[#allocation42_spill] sm:$0xff] }
 0x221   :  { %v2872_v17 = vpop.f32.mrf.mxu0  ;;  %3171 = vadd.xlane.f32.xlu0 %v3170_v10  ;;  %v2286_v12 = vadd.f32 %v7879_v60, %v7878_v29  ;;  %v2774_v20 = vadd.f32 %v7880_v19, %v2609_v18  ;;  %v7887_v18 = vld [vmem:[#allocation9_spill] sm:$0xff] }
 0x222   :  { %v2935_v48 = vadd.f32 %v2872_v17, %v2770_v45  ;;  %v6915_v53 = vadd.f32 %v6839_v33, %v2936_v39  ;;  %v3167_v50 = vsel %vm3112_vm2, %v6905_v56, 0.0  ;;  %v2611_v45 = vadd.f32 %v7881_v0, %v2446_v37  ;;  %v7882_v39 = vld [vmem:[#allocation25_spill] sm:$0xff] }
 0x223   :  { %v4952_v21 = vpop.f32.mrf.mxu0  ;;  %3168 = vadd.xlane.f32.xlu1 %v3167_v50  ;;  %v2448_v10 = vadd.f32 %v7882_v39, %v2283_v6  ;;  %v2614_v17 = vadd.f32 %v6849_v24, %v2449_v23  ;;  %v2451_v55 = vadd.f32 %v7886_v32, %v2286_v12 }
 0x224   :  { %v2938_v43 = vadd.f32 %v4952_v21, %v2773_v47  ;;  %v6925_v40 = vadd.f32 %v7871_v42, %v2935_v48  ;;  %v3176_v33 = vsel %vm3112_vm2, %v6915_v53, 0.0  ;;  %v4987_v47 = vpop.f32.mrf.mxu1  ;;  %v7885_v48 = vld [vmem:[#allocation39_spill] sm:$0xff]  ;;  %v2776_v24 = vadd.f32 %v7887_v18, %v2611_v45  ;;  %v7889_v42 = vld [vmem:[#allocation37_spill] sm:$0xff] }
 0x225   :  { %v2882_v4 = vpop.f32.mrf.mxu0  ;;  %3177 = vadd.xlane.f32.xlu0 %v3176_v33  ;;  %v2777_v50 = vadd.f32 %v7885_v48, %v2612_v31  ;;  %v2613_v1 = vadd.f32 %v6853_v35, %v2448_v10  ;;  %v2779_v33 = vadd.f32 %v7889_v42, %v2614_v17  ;;  %v2616_v35 = vadd.f32 %v6860_v44, %v2451_v55 }
 0x226   :  { %v2937_v27 = vadd.f32 %v2882_v4, %v2772_v15  ;;  %v6935_v25 = vadd.f32 %v6855_v9, %v2938_v43  ;;  %v3173_v61 = vsel %vm3112_vm2, %v6925_v40, 0.0  ;;  %v3077_v37 = vpop.f32.mrf.mxu1 }
 0x227   :  { %v4955_v13 = vpop.f32.mrf.mxu0  ;;  %3174 = vadd.xlane.f32.xlu1 %v3173_v61 }
 0x228   :  { %v2940_v59 = vadd.f32 %v4955_v13, %v2775_v2  ;;  %v6945_v36 = vadd.f32 %v6866_v26, %v2937_v27  ;;  %v3182_v9 = vsel %vm3112_vm2, %v6935_v25, 0.0  ;;  %v4990_v44 = vpop.f32.mrf.mxu1 }
 0x229   :  { %v2892_v7 = vpop.f32.mrf.mxu0  ;;  %3183 = vadd.xlane.f32.xlu0 %v3182_v9 }
 0x22a   :  { %v2939_v38 = vadd.f32 %v2892_v7, %v2774_v20  ;;  %v6955_v11 = vadd.f32 %v6876_v46, %v2940_v59  ;;  %v3179_v26 = vsel %vm3112_vm2, %v6945_v36, 0.0  ;;  %v7888_v46 = vld [vmem:[#allocation4_spill] sm:$0xff]  ;;  %v3087_v45 = vpop.f32.mrf.mxu1 }
 0x22b   :  { %v4958_v3 = vpop.f32.mrf.mxu0  ;;  %3180 = vadd.xlane.f32.xlu1 %v3179_v26  ;;  %v2450_v43 = vadd.f32 %v7888_v46, %v2285_v54  ;;  %v3115_v54 = vpop.xlane.xlu0 %3114 }
 0x22c   :  { %v2942_v21 = vadd.f32 %v4958_v3, %v2777_v50  ;;  %v6963_v52 = vadd.f32 %v6893_v58, %v2939_v38  ;;  %v3188_v15 = vsel %vm3112_vm2, %v6955_v11, 0.0  ;;  %v7890_v58 = vld [vmem:[#allocation5_spill] sm:$0xff] }
 0x22d   :  { %v2902_v8 = vpop.f32.mrf.mxu0  ;;  %3189 = vadd.xlane.f32.xlu0 %v3188_v15  ;;  %v2778_v30 = vadd.f32 %v7890_v58, %v2613_v1  ;;  %v2615_v4 = vadd.f32 %v6864_v28, %v2450_v43  ;;  %v7893_v28 = vld [vmem:[#allocation24_spill] sm:$0xff] }
 0x22e   :  { %v2941_v22 = vadd.f32 %v2902_v8, %v2776_v24  ;;  %v6970_v57 = vadd.f32 %v4984_v63, %v2942_v21  ;;  %v3185_v6 = vsel %vm3112_vm2, %v6963_v52, 0.0  ;;  %v7891_v63 = vld [vmem:[#allocation22_spill] sm:$0xff] }
 0x22f   :  { %v4961_v2 = vpop.f32.mrf.mxu0  ;;  %3186 = vadd.xlane.f32.xlu1 %v3185_v6  ;;  %v2781_v14 = vadd.f32 %v7891_v63, %v2616_v35  ;;  %v2780_v19 = vadd.f32 %v7893_v28, %v2615_v4  ;;  %v3124_v17 = vpop.xlane.xlu0 %3123  ;;  %v7897_v6 = vld [vmem:[#allocation47_spill] sm:$0xff] }
 0x230   :  { %v2944_v51 = vadd.f32 %v4961_v2, %v2779_v33  ;;  %v6976_v31 = vadd.f32 %v3067_v41, %v2941_v22  ;;  %v3194_v27 = vsel %vm3112_vm2, %v6970_v57, 0.0 }
 0x231   :  { %v2912_v61 = vpop.f32.mrf.mxu0  ;;  %3195 = vadd.xlane.f32.xlu0 %v3194_v27 }
 0x232   :  { %v2943_v23 = vadd.f32 %v2912_v61, %v2778_v30  ;;  %v6981_v29 = vadd.f32 %v4987_v47, %v2944_v51  ;;  %v3191_v60 = vsel %vm3112_vm2, %v6976_v31, 0.0  ;;  %v3118_v47 = vpop.xlane.xlu1 %3117  ;;  %v7898_v61 = vld [vmem:[#allocation48_spill] sm:$0xff] }
 0x233   :  { %v4964_v12 = vpop.f32.mrf.mxu0  ;;  %3192 = vadd.xlane.f32.xlu1 %v3191_v60  ;;  %v3121_v7 = vpop.xlane.xlu0 %3120 }
 0x234   :  { %7892 = vst [vmem:[#allocation33_spill] sm:$0xff] %v6981_v29  ;;  %v2946_v41 = vadd.f32 %v4964_v12, %v2781_v14  ;;  %v6986_v20 = vadd.f32 %v3077_v37, %v2943_v23  ;;  %v3200_v13 = vsel %vm3112_vm2, %v6981_v29, 0.0 }
 0x235   :  { %v2922_v0 = vpop.f32.mrf.mxu0  ;;  %3201 = vadd.xlane.f32.xlu0 %v3200_v13  ;;  %v7899_v13 = vld [vmem:[#allocation49_spill] sm:$0xff] }
 0x236   :  { %7894 = vst [vmem:[#allocation41_spill] sm:$0xff] %v6986_v20  ;;  %v2945_v59 = vadd.f32 %v2922_v0, %v2780_v19  ;;  %v6990_v9 = vadd.f32 %v4990_v44, %v2946_v41  ;;  %v3197_v39 = vsel %vm3112_vm2, %v6986_v20, 0.0  ;;  %v3127_v50 = vpop.xlane.xlu1 %3126 }
 0x237   :  { %3198 = vadd.xlane.f32.xlu1 %v3197_v39  ;;  %v3130_v48 = vpop.xlane.xlu0 %3129 }
 0x238   :  { %7895 = vst [vmem:[#allocation26_spill] sm:$0xff] %v6990_v9  ;;  %v6994_v10 = vadd.f32 %v3087_v45, %v2945_v59  ;;  %v3206_v34 = vsel %vm3112_vm2, %v6990_v9, 0.0 }
 0x239   :  { %3207 = vadd.xlane.f32.xlu0 %v3206_v34  ;;  %v7900_v34 = vld [vmem:[#allocation50_spill] sm:$0xff] }
 0x23a   :  { %7896 = vst [vmem:[#allocation28_spill] sm:$0xff] %v6994_v10  ;;  %v3203_v16 = vsel %vm3112_vm2, %v6994_v10, 0.0  ;;  %v3133_v26 = vpop.xlane.xlu1 %3132 }
 0x23b   :  { %3204 = vadd.xlane.f32.xlu1 %v3203_v16  ;;  %v3136_v38 = vpop.xlane.xlu0 %3135 }
 0x23e   :  { %v7002_v55 = vpop.xlane.xlu1 %3138 }
 0x23f   :  { %v7000_v32 = vpop.xlane.xlu0 %3141 }
 0x242   :  { %v7006_v3 = vpop.xlane.xlu1 %3144 }
 0x243   :  { %v7004_v1 = vpop.xlane.xlu0 %3147 }
 0x246   :  { %v7010_v24 = vpop.xlane.xlu1 %3150 }
 0x247   :  { %v7008_v18 = vpop.xlane.xlu0 %3153 }
 0x24a   :  { %v7014_v15 = vpop.xlane.xlu1 %3156 }
 0x24b   :  { %v7012_v21 = vpop.xlane.xlu0 %3159 }
 0x2a6   :  { %v3166_v46 = vpop.xlane.xlu0 %3165 }
 0x2a7   :  { %v3210_v43 = vadd.f32 %v3166_v46, %v3118_v47 }
 0x2a8   :  { %v3163_v42 = vpop.xlane.xlu1 %3162 }
 0x2a9   :  { %v7016_v33 = vmul.f32 0.055555556, %v3210_v43  ;;  %v3209_v8 = vadd.f32 %v3163_v42, %v3115_v54 }
 0x2aa   :  { %v3172_v37 = vpop.xlane.xlu0 %3171 }
 0x2ab   :  { %v7018_v35 = vmul.f32 0.055555556, %v3209_v8  ;;  %v3212_v22 = vadd.f32 %v3172_v37, %v3124_v17  ;;  %v3242_v58 = vsub.f32 %v7897_v6, %v7016_v33  ;;  %v3338_v30 = vsub.f32 %v6879_v49, %v7016_v33 }
 0x2ac   :  { %v3169_v2 = vpop.xlane.xlu1 %3168 }
 0x2ad   :  { %v7024_v4 = vmul.f32 0.055555556, %v3212_v22  ;;  %v3211_v51 = vadd.f32 %v3169_v2, %v3121_v7  ;;  %v3258_v27 = vmul.f32 %v3242_v58, %v3242_v58  ;;  %v3241_v44 = vsub.f32 %v7898_v61, %v7018_v35 }
 0x2ae   :  { %v3178_v63 = vpop.xlane.xlu0 %3177  ;;  %v3354_v14 = vmul.f32 %v3338_v30, %v3338_v30  ;;  %v3337_v23 = vsub.f32 %v6885_v5, %v7018_v35  ;;  %v7901_v30 = vld [vmem:[#allocation52_spill] sm:$0xff] }
 0x2af   :  { %v7030_v60 = vmul.f32 0.055555556, %v3211_v51  ;;  %v3214_v12 = vadd.f32 %v3178_v63, %v3130_v48  ;;  %v3276_v28 = vsel %vm3112_vm2, %v3258_v27, 0.0  ;;  %v3257_v19 = vmul.f32 %v3241_v44, %v3241_v44  ;;  %v7902_v63 = vld [vmem:[#allocation51_spill] sm:$0xff] }
 0x2b0   :  { %v3175_v41 = vpop.xlane.xlu1 %3174  ;;  %3277 = vadd.xlane.f32.xlu0 %v3276_v28  ;;  %v3244_v0 = vsub.f32 %v7899_v13, %v7024_v4  ;;  %v3353_v39 = vmul.f32 %v3337_v23, %v3337_v23  ;;  %v3372_v17 = vsel %vm3112_vm2, %v3354_v14, 0.0  ;;  %v3340_v47 = vsub.f32 %v6895_v62, %v7024_v4 }
 0x2b1   :  { %v3213_v45 = vadd.f32 %v3175_v41, %v3127_v50  ;;  %v3273_v59 = vsel %vm3112_vm2, %v3257_v19, 0.0  ;;  %v3243_v16 = vsub.f32 %v7900_v34, %v7030_v60  ;;  %v7038_v54 = vmul.f32 0.055555556, %v3214_v12 }
 0x2b2   :  { %3274 = vadd.xlane.f32.xlu1 %v3273_v59  ;;  %v3260_v7 = vmul.f32 %v3244_v0, %v3244_v0  ;;  %v3184_v48 = vpop.xlane.xlu0 %3183  ;;  %v3369_v50 = vsel %vm3112_vm2, %v3353_v39, 0.0  ;;  %v3339_v42 = vsub.f32 %v6905_v56, %v7030_v60  ;;  %v3356_v58 = vmul.f32 %v3340_v47, %v3340_v47 }
 0x2b3   :  { %v7043_v46 = vmul.f32 0.055555556, %v3213_v45  ;;  %v3259_v43 = vmul.f32 %v3243_v16, %v3243_v16  ;;  %v3216_v37 = vadd.f32 %v3184_v48, %v3136_v38  ;;  %v3246_v2 = vsub.f32 %v7901_v30, %v7038_v54 }
 0x2b4   :  { %3373 = vadd.xlane.f32.xlu0 %v3372_v17  ;;  %v3181_v8 = vpop.xlane.xlu1 %3180  ;;  %v3282_v22 = vsel %vm3112_vm2, %v3260_v7, 0.0  ;;  %v3355_v44 = vmul.f32 %v3339_v42, %v3339_v42  ;;  %v3378_v12 = vsel %vm3112_vm2, %v3356_v58, 0.0  ;;  %v3342_v28 = vsub.f32 %v6915_v53, %v7038_v54  ;;  %v7903_v7 = vld [vmem:[#allocation54_spill] sm:$0xff]  ;;  %v7904_v42 = vld [vmem:[#allocation53_spill] sm:$0xff] }
 0x2b5   :  { %v3215_v51 = vadd.f32 %v3181_v8, %v3133_v26  ;;  %v3279_v27 = vsel %vm3112_vm2, %v3259_v43, 0.0  ;;  %v3245_v14 = vsub.f32 %v7902_v63, %v7043_v46  ;;  %v7054_v23 = vmul.f32 0.055555556, %v3216_v37 }
 0x2b6   :  { %3370 = vadd.xlane.f32.xlu1 %v3369_v50  ;;  %v3262_v38 = vmul.f32 %v3246_v2, %v3246_v2  ;;  %v3190_v19 = vpop.xlane.xlu0 %3189  ;;  %v3375_v26 = vsel %vm3112_vm2, %v3355_v44, 0.0  ;;  %v3341_v45 = vsub.f32 %v6925_v40, %v7043_v46  ;;  %v3358_v17 = vmul.f32 %v3342_v28, %v3342_v28 }
 0x2b7   :  { %v7059_v41 = vmul.f32 0.055555556, %v3215_v51  ;;  %v3261_v0 = vmul.f32 %v3245_v14, %v3245_v14  ;;  %v3218_v39 = vadd.f32 %v3190_v19, %v7000_v32  ;;  %v3248_v47 = vsub.f32 %v7903_v7, %v7054_v23  ;;  %v7905_v19 = vld [vmem:[#allocation56_spill] sm:$0xff] }
 0x2b8   :  { %3283 = vadd.xlane.f32.xlu0 %v3282_v22  ;;  %v3187_v59 = vpop.xlane.xlu1 %3186  ;;  %v3288_v16 = vsel %vm3112_vm2, %v3262_v38, 0.0  ;;  %v3357_v43 = vmul.f32 %v3341_v45, %v3341_v45  ;;  %v3384_v32 = vsel %vm3112_vm2, %v3358_v17, 0.0  ;;  %v3344_v58 = vsub.f32 %v6935_v25, %v7054_v23 }
 0x2b9   :  { %v3217_v48 = vadd.f32 %v3187_v59, %v7002_v55  ;;  %v3285_v50 = vsel %vm3112_vm2, %v3261_v0, 0.0  ;;  %v3247_v8 = vsub.f32 %v7904_v42, %v7059_v41  ;;  %v7072_v37 = vmul.f32 0.055555556, %v3218_v39  ;;  %v7906_v39 = vld [vmem:[#allocation55_spill] sm:$0xff] }
 0x2ba   :  { %3280 = vadd.xlane.f32.xlu1 %v3279_v27  ;;  %v3264_v22 = vmul.f32 %v3248_v47, %v3248_v47  ;;  %v3196_v2 = vpop.xlane.xlu0 %3195  ;;  %v3381_v55 = vsel %vm3112_vm2, %v3357_v43, 0.0  ;;  %v3343_v44 = vsub.f32 %v6945_v36, %v7059_v41  ;;  %v3360_v28 = vmul.f32 %v3344_v58, %v3344_v58 }
 0x2bb   :  { %v7077_v51 = vmul.f32 0.055555556, %v3217_v48  ;;  %v3263_v27 = vmul.f32 %v3247_v8, %v3247_v8  ;;  %v3346_v17 = vsub.f32 %v6955_v11, %v7072_v37 }
 0x2bc   :  { %3379 = vadd.xlane.f32.xlu0 %v3378_v12  ;;  %v3193_v14 = vpop.xlane.xlu1 %3192  ;;  %v3220_v12 = vadd.f32 %v3196_v2, %v7004_v1  ;;  %v3294_v38 = vsel %vm3112_vm2, %v3264_v22, 0.0  ;;  %v3359_v59 = vmul.f32 %v3343_v44, %v3343_v44  ;;  %v3390_v47 = vsel %vm3112_vm2, %v3360_v28, 0.0  ;;  %v7908_v28 = vld [vmem:[#allocation57_spill] sm:$0xff] }
 0x2bd   :  { %v3219_v0 = vadd.f32 %v3193_v14, %v7006_v3  ;;  %v3291_v45 = vsel %vm3112_vm2, %v3263_v27, 0.0  ;;  %v3362_v58 = vmul.f32 %v3346_v17, %v3346_v17  ;;  %v7907_v27 = vld [vmem:[#allocation58_spill] sm:$0xff]  ;;  %v5044_v17 = vmov 0  }
 0x2be   :  { %3376 = vadd.xlane.f32.xlu1 %v3375_v26  ;;  %v3250_v26 = vsub.f32 %v7905_v19, %v7072_v37  ;;  %v7092_v1 = vmul.f32 0.055555556, %v3220_v12  ;;  %v3387_v3 = vsel %vm3112_vm2, %v3359_v59, 0.0  ;;  %5002 = vset.pattern.permute.xlu0 %v5044_v17 }
 0x2bf   :  { %v7095_v43 = vmul.f32 0.055555556, %v3219_v0  ;;  %v3396_v0 = vsel %vm3112_vm2, %v3362_v58, 0.0  ;;  %5001 = vset.pattern.permute.xlu1 %v5044_v17  ;;  %v7909_v58 = vld [vmem:[#allocation18_spill] sm:$0xff] }
 0x2c0   :  { %3289 = vadd.xlane.f32.xlu0 %v3288_v16  ;;  %v3249_v16 = vsub.f32 %v7906_v39, %v7077_v51  ;;  %v3266_v48 = vmul.f32 %v3250_v26, %v3250_v26  ;;  %v3199_v22 = vpop.xlane.xlu1 %3198  ;;  %v3252_v44 = vsub.f32 %v7907_v27, %v7092_v1  ;;  %v3348_v59 = vsub.f32 %v6970_v57, %v7092_v1 }
 0x2c1   :  { %v3221_v14 = vadd.f32 %v3199_v22, %v7010_v24  ;;  %v3251_v26 = vsub.f32 %v7908_v28, %v7095_v43 }
 0x2c2   :  { %3286 = vadd.xlane.f32.xlu1 %v3285_v50  ;;  %v3202_v50 = vpop.xlane.xlu0 %3201  ;;  %v3265_v8 = vmul.f32 %v3249_v16, %v3249_v16  ;;  %v3364_v22 = vmul.f32 %v3348_v59, %v3348_v59 }
 0x2c3   :  { %v3222_v2 = vadd.f32 %v3202_v50, %v7008_v18  ;;  %v3268_v18 = vmul.f32 %v3252_v44, %v3252_v44  ;;  %v7113_v24 = vmul.f32 0.055555556, %v3221_v14  ;;  %v3347_v50 = vsub.f32 %v6976_v31, %v7095_v43 }
 0x2c4   :  { %3385 = vadd.xlane.f32.xlu0 %v3384_v32  ;;  %v3345_v32 = vsub.f32 %v6963_v52, %v7077_v51  ;;  %v3297_v12 = vsel %vm3112_vm2, %v3265_v8, 0.0 }
 0x2c5   :  { %v3363_v14 = vmul.f32 %v3347_v50, %v3347_v50  ;;  %v3349_v17 = vsub.f32 %v6986_v20, %v7113_v24  ;;  %v7911_v50 = vld [vmem:[#allocation10_spill] sm:$0xff] }
 0x2c6   :  { %3382 = vadd.xlane.f32.xlu1 %v3381_v55  ;;  %v3300_v55 = vsel %vm3112_vm2, %v3266_v48, 0.0  ;;  %v3208_v16 = vpop.xlane.xlu0 %3207  ;;  %v3267_v48 = vmul.f32 %v3251_v26, %v3251_v26 }
 0x2c7   :  { %v3224_v8 = vadd.f32 %v3208_v16, %v7012_v21  ;;  %v3402_v21 = vsel %vm3112_vm2, %v3364_v22, 0.0  ;;  %v7912_v22 = vld [vmem:[#allocation38_spill] sm:$0xff] }
 0x2c8   :  { %3295 = vadd.xlane.f32.xlu0 %v3294_v38  ;;  %v3361_v38 = vmul.f32 %v3345_v32, %v3345_v32  ;;  %v3306_v32 = vsel %vm3112_vm2, %v3268_v18, 0.0  ;;  %v3303_v44 = vsel %vm3112_vm2, %v3267_v48, 0.0 }
 0x2c9   :  { %v7126_v26 = vmul.f32 0.055555556, %v3224_v8 }
 0x2ca   :  { %3292 = vadd.xlane.f32.xlu1 %v3291_v45  ;;  %v7109_v45 = vmul.f32 0.055555556, %v3222_v2 }
 0x2cc   :  { %3391 = vadd.xlane.f32.xlu0 %v3390_v47  ;;  %v3393_v47 = vsel %vm3112_vm2, %v3361_v38, 0.0  ;;  %v3254_v2 = vsub.f32 %v7909_v58, %v7109_v45  ;;  %v3350_v18 = vsub.f32 %v6981_v29, %v7109_v45 }
 0x2ce   :  { %3388 = vadd.xlane.f32.xlu1 %v3387_v3  ;;  %v3205_v3 = vpop.xlane.xlu1 %3204  ;;  %v3366_v48 = vmul.f32 %v3350_v18, %v3350_v18 }
 0x2d0   :  { %3301 = vadd.xlane.f32.xlu0 %v3300_v55  ;;  %v3223_v55 = vadd.f32 %v3205_v3, %v7014_v15  ;;  %v3399_v15 = vsel %vm3112_vm2, %v3363_v14, 0.0  ;;  %v3256_v3 = vsub.f32 %v7911_v50, %v7126_v26  ;;  %v3352_v14 = vsub.f32 %v6990_v9, %v7126_v26 }
 0x2d2   :  { %3298 = vadd.xlane.f32.xlu1 %v3297_v12  ;;  %v7910_v12 = vld [vmem:[#allocation2_spill] sm:$0xff]  ;;  %v7131_v59 = vmul.f32 0.055555556, %v3223_v55  ;;  %v3408_v55 = vsel %vm3112_vm2, %v3366_v48, 0.0 }
 0x2d3   :  { %v3253_v38 = vsub.f32 %v7910_v12, %v7113_v24 }
 0x2d4   :  { %3397 = vadd.xlane.f32.xlu0 %v3396_v0  ;;  %v3270_v0 = vmul.f32 %v3254_v2, %v3254_v2  ;;  %v3255_v2 = vsub.f32 %v7912_v22, %v7131_v59 }
 0x2d5   :  { %v3269_v16 = vmul.f32 %v3253_v38, %v3253_v38 }
 0x2d6   :  { %3394 = vadd.xlane.f32.xlu1 %v3393_v47  ;;  %v3312_v47 = vsel %vm3112_vm2, %v3270_v0, 0.0  ;;  %v3351_v0 = vsub.f32 %v6994_v10, %v7131_v59 }
 0x2d7   :  { %v3309_v8 = vsel %vm3112_vm2, %v3269_v16, 0.0 }
 0x2d8   :  { %3307 = vadd.xlane.f32.xlu0 %v3306_v32  ;;  %v3365_v32 = vmul.f32 %v3349_v17, %v3349_v17  ;;  %v3367_v17 = vmul.f32 %v3351_v0, %v3351_v0 }
 0x2da   :  { %3304 = vadd.xlane.f32.xlu1 %v3303_v44  ;;  %v3272_v44 = vmul.f32 %v3256_v3, %v3256_v3  ;;  %v3405_v38 = vsel %vm3112_vm2, %v3365_v32, 0.0  ;;  %v3411_v48 = vsel %vm3112_vm2, %v3367_v17, 0.0 }
 0x2dc   :  { %3403 = vadd.xlane.f32.xlu0 %v3402_v21  ;;  %v3271_v21 = vmul.f32 %v3255_v2, %v3255_v2  ;;  %v3318_v18 = vsel %vm3112_vm2, %v3272_v44, 0.0 }
 0x2de   :  { %3400 = vadd.xlane.f32.xlu1 %v3399_v15  ;;  %v3368_v15 = vmul.f32 %v3352_v14, %v3352_v14  ;;  %v3315_v16 = vsel %vm3112_vm2, %v3271_v21, 0.0 }
 0x2e0   :  { %3313 = vadd.xlane.f32.xlu0 %v3312_v47  ;;  %v3414_v47 = vsel %vm3112_vm2, %v3368_v15, 0.0 }
 0x2e2   :  { %3310 = vadd.xlane.f32.xlu1 %v3309_v8 }
 0x2e4   :  { %3409 = vadd.xlane.f32.xlu0 %v3408_v55 }
 0x2e6   :  { %3406 = vadd.xlane.f32.xlu1 %v3405_v38 }
 0x2e8   :  { %3319 = vadd.xlane.f32.xlu0 %v3318_v18 }
 0x2ea   :  { %3316 = vadd.xlane.f32.xlu1 %v3315_v16 }
 0x2ec   :  { %3415 = vadd.xlane.f32.xlu0 %v3414_v47 }
 0x2ee   :  { %3412 = vadd.xlane.f32.xlu1 %v3411_v48 }
 0x339   :  { %v3278_v3 = vpop.xlane.xlu0 %3277 }
 0x33b   :  { %v3275_v8 = vpop.xlane.xlu1 %3274 }
 0x33d   :  { %v3374_v32 = vpop.xlane.xlu0 %3373 }
 0x33e   :  { %v3418_v2 = vadd.f32 %v3374_v32, %v3278_v3 }
 0x33f   :  { %v3371_v55 = vpop.xlane.xlu1 %3370 }
 0x340   :  { %v3434_v38 = vmul.f32 0.055555556, %v3418_v2  ;;  %v3417_v10 = vadd.f32 %v3371_v55, %v3275_v8 }
 0x341   :  { %v3284_v44 = vpop.xlane.xlu0 %3283 }
 0x342   :  { %v3466_v14 = vadd.f32 0.001, %v3434_v38  ;;  %v3433_v18 = vmul.f32 0.055555556, %v3417_v10  ;;  %v7155_v10 = vld [vmem:[%s7522_s2 + $0x8] sm:$0xff] }
 0x343   :  { %v3281_v22 = vpop.xlane.xlu1 %3280 }
 0x344   :  { %5005 = vrsqrt.f32 %v3466_v14  ;;  %v3465_v21 = vadd.f32 0.001, %v3433_v18 }
 0x345   :  { %v3380_v0 = vpop.xlane.xlu0 %3379 }
 0x346   :  { %5007 = vrsqrt.f32 %v3465_v21  ;;  %v3420_v15 = vadd.f32 %v3380_v0, %v3284_v44 }
 0x347   :  { %v3377_v16 = vpop.xlane.xlu1 %3376 }
 0x348   :  { %v3436_v47 = vmul.f32 0.055555556, %v3420_v15  ;;  %v3419_v17 = vadd.f32 %v3377_v16, %v3281_v22  ;;  %v7160_v22 = vld [vmem:[%s7522_s2] sm:$0xff] }
 0x349   :  { %v3290_v48 = vpop.xlane.xlu0 %3289 }
 0x34a   :  { %v3468_v9 = vadd.f32 0.001, %v3436_v47  ;;  %v3435_v50 = vmul.f32 0.055555556, %v3419_v17 }
 0x34b   :  { %v3287_v20 = vpop.xlane.xlu1 %3286 }
 0x34c   :  { %5009 = vrsqrt.f32 %v3468_v9  ;;  %v3467_v3 = vadd.f32 0.001, %v3435_v50 }
 0x34d   :  { %v3386_v32 = vpop.xlane.xlu0 %3385 }
 0x34e   :  { %v3422_v8 = vadd.f32 %v3386_v32, %v3290_v48  ;;  %5011 = vrsqrt.f32 %v3467_v3  ;;  %v7170_v32 = vld [vmem:[%s7522_s2 + $0x18] sm:$0xff] }
 0x34f   :  { %v3383_v2 = vpop.xlane.xlu1 %3382 }
 0x350   :  { %v3438_v55 = vmul.f32 0.055555556, %v3422_v8  ;;  %v3421_v38 = vadd.f32 %v3383_v2, %v3287_v20 }
 0x351   :  { %v5006_v44 = vpop.eup %5005  ;;  %v3296_v14 = vpop.xlane.xlu0 %3295 }
 0x352   :  { %v3470_v9 = vadd.f32 0.001, %v3438_v55  ;;  %v3437_v50 = vmul.f32 0.055555556, %v3421_v38  ;;  %v3498_v18 = vmul.f32 %v5006_v44, %v7155_v10 }
 0x353   :  { %v5008_v21 = vpop.eup %5007  ;;  %v3293_v0 = vpop.xlane.xlu1 %3292 }
 0x354   :  { %5013 = vrsqrt.f32 %v3470_v9  ;;  %v3469_v15 = vadd.f32 0.001, %v3437_v50  ;;  %3616 = vperm.xlu1 %5001, %v3498_v18   ;;  %v3514_v16 = vmul.f32 %v3498_v18, %v7016_v33  ;;  %v3497_v20 = vmul.f32 %v5008_v21, %v7160_v22  ;;  %v7181_v21 = vld [vmem:[%s7522_s2 + $0x10] sm:$0xff] }
 0x355   :  { %v3392_v47 = vpop.xlane.xlu0 %3391 }
 0x356   :  { %5015 = vrsqrt.f32 %v3469_v15  ;;  %v3424_v17 = vadd.f32 %v3392_v47, %v3296_v14  ;;  %3547 = vrot.lane.b32.xlu0 %v3514_v16, %s5045_s30  ;;  %v3513_v48 = vmul.f32 %v3497_v20, %v7018_v35 }
 0x357   :  { %v3389_v3 = vpop.xlane.xlu1 %3388 }
 0x358   :  { %v3440_v8 = vmul.f32 0.055555556, %v3424_v17  ;;  %v3423_v2 = vadd.f32 %v3389_v3, %v3293_v0  ;;  %3545 = vrot.lane.b32.xlu1 %v3513_v48, %s5045_s30 }
 0x359   :  { %v5010_v33 = vpop.eup %5009  ;;  %v3302_v55 = vpop.xlane.xlu0 %3301 }
 0x35a   :  { %v3472_v38 = vadd.f32 0.001, %v3440_v8  ;;  %v3439_v44 = vmul.f32 0.055555556, %v3423_v2  ;;  %3611 = vperm.xlu0 %5002, %v3497_v20   ;;  %v7174_v14 = vmul.f32 %v5010_v33, %v7170_v32  ;;  %v7193_v8 = vld [vmem:[%s7522_s2 + $0x28] sm:$0xff] }
 0x35b   :  { %v3299_v9 = vpop.xlane.xlu1 %3298  ;;  %v5012_v35 = vpop.eup %5011 }
 0x35c   :  { %5017 = vrsqrt.f32 %v3472_v38  ;;  %v3471_v50 = vadd.f32 0.001, %v3439_v44  ;;  %v3516_v18 = vmul.f32 %v7174_v14, %v7024_v4  ;;  %v3499_v20 = vmul.f32 %v5012_v35, %v7181_v21  ;;  %v7188_v4 = vld [vmem:[%s7522_s2 + $0x20] sm:$0xff] }
 0x35d   :  { %v3398_v0 = vpop.xlane.xlu0 %3397 }
 0x35e   :  { %5019 = vrsqrt.f32 %v3471_v50  ;;  %v3426_v15 = vadd.f32 %v3398_v0, %v3302_v55  ;;  %3551 = vrot.lane.b32.xlu1 %v3516_v18, %s5045_s30  ;;  %v3515_v44 = vmul.f32 %v3499_v20, %v7030_v60  ;;  %v7208_v60 = vld [vmem:[%s7522_s2 + $0x38] sm:$0xff] }
 0x35f   :  { %v3395_v16 = vpop.xlane.xlu1 %3394 }
 0x360   :  { %v3442_v47 = vmul.f32 0.055555556, %v3426_v15  ;;  %v3425_v17 = vadd.f32 %v3395_v16, %v3299_v9 }
 0x361   :  { %v5014_v48 = vpop.eup %5013  ;;  %v3308_v3 = vpop.xlane.xlu0 %3307 }
 0x362   :  { %v3474_v2 = vadd.f32 0.001, %v3442_v47  ;;  %v3441_v33 = vmul.f32 0.055555556, %v3425_v17  ;;  %3621 = vperm.xlu1 %5001, %v3499_v20   ;;  %v7200_v50 = vmul.f32 %v5014_v48, %v7193_v8 }
 0x363   :  { %v5016_v55 = vpop.eup %5015  ;;  %v3305_v38 = vpop.xlane.xlu1 %3304 }
 0x364   :  { %5021 = vrsqrt.f32 %v3474_v2  ;;  %v3473_v9 = vadd.f32 0.001, %v3441_v33  ;;  %v7197_v35 = vmul.f32 %v5016_v55, %v7188_v4  ;;  %v3518_v17 = vmul.f32 %v7200_v50, %v7038_v54  ;;  %v7216_v2 = vld [vmem:[%s7522_s2 + $0x30] sm:$0xff] }
 0x365   :  { %v3404_v18 = vpop.xlane.xlu0 %3403 }
 0x366   :  { %5023 = vrsqrt.f32 %v3473_v9  ;;  %v3428_v0 = vadd.f32 %v3404_v18, %v3308_v3  ;;  %3549 = vrot.lane.b32.xlu1 %v3515_v44, %s5045_s30  ;;  %v3517_v15 = vmul.f32 %v7197_v35, %v7043_v46 }
 0x367   :  { %v3401_v16 = vpop.xlane.xlu1 %3400 }
 0x368   :  { %v3444_v20 = vmul.f32 0.055555556, %v3428_v0  ;;  %v3427_v47 = vadd.f32 %v3401_v16, %v3305_v38  ;;  %3553 = vrot.lane.b32.xlu0 %v3517_v15, %s5045_s30 }
 0x369   :  { %v5018_v48 = vpop.eup %5017  ;;  %v3314_v3 = vpop.xlane.xlu0 %3313 }
 0x36a   :  { %v3476_v46 = vadd.f32 0.001, %v3444_v20  ;;  %v3443_v33 = vmul.f32 0.055555556, %v3427_v47  ;;  %3555 = vrot.lane.b32.xlu1 %v3518_v17, %s5045_s30  ;;  %v7220_v55 = vmul.f32 %v5018_v48, %v7208_v60  ;;  %v7233_v47 = vld [vmem:[%s7522_s2 + $0x48] sm:$0xff] }
 0x36b   :  { %v5020_v38 = vpop.eup %5019  ;;  %v3311_v44 = vpop.xlane.xlu1 %3310 }
 0x36c   :  { %5025 = vrsqrt.f32 %v3476_v46  ;;  %v3475_v9 = vadd.f32 0.001, %v3443_v33  ;;  %v3520_v54 = vmul.f32 %v7220_v55, %v7054_v23  ;;  %v7225_v18 = vmul.f32 %v5020_v38, %v7216_v2 }
 0x36d   :  { %v3410_v0 = vpop.xlane.xlu0 %3409 }
 0x36e   :  { %5027 = vrsqrt.f32 %v3475_v9  ;;  %v3430_v15 = vadd.f32 %v3410_v0, %v3314_v3  ;;  %3559 = vrot.lane.b32.xlu1 %v3520_v54, %s5045_s30  ;;  %v3519_v16 = vmul.f32 %v7225_v18, %v7059_v41  ;;  %v7239_v3 = vld [vmem:[%s7522_s2 + $0x40] sm:$0xff] }
 0x36f   :  { %v3407_v20 = vpop.xlane.xlu1 %3406 }
 0x370   :  { %v3446_v17 = vmul.f32 0.055555556, %v3430_v15  ;;  %v3429_v48 = vadd.f32 %v3407_v20, %v3311_v44  ;;  %3557 = vrot.lane.b32.xlu0 %v3519_v16, %s5045_s30 }
 0x371   :  { %v5022_v23 = vpop.eup %5021  ;;  %v3320_v46 = vpop.xlane.xlu0 %3319 }
 0x372   :  { %v3478_v33 = vadd.f32 0.001, %v3446_v17  ;;  %v3445_v38 = vmul.f32 0.055555556, %v3429_v48  ;;  %v3506_v41 = vmul.f32 %v5022_v23, %v7233_v47  ;;  %v7249_v17 = vld [vmem:[%s7522_s2 + $0x58] sm:$0xff] }
 0x373   :  { %v5024_v9 = vpop.eup %5023  ;;  %v3317_v54 = vpop.xlane.xlu1 %3316 }
 0x374   :  { %5029 = vrsqrt.f32 %v3478_v33  ;;  %v3477_v0 = vadd.f32 0.001, %v3445_v38  ;;  %v3522_v15 = vmul.f32 %v3506_v41, %v7072_v37  ;;  %v3505_v44 = vmul.f32 %v5024_v9, %v7239_v3  ;;  %v7255_v33 = vld [vmem:[%s7522_s2 + $0x50] sm:$0xff] }
 0x375   :  { %v3416_v16 = vpop.xlane.xlu0 %3415 }
 0x376   :  { %5031 = vrsqrt.f32 %v3477_v0  ;;  %v3432_v20 = vadd.f32 %v3416_v16, %v3320_v46  ;;  %3563 = vrot.lane.b32.xlu1 %v3522_v15, %s5045_s30  ;;  %v3521_v12 = vmul.f32 %v3505_v44, %v7077_v51 }
 0x377   :  { %v3413_v29 = vpop.xlane.xlu1 %3412 }
 0x378   :  { %v3448_v48 = vmul.f32 0.055555556, %v3432_v20  ;;  %v3431_v23 = vadd.f32 %v3413_v29, %v3317_v54  ;;  %3561 = vrot.lane.b32.xlu0 %v3521_v12, %s5045_s30  ;;  %v7265_v12 = vld [vmem:[%s7522_s2 + $0x68] sm:$0xff]  ;;  %v7271_v20 = vld [vmem:[%s7522_s2 + $0x60] sm:$0xff] }
 0x379   :  { %v5026_v37 = vpop.eup %5025 }
 0x37a   :  { %v3480_v46 = vadd.f32 0.001, %v3448_v48  ;;  %v3447_v38 = vmul.f32 0.055555556, %v3431_v23  ;;  %v3508_v51 = vmul.f32 %v5026_v37, %v7249_v17 }
 0x37b   :  { %v5028_v9 = vpop.eup %5027 }
 0x37c   :  { %5033 = vrsqrt.f32 %v3480_v46  ;;  %v3479_v0 = vadd.f32 0.001, %v3447_v38  ;;  %v3524_v15 = vmul.f32 %v3508_v51, %v7092_v1  ;;  %v3507_v16 = vmul.f32 %v5028_v9, %v7255_v33  ;;  %v7281_v46 = vld [vmem:[%s7522_s2 + $0x78] sm:$0xff]  ;;  %v7287_v9 = vld [vmem:[%s7522_s2 + $0x70] sm:$0xff] }
 0x37e   :  { %5035 = vrsqrt.f32 %v3479_v0  ;;  %3567 = vrot.lane.b32.xlu1 %v3524_v15, %s5045_s30  ;;  %v3523_v29 = vmul.f32 %v3507_v16, %v7095_v43 }
 0x380   :  { %3565 = vrot.lane.b32.xlu0 %v3523_v29, %s5045_s30 }
 0x381   :  { %v5030_v54 = vpop.eup %5029 }
 0x382   :  { %v3510_v1 = vmul.f32 %v5030_v54, %v7265_v12 }
 0x383   :  { %v5032_v48 = vpop.eup %5031 }
 0x384   :  { %v3526_v23 = vmul.f32 %v3510_v1, %v7109_v45  ;;  %v3509_v43 = vmul.f32 %v5032_v48, %v7271_v20 }
 0x386   :  { %3571 = vrot.lane.b32.xlu1 %v3526_v23, %s5045_s30  ;;  %v3525_v37 = vmul.f32 %v3509_v43, %v7113_v24 }
 0x388   :  { %3569 = vrot.lane.b32.xlu0 %v3525_v37, %s5045_s30 }
 0x389   :  { %v5034_v38 = vpop.eup %5033 }
 0x38a   :  { %v3512_v45 = vmul.f32 %v5034_v38, %v7281_v46 }
 0x38b   :  { %v5036_v0 = vpop.eup %5035 }
 0x38c   :  { %v3528_v15 = vmul.f32 %v3512_v45, %v7126_v26  ;;  %v3511_v24 = vmul.f32 %v5036_v0, %v7287_v9  ;;  %v5046_v26 = vmov 1  }
 0x38e   :  { %3575 = vrot.lane.b32.xlu1 %v3528_v15, %s5045_s30  ;;  %v3527_v29 = vmul.f32 %v3511_v24, %v7131_v59 }
 0x390   :  { %3573 = vrot.lane.b32.xlu0 %v3527_v29, %s5045_s30 }
 0x392   :  { %3631 = vperm.xlu1 %5001, %v7197_v35  }
 0x394   :  { %3626 = vperm.xlu0 %5002, %v7174_v14  }
 0x396   :  { %3641 = vperm.xlu1 %5001, %v7225_v18  }
 0x398   :  { %3636 = vperm.xlu0 %5002, %v7200_v50  }
 0x39a   :  { %3651 = vperm.xlu1 %5001, %v3505_v44  }
 0x39c   :  { %3646 = vperm.xlu0 %5002, %v7220_v55  }
 0x39e   :  { %3661 = vperm.xlu1 %5001, %v3507_v16  }
 0x3a0   :  { %3656 = vperm.xlu0 %5002, %v3506_v41  }
 0x3a2   :  { %3671 = vperm.xlu1 %5001, %v3509_v43  }
 0x3a4   :  { %3666 = vperm.xlu0 %5002, %v3508_v51  }
 0x3a6   :  { %3681 = vperm.xlu1 %5001, %v3511_v24  }
 0x3a8   :  { %3676 = vperm.xlu0 %5002, %v3510_v1  }
 0x3aa   :  { %5004 = vset.pattern.permute.xlu1 %v5046_v26 }
 0x3ac   :  { %3686 = vperm.xlu0 %5002, %v3512_v45  }
 0x3b0   :  { %5003 = vset.pattern.permute.xlu0 %v5046_v26 }
 0x3c8   :  { %v3548_v59 = vpop.permute.xlu0 %3547 }
 0x3c9   :  { %v3594_v14 = vsub.f32 %v7155_v10, %v3548_v59 }
 0x3cb   :  { %3712 = vperm.xlu0 %5003, %v3594_v14  }
 0x3cf   :  { %v3617_v35 = vpop.permute.xlu1 %3616 }
 0x3d3   :  { %v3546_v18 = vpop.permute.xlu1 %3545 }
 0x3d4   :  { %v3593_v50 = vsub.f32 %v7160_v22, %v3546_v18 }
 0x3d5   :  { %v7302_v44 = vpop.permute.xlu0 %3611 }
 0x3d6   :  { %3707 = vperm.xlu1 %5004, %v3593_v50  }
 0x3d7   :  { %v3552_v55 = vpop.permute.xlu1 %3551 }
 0x3d8   :  { %v3596_v41 = vsub.f32 %v7170_v32, %v3552_v55 }
 0x3da   :  { %3722 = vperm.xlu1 %5004, %v3596_v41   ;;  %v3554_v51 = vpop.permute.xlu0 %3553 }
 0x3db   :  { %v3597_v16 = vsub.f32 %v7188_v4, %v3554_v51 }
 0x3dd   :  { %v7306_v54 = vpop.permute.xlu1 %3621  ;;  %3727 = vperm.xlu0 %5003, %v3597_v16  }
 0x3e1   :  { %v3550_v1 = vpop.permute.xlu1 %3549 }
 0x3e2   :  { %v3595_v10 = vsub.f32 %v7181_v21, %v3550_v1  ;;  %v3558_v48 = vpop.permute.xlu0 %3557  ;;  %v3834_v1 = vmul.f32 %v3617_v35, %v6879_v49  ;;  %v3689_v49 = vmul.f32 %v7302_v44, %v7898_v61 }
 0x3e3   :  { %v3599_v23 = vsub.f32 %v7216_v2, %v3558_v48 }
 0x3e4   :  { %3717 = vperm.xlu1 %5004, %v3595_v10  }
 0x3e5   :  { %v3556_v22 = vpop.permute.xlu1 %3555  ;;  %3737 = vperm.xlu0 %5003, %v3599_v23  }
 0x3e6   :  { %v3598_v43 = vsub.f32 %v7193_v8, %v3556_v22 }
 0x3e8   :  { %3732 = vperm.xlu1 %5004, %v3598_v43  }
 0x3e9   :  { %v3560_v32 = vpop.permute.xlu1 %3559 }
 0x3ea   :  { %v3600_v37 = vsub.f32 %v7208_v60, %v3560_v32  ;;  %v3562_v38 = vpop.permute.xlu0 %3561 }
 0x3eb   :  { %v3601_v4 = vsub.f32 %v7239_v3, %v3562_v38 }
 0x3ec   :  { %3742 = vperm.xlu1 %5004, %v3600_v37  }
 0x3ed   :  { %v3564_v45 = vpop.permute.xlu1 %3563  ;;  %3747 = vperm.xlu0 %5003, %v3601_v4  }
 0x3ee   :  { %v3602_v21 = vsub.f32 %v7233_v47, %v3564_v45 }
 0x3f0   :  { %3752 = vperm.xlu1 %5004, %v3602_v21  }
 0x3f1   :  { %v3568_v0 = vpop.permute.xlu1 %3567 }
 0x3f2   :  { %v3604_v2 = vsub.f32 %v7249_v17, %v3568_v0  ;;  %v3566_v15 = vpop.permute.xlu0 %3565 }
 0x3f3   :  { %v3603_v24 = vsub.f32 %v7255_v33, %v3566_v15 }
 0x3f4   :  { %3762 = vperm.xlu1 %5004, %v3604_v2  }
 0x3f5   :  { %3757 = vperm.xlu0 %5003, %v3603_v24  }
 0x3f8   :  { %v3572_v8 = vpop.permute.xlu1 %3571 }
 0x3f9   :  { %v3606_v60 = vsub.f32 %v7265_v12, %v3572_v8 }
 0x3fa   :  { %v3570_v29 = vpop.permute.xlu0 %3569 }
 0x3fb   :  { %v3605_v3 = vsub.f32 %v7271_v20, %v3570_v29  ;;  %3772 = vperm.xlu1 %5004, %v3606_v60  }
 0x3fd   :  { %3767 = vperm.xlu0 %5003, %v3605_v3  }
 0x400   :  { %v3576_v26 = vpop.permute.xlu1 %3575 }
 0x401   :  { %v3608_v47 = vsub.f32 %v7281_v46, %v3576_v26 }
 0x402   :  { %v3574_v59 = vpop.permute.xlu0 %3573 }
 0x403   :  { %v3607_v14 = vsub.f32 %v7287_v9, %v3574_v59  ;;  %3782 = vperm.xlu1 %5004, %v3608_v47   ;;  %v3690_v9 = vmul.f32 %v3617_v35, %v7897_v6  ;;  %v3833_v35 = vmul.f32 %v7302_v44, %v6885_v5 }
 0x405   :  { %3777 = vperm.xlu0 %5003, %v3607_v14  }
 0x40d   :  { %v3632_v50 = vpop.permute.xlu1 %3631 }
 0x40e   :  { %v3693_v44 = vmul.f32 %v3632_v50, %v7902_v63  ;;  %v3835_v63 = vmul.f32 %v7306_v54, %v6905_v56 }
 0x40f   :  { %v3627_v17 = vpop.permute.xlu0 %3626 }
 0x410   :  { %v3692_v45 = vmul.f32 %v3627_v17, %v7899_v13  ;;  %v3836_v21 = vmul.f32 %v3627_v17, %v6895_v62  ;;  %v3837_v13 = vmul.f32 %v3632_v50, %v6925_v40  ;;  %v3691_v40 = vmul.f32 %v7306_v54, %v7900_v34 }
 0x411   :  { %v3642_v12 = vpop.permute.xlu1 %3641 }
 0x412   :  { %v3695_v47 = vmul.f32 %v3642_v12, %v7904_v42  ;;  %v3839_v59 = vmul.f32 %v3642_v12, %v6945_v36 }
 0x413   :  { %v3637_v33 = vpop.permute.xlu0 %3636 }
 0x415   :  { %v7326_v20 = vpop.permute.xlu1 %3651 }
 0x416   :  { %v3841_v12 = vmul.f32 %v7326_v20, %v6963_v52 }
 0x417   :  { %v7320_v18 = vpop.permute.xlu0 %3646 }
 0x419   :  { %v7330_v46 = vpop.permute.xlu1 %3661 }
 0x41b   :  { %v7322_v55 = vpop.permute.xlu0 %3656 }
 0x41c   :  { %v3842_v52 = vmul.f32 %v7322_v55, %v6955_v11 }
 0x41d   :  { %v7336_v48 = vpop.permute.xlu1 %3671 }
 0x41f   :  { %v7324_v41 = vpop.permute.xlu0 %3666 }
 0x420   :  { %v3700_v11 = vmul.f32 %v7324_v41, %v7907_v27 }
 0x421   :  { %v7346_v6 = vpop.permute.xlu1 %3681 }
 0x423   :  { %v7328_v51 = vpop.permute.xlu0 %3676 }
 0x427   :  { %v7332_v16 = vpop.permute.xlu0 %3686 }
 0x446   :  { %v3713_v10 = vpop.permute.xlu0 %3712 }
 0x447   :  { %v3786_v23 = vadd.f32 %v3713_v10, %v3690_v9  ;;  %v3850_v22 = vadd.f32 %v3834_v1, %v3713_v10 }
 0x449   :  { %v3802_v43 = vmax.f32 %v3786_v23, 0.0  ;;  %v3866_v32 = vmax.f32 %v3850_v22, 0.0  ;;  %v3694_v23 = vmul.f32 %v3637_v33, %v7901_v30  ;;  %v3838_v22 = vmul.f32 %v3637_v33, %v6915_v53 }
 0x44a   :  { %v3696_v53 = vmul.f32 %v7320_v18, %v7903_v7  ;;  %v3840_v30 = vmul.f32 %v7320_v18, %v6935_v25  ;;  %v3697_v33 = vmul.f32 %v7326_v20, %v7906_v39  ;;  %v3698_v39 = vmul.f32 %v7322_v55, %v7905_v19 }
 0x44b   :  { %3818 = vst.msk [vmem:[%s7523_s3 + $0x8] sm:$0xff] %vm3112_vm2, %v3802_v43  ;;  %4288 = vst.msk [vmem:[%s7523_s3 + $0x88] sm:$0xff] %vm3112_vm2, %v3866_v32  ;;  %v3844_v55 = vmul.f32 %v7324_v41, %v6970_v57 }
 0x451   :  { %v3708_v37 = vpop.permute.xlu1 %3707 }
 0x452   :  { %v3785_v38 = vadd.f32 %v3708_v37, %v3689_v49  ;;  %v3849_v4 = vadd.f32 %v3833_v35, %v3708_v37 }
 0x454   :  { %v3801_v0 = vmax.f32 %v3785_v38, 0.0  ;;  %v3865_v2 = vmax.f32 %v3849_v4, 0.0 }
 0x455   :  { %v3723_v15 = vpop.permute.xlu1 %3722 }
 0x456   :  { %3817 = vst.msk [vmem:[%s7523_s3] sm:$0xff] %vm3112_vm2, %v3801_v0  ;;  %4287 = vst.msk [vmem:[%s7523_s3 + $0x80] sm:$0xff] %vm3112_vm2, %v3865_v2  ;;  %v3788_v5 = vadd.f32 %v3723_v15, %v3692_v45  ;;  %v3852_v61 = vadd.f32 %v3836_v21, %v3723_v15 }
 0x458   :  { %v3804_v62 = vmax.f32 %v3788_v5, 0.0  ;;  %v3868_v24 = vmax.f32 %v3852_v61, 0.0  ;;  %v3728_v8 = vpop.permute.xlu0 %3727 }
 0x459   :  { %v3789_v60 = vadd.f32 %v3728_v8, %v3693_v44  ;;  %v3853_v29 = vadd.f32 %v3837_v13, %v3728_v8  ;;  %v3699_v44 = vmul.f32 %v7330_v46, %v7908_v28  ;;  %v3843_v13 = vmul.f32 %v7330_v46, %v6976_v31 }
 0x45a   :  { %3820 = vst.msk [vmem:[%s7523_s3 + $0x18] sm:$0xff] %vm3112_vm2, %v3804_v62  ;;  %4290 = vst.msk [vmem:[%s7523_s3 + $0x98] sm:$0xff] %vm3112_vm2, %v3868_v24  ;;  %v3702_v46 = vmul.f32 %v7328_v51, %v7909_v58 }
 0x45b   :  { %v3805_v3 = vmax.f32 %v3789_v60, 0.0  ;;  %v3869_v26 = vmax.f32 %v3853_v29, 0.0 }
 0x45d   :  { %3821 = vst.msk [vmem:[%s7523_s3 + $0x20] sm:$0xff] %vm3112_vm2, %v3805_v3  ;;  %4291 = vst.msk [vmem:[%s7523_s3 + $0xa0] sm:$0xff] %vm3112_vm2, %v3869_v26  ;;  %v7913_v3 = vld [vmem:[#allocation33_spill] sm:$0xff] }
 0x45e   :  { %v3846_v26 = vmul.f32 %v7328_v51, %v7913_v3 }
 0x45f   :  { %v3718_v14 = vpop.permute.xlu1 %3717 }
 0x460   :  { %v3787_v17 = vadd.f32 %v3718_v14, %v3691_v40  ;;  %v3851_v50 = vadd.f32 %v3835_v63, %v3718_v14  ;;  %v3738_v9 = vpop.permute.xlu0 %3737  ;;  %v7914_v63 = vld [vmem:[#allocation2_spill] sm:$0xff] }
 0x461   :  { %v3791_v1 = vadd.f32 %v3738_v9, %v3695_v47  ;;  %v3855_v10 = vadd.f32 %v3839_v59, %v3738_v9  ;;  %v3701_v47 = vmul.f32 %v7336_v48, %v7914_v63  ;;  %v7915_v59 = vld [vmem:[#allocation41_spill] sm:$0xff] }
 0x462   :  { %v3803_v43 = vmax.f32 %v3787_v17, 0.0  ;;  %v3867_v32 = vmax.f32 %v3851_v50, 0.0  ;;  %v3845_v58 = vmul.f32 %v7336_v48, %v7915_v59  ;;  %v7916_v48 = vld [vmem:[#allocation10_spill] sm:$0xff] }
 0x463   :  { %v3807_v34 = vmax.f32 %v3791_v1, 0.0  ;;  %v3871_v49 = vmax.f32 %v3855_v10, 0.0  ;;  %v3733_v35 = vpop.permute.xlu1 %3732 }
 0x464   :  { %3819 = vst.msk [vmem:[%s7523_s3 + $0x10] sm:$0xff] %vm3112_vm2, %v3803_v43  ;;  %4289 = vst.msk [vmem:[%s7523_s3 + $0x90] sm:$0xff] %vm3112_vm2, %v3867_v32  ;;  %v3790_v56 = vadd.f32 %v3733_v35, %v3694_v23  ;;  %v3854_v36 = vadd.f32 %v3838_v22, %v3733_v35  ;;  %v3704_v43 = vmul.f32 %v7332_v16, %v7916_v48  ;;  %v7917_v32 = vld [vmem:[#allocation26_spill] sm:$0xff] }
 0x465   :  { %3823 = vst.msk [vmem:[%s7523_s3 + $0x30] sm:$0xff] %vm3112_vm2, %v3807_v34  ;;  %4293 = vst.msk [vmem:[%s7523_s3 + $0xb0] sm:$0xff] %vm3112_vm2, %v3871_v49  ;;  %v3848_v34 = vmul.f32 %v7332_v16, %v7917_v32  ;;  %v7918_v35 = vld [vmem:[#allocation38_spill] sm:$0xff] }
 0x466   :  { %v3806_v42 = vmax.f32 %v3790_v56, 0.0  ;;  %v3870_v54 = vmax.f32 %v3854_v36, 0.0  ;;  %v3703_v56 = vmul.f32 %v7346_v6, %v7918_v35  ;;  %v7919_v36 = vld [vmem:[#allocation28_spill] sm:$0xff] }
 0x467   :  { %v3743_v37 = vpop.permute.xlu1 %3742 }
 0x468   :  { %3822 = vst.msk [vmem:[%s7523_s3 + $0x28] sm:$0xff] %vm3112_vm2, %v3806_v42  ;;  %4292 = vst.msk [vmem:[%s7523_s3 + $0xa8] sm:$0xff] %vm3112_vm2, %v3870_v54  ;;  %v3792_v25 = vadd.f32 %v3743_v37, %v3696_v53  ;;  %v3856_v7 = vadd.f32 %v3840_v30, %v3743_v37  ;;  %v3748_v18 = vpop.permute.xlu0 %3747  ;;  %v3847_v53 = vmul.f32 %v7346_v6, %v7919_v36 }
 0x469   :  { %v3793_v38 = vadd.f32 %v3748_v18, %v3697_v33  ;;  %v3857_v4 = vadd.f32 %v3841_v12, %v3748_v18 }
 0x46a   :  { %v3808_v20 = vmax.f32 %v3792_v25, 0.0  ;;  %v3872_v45 = vmax.f32 %v3856_v7, 0.0 }
 0x46b   :  { %v3809_v21 = vmax.f32 %v3793_v38, 0.0  ;;  %v3873_v0 = vmax.f32 %v3857_v4, 0.0  ;;  %v3753_v2 = vpop.permute.xlu1 %3752 }
 0x46c   :  { %3824 = vst.msk [vmem:[%s7523_s3 + $0x38] sm:$0xff] %vm3112_vm2, %v3808_v20  ;;  %4294 = vst.msk [vmem:[%s7523_s3 + $0xb8] sm:$0xff] %vm3112_vm2, %v3872_v45  ;;  %v3794_v15 = vadd.f32 %v3753_v2, %v3698_v39  ;;  %v3858_v19 = vadd.f32 %v3842_v52, %v3753_v2 }
 0x46d   :  { %3825 = vst.msk [vmem:[%s7523_s3 + $0x40] sm:$0xff] %vm3112_vm2, %v3809_v21  ;;  %4295 = vst.msk [vmem:[%s7523_s3 + $0xc0] sm:$0xff] %vm3112_vm2, %v3873_v0 }
 0x46e   :  { %v3810_v5 = vmax.f32 %v3794_v15, 0.0  ;;  %v3874_v61 = vmax.f32 %v3858_v19, 0.0 }
 0x46f   :  { %v3763_v62 = vpop.permute.xlu1 %3762 }
 0x470   :  { %3826 = vst.msk [vmem:[%s7523_s3 + $0x48] sm:$0xff] %vm3112_vm2, %v3810_v5  ;;  %4296 = vst.msk [vmem:[%s7523_s3 + $0xc8] sm:$0xff] %vm3112_vm2, %v3874_v61  ;;  %v3796_v57 = vadd.f32 %v3763_v62, %v3700_v11  ;;  %v3860_v27 = vadd.f32 %v3844_v55, %v3763_v62  ;;  %v3758_v41 = vpop.permute.xlu0 %3757 }
 0x471   :  { %v3795_v24 = vadd.f32 %v3758_v41, %v3699_v44  ;;  %v3859_v8 = vadd.f32 %v3843_v13, %v3758_v41 }
 0x472   :  { %v3812_v28 = vmax.f32 %v3796_v57, 0.0  ;;  %v3876_v60 = vmax.f32 %v3860_v27, 0.0 }
 0x473   :  { %v3811_v29 = vmax.f32 %v3795_v24, 0.0  ;;  %v3875_v31 = vmax.f32 %v3859_v8, 0.0 }
 0x474   :  { %3828 = vst.msk [vmem:[%s7523_s3 + $0x58] sm:$0xff] %vm3112_vm2, %v3812_v28  ;;  %4298 = vst.msk [vmem:[%s7523_s3 + $0xd8] sm:$0xff] %vm3112_vm2, %v3876_v60 }
 0x475   :  { %3827 = vst.msk [vmem:[%s7523_s3 + $0x50] sm:$0xff] %vm3112_vm2, %v3811_v29  ;;  %4297 = vst.msk [vmem:[%s7523_s3 + $0xd0] sm:$0xff] %vm3112_vm2, %v3875_v31 }
 0x476   :  { %v3773_v40 = vpop.permute.xlu1 %3772 }
 0x477   :  { %v3798_v14 = vadd.f32 %v3773_v40, %v3702_v46  ;;  %v3862_v17 = vadd.f32 %v3846_v26, %v3773_v40 }
 0x478   :  { %v3768_v51 = vpop.permute.xlu0 %3767 }
 0x479   :  { %v3814_v50 = vmax.f32 %v3798_v14, 0.0  ;;  %v3878_v9 = vmax.f32 %v3862_v17, 0.0  ;;  %v3797_v1 = vadd.f32 %v3768_v51, %v3701_v47  ;;  %v3861_v10 = vadd.f32 %v3845_v58, %v3768_v51 }
 0x47b   :  { %3830 = vst.msk [vmem:[%s7523_s3 + $0x68] sm:$0xff] %vm3112_vm2, %v3814_v50  ;;  %4300 = vst.msk [vmem:[%s7523_s3 + $0xe8] sm:$0xff] %vm3112_vm2, %v3878_v9  ;;  %v3813_v23 = vmax.f32 %v3797_v1, 0.0  ;;  %v3877_v22 = vmax.f32 %v3861_v10, 0.0 }
 0x47d   :  { %3829 = vst.msk [vmem:[%s7523_s3 + $0x60] sm:$0xff] %vm3112_vm2, %v3813_v23  ;;  %4299 = vst.msk [vmem:[%s7523_s3 + $0xe0] sm:$0xff] %vm3112_vm2, %v3877_v22 }
 0x47e   :  { %v3783_v49 = vpop.permute.xlu1 %3782 }
 0x47f   :  { %v3800_v30 = vadd.f32 %v3783_v49, %v3704_v43  ;;  %v3864_v42 = vadd.f32 %v3848_v34, %v3783_v49 }
 0x480   :  { %v3778_v16 = vpop.permute.xlu0 %3777 }
 0x481   :  { %v3816_v54 = vmax.f32 %v3800_v30, 0.0  ;;  %v3880_v33 = vmax.f32 %v3864_v42, 0.0  ;;  %v3799_v12 = vadd.f32 %v3778_v16, %v3703_v56  ;;  %v3863_v37 = vadd.f32 %v3847_v53, %v3778_v16 }
 0x483   :  { %3832 = vst.msk [vmem:[%s7523_s3 + $0x78] sm:$0xff] %vm3112_vm2, %v3816_v54  ;;  %4302 = vst.msk [vmem:[%s7523_s3 + $0xf8] sm:$0xff] %vm3112_vm2, %v3880_v33  ;;  %v3815_v25 = vmax.f32 %v3799_v12, 0.0  ;;  %v3879_v7 = vmax.f32 %v3863_v37, 0.0 }
 0x485   :  { %3831 = vst.msk [vmem:[%s7523_s3 + $0x70] sm:$0xff] %vm3112_vm2, %v3815_v25  ;;  %4301 = vst.msk [vmem:[%s7523_s3 + $0xf0] sm:$0xff] %vm3112_vm2, %v3879_v7 }

</bundles_post_ra>
